<compile_context>
chip_gen: v7x
topology: tpu7x:2x2x1
jax: 0.10.0
libtpu: 0.0.40
codegen_flags: <defaults>
</compile_context>

<pallas_src>
import functools

import jax
import jax.numpy as jnp
import numpy as np
from jax.experimental import pallas as pl
from jax.experimental.pallas import tpu as pltpu

_BF16 = jnp.bfloat16
_F32 = jnp.float32


def _basic_block_kernel(*refs, stride, has_proj, emit_preact, lane_dense,
                        Bt, H, W, Hp, Wp, Hout, Wout, Cin, P):
    """Processes Bt batch elements per grid step.

    Inputs (refs, in order):
      x_ref : stride=1 -> (Bt, H, W, Cin) bf16 unpadded input
              stride=2 -> (Bt, 4*Hp, Wp, Cin) bf16 polyphase split of padded x
      w1 (9*Cin, P) bf16 | s1,b1 (1,P) f32
      w2 (9*P,  P) bf16 | s2,b2 (1,P) f32
      [ws (Cin, P) bf16 | ss,bs (1,P) f32]          only when has_proj
    Outputs: out_ref [, pre_ref] -- (Bt, Hout, Wout*P) if lane_dense else NHWC
    Scratch: [xpad (Bt,H+2,W+2,Cin) bf16], ypad (Bt,Hout+2,Wout+2,P) bf16,
             slab1 (Bt*hw, 9*Cin) bf16, slab2 (Bt*hw, 9*P) bf16
    """
    it = iter(refs)
    x_ref = next(it)
    w1_ref, s1_ref, b1_ref = next(it), next(it), next(it)
    w2_ref, s2_ref, b2_ref = next(it), next(it), next(it)
    if has_proj:
        ws_ref, ss_ref, bs_ref = next(it), next(it), next(it)
    out_ref = next(it)
    pre_ref = next(it) if emit_preact else None
    xpad_scr = next(it) if stride == 1 else None
    ypad_scr = next(it)
    slab1_scr = next(it)
    slab2_scr = next(it)

    hw = Hout * Wout

    # ---- conv1: write the im2col slab (Bt*hw, 9*Cin) directly into VMEM ----
    if stride == 1:
        # bf16 halo scratch; borders re-zeroed every step (zero-once would be
        # wrong on v7x megacore with the batch axis marked "parallel").
        zrow = jnp.zeros((Bt, 1, W + 2, Cin), _BF16)
        xpad_scr[:, 0:1, :, :] = zrow
        xpad_scr[:, H + 1:H + 2, :, :] = zrow
        zcol = jnp.zeros((Bt, H + 2, 1, Cin), _BF16)
        xpad_scr[:, :, 0:1, :] = zcol
        xpad_scr[:, :, W + 1:W + 2, :] = zcol
        xv = x_ref[...]                                   # (Bt, H, W, Cin) bf16
        xpad_scr[:, 1:H + 1, 1:W + 1, :] = xv
        for b in range(Bt):
            for kh in range(3):
                for kw in range(3):
                    t = xpad_scr[b:b + 1, kh:kh + Hout, kw:kw + Wout, :]
                    c0 = (kh * 3 + kw) * Cin
                    slab1_scr[b * hw:(b + 1) * hw, c0:c0 + Cin] = t.reshape(hw, Cin)
        xsc = xv.reshape(Bt * hw, Cin)                    # shortcut input (bf16)
    else:
        # polyphase layout: row block p*2+q of axis 1 holds xpad[p::2, q::2, :]
        for b in range(Bt):
            for kh in range(3):
                for kw in range(3):
                    r0 = ((kh % 2) * 2 + (kw % 2)) * Hp + kh // 2
                    cc = kw // 2
                    t = x_ref[b:b + 1, r0:r0 + Hout, cc:cc + Wout, :]
                    c0 = (kh * 3 + kw) * Cin
                    slab1_scr[b * hw:(b + 1) * hw, c0:c0 + Cin] = t.reshape(hw, Cin)
        # shortcut (1x1, stride 2) reads x[0::2, 0::2] == phase (1,1) of xpad
        xsc = x_ref[:, 3 * Hp:3 * Hp + Hout, 0:Wout, :].reshape(Bt * hw, Cin)

    acc1 = jnp.dot(slab1_scr[...], w1_ref[...], preferred_element_type=_F32)
    out1 = jnp.maximum(acc1 * s1_ref[...] + b1_ref[...], 0.0)     # (Bt*hw, P) f32

    # ---- conv2 (3x3, stride 1, pad=1) + bn2 ---------------------------------
    zrow = jnp.zeros((Bt, 1, Wout + 2, P), _BF16)
    ypad_scr[:, 0:1, :, :] = zrow
    ypad_scr[:, Hout + 1:Hout + 2, :, :] = zrow
    zcol = jnp.zeros((Bt, Hout + 2, 1, P), _BF16)
    ypad_scr[:, :, 0:1, :] = zcol
    ypad_scr[:, :, Wout + 1:Wout + 2, :] = zcol
    ypad_scr[:, 1:Hout + 1, 1:Wout + 1, :] = (
        out1.reshape(Bt, Hout, Wout, P).astype(_BF16))
    for b in range(Bt):
        for kh in range(3):
            for kw in range(3):
                t = ypad_scr[b:b + 1, kh:kh + Hout, kw:kw + Wout, :]
                c0 = (kh * 3 + kw) * P
                slab2_scr[b * hw:(b + 1) * hw, c0:c0 + P] = t.reshape(hw, P)
    acc2 = jnp.dot(slab2_scr[...], w2_ref[...], preferred_element_type=_F32)
    out2 = acc2 * s2_ref[...] + b2_ref[...]

    # ---- shortcut + residual add + ReLU -------------------------------------
    if has_proj:
        sc = jnp.dot(xsc, ws_ref[...], preferred_element_type=_F32)
        sc = sc * ss_ref[...] + bs_ref[...]
    else:
        # Identity shortcut: x has been rounded to bf16 on the HBM->VMEM DMA
        # (slight precision loss vs. the f32 PyTorch pass-through).
        sc = xsc.astype(_F32)

    preact = out2 + sc                                    # (Bt*hw, P) f32
    out = jnp.maximum(preact, 0.0)

    def _store(ref, val):
        y = val.reshape(Bt, Hout, Wout, P)
        if lane_dense:
            # Pack (Wout, P) onto the lane dim -> dense 64/128-lane stores
            # instead of P-lane masked stores (P < 128 here).
            y = jnp.concatenate([y[:, :, w, :] for w in range(Wout)], axis=-1)
        ref[...] = y.astype(ref.dtype)

    _store(out_ref, out)
    if emit_preact:
        _store(pre_ref, preact)


def _fold_bn(bn, eps=1e-5):
    gamma, beta, mean, var = bn
    scale = gamma / jnp.sqrt(var + eps)
    return (scale.reshape(1, -1).astype(_F32),
            (beta - mean * scale).reshape(1, -1).astype(_F32))


def basic_block_forward_nhwc(x, params, *, stride, is_last=False,
                             out_dtype=jnp.float32, batch_tile=None):
    """NHWC entry point (use when chaining blocks to avoid transposes).
    For chained blocks pass out_dtype=jnp.bfloat16 to halve output HBM traffic.
    """
    B, H, W, Cin = x.shape
    P = params["w1"].shape[0]
    assert stride in (1, 2), "only stride 1 / 2 supported"
    has_proj = (stride != 1) or (Cin != P)
    Hout = (H + 2 - 3) // stride + 1
    Wout = (W + 2 - 3) // stride + 1
    hw = Hout * Wout

    # Activations travel HBM<->VMEM in bf16 (half the DMA bytes of f32).
    x = x.astype(_BF16)

    # Batch folding: raise the matmul M dim toward the 256-row MXU (v6e/v7x)
    # and amortise the per-grid-step overhead.
    if batch_tile is None:
        want = max(1, -(-256 // hw))              # ceil(256 / hw)
        Bt = 1
        for cand in range(min(B, want), 0, -1):
            if B % cand == 0:
                Bt = cand
                break
    else:
        Bt = batch_tile
    assert B % Bt == 0, "batch must be divisible by the batch tile"
    n_steps = B // Bt

    # PyTorch OIHW -> (kh, kw, cin, cout) -> (9*cin, cout), bf16 for the MXU.
    w1 = jnp.transpose(params["w1"], (2, 3, 1, 0)).reshape(9 * Cin, P).astype(_BF16)
    w2 = jnp.transpose(params["w2"], (2, 3, 1, 0)).reshape(9 * P, P).astype(_BF16)
    s1, b1 = _fold_bn(params["bn1"])
    s2, b2 = _fold_bn(params["bn2"])

    if stride == 1:
        Hp = Wp = 0
        x_in = x
        x_blk = (Bt, H, W, Cin)
        x_spec = pl.BlockSpec(x_blk, lambda b: (b, 0, 0, 0))
        scratch = [pltpu.VMEM((Bt, H + 2, W + 2, Cin), _BF16)]
    else:
        assert H % 2 == 0 and W % 2 == 0, "stride-2 path requires even H, W"
        Hp, Wp = (H + 2) // 2, (W + 2) // 2
        # TODO(synk): wrapper-side pad + polyphase split is one extra XLA pass
        # over the (bf16) input; in-kernel strided decimation would remove it.
        x_pad = jnp.pad(x, ((0, 0), (1, 1), (1, 1), (0, 0)))
        # polyphase split: row block (p*2+q) holds xpad[:, p::2, q::2, :]
        x_in = (x_pad.reshape(B, Hp, 2, Wp, 2, Cin)
                     .transpose(0, 2, 4, 1, 3, 5)
                     .reshape(B, 4 * Hp, Wp, Cin))
        x_blk = (Bt, 4 * Hp, Wp, Cin)
        x_spec = pl.BlockSpec(x_blk, lambda b: (b, 0, 0, 0))
        scratch = []
    scratch += [pltpu.VMEM((Bt, Hout + 2, Wout + 2, P), _BF16),
                pltpu.VMEM((Bt * hw, 9 * Cin), _BF16),
                pltpu.VMEM((Bt * hw, 9 * P), _BF16)]

    vec_spec = pl.BlockSpec((1, P), lambda b: (0, 0))
    in_specs = [x_spec,
                pl.BlockSpec((9 * Cin, P), lambda b: (0, 0)), vec_spec, vec_spec,
                pl.BlockSpec((9 * P, P), lambda b: (0, 0)), vec_spec, vec_spec]
    inputs = [x_in, w1, s1, b1, w2, s2, b2]
    if has_proj:
        ws = jnp.transpose(params["ws"], (2, 3, 1, 0)).reshape(Cin, P).astype(_BF16)
        ss, bs = _fold_bn(params["bns"])
        in_specs += [pl.BlockSpec((Cin, P), lambda b: (0, 0)), vec_spec, vec_spec]
        inputs += [ws, ss, bs]

    # Lane-dense output presentation when the channel count is below one full
    # lane group; the trailing reshape in HBM is free (row-major contiguous).
    lane_dense = P < 128
    if lane_dense:
        out_arr_shape = (B, Hout, Wout * P)
        out_spec = pl.BlockSpec((Bt, Hout, Wout * P), lambda b: (b, 0, 0))
    else:
        out_arr_shape = (B, Hout, Wout, P)
        out_spec = pl.BlockSpec((Bt, Hout, Wout, P), lambda b: (b, 0, 0, 0))

    if is_last:
        out_shape = (jax.ShapeDtypeStruct(out_arr_shape, out_dtype),
                     jax.ShapeDtypeStruct(out_arr_shape, out_dtype))
        out_specs = (out_spec, out_spec)
    else:
        out_shape = jax.ShapeDtypeStruct(out_arr_shape, out_dtype)
        out_specs = out_spec

    kernel = functools.partial(
        _basic_block_kernel, stride=stride, has_proj=has_proj,
        emit_preact=is_last, lane_dense=lane_dense,
        Bt=Bt, H=H, W=W, Hp=Hp, Wp=Wp, Hout=Hout, Wout=Wout, Cin=Cin, P=P)

    # VMEM limit derived from actual block / scratch sizes (double-buffered
    # inputs and outputs, resident weights), clamped to the v7x 64 MiB budget.
    def _bytes(shape, dt):
        return int(np.prod(shape)) * jnp.dtype(dt).itemsize

    x_bytes = _bytes(x_blk, _BF16)
    out_bytes = Bt * _bytes(out_arr_shape[1:], out_dtype) * (2 if is_last else 1)
    w_bytes = sum(_bytes(a.shape, a.dtype) for a in inputs[1:])
    scr_bytes = ((_bytes((Bt, H + 2, W + 2, Cin), _BF16) if stride == 1 else 0)
                 + _bytes((Bt, Hout + 2, Wout + 2, P), _BF16)
                 + _bytes((Bt * hw, 9 * Cin), _BF16)
                 + _bytes((Bt * hw, 9 * P), _BF16))
    vmem_limit = 2 * x_bytes + 2 * out_bytes + 2 * w_bytes + scr_bytes + (4 << 20)
    vmem_limit = int(min(max(vmem_limit, 16 << 20), 64 << 20))

    res = pl.pallas_call(
        kernel,
        out_shape=out_shape,
        grid_spec=pltpu.PrefetchScalarGridSpec(
            num_scalar_prefetch=0,
            grid=(n_steps,),
            in_specs=in_specs,
            out_specs=out_specs,
            scratch_shapes=scratch),
        compiler_params=pltpu.CompilerParams(
            dimension_semantics=("parallel",),
            vmem_limit_bytes=vmem_limit),
    )(*inputs)

    def _unfold(a):
        return a.reshape(B, Hout, Wout, P) if lane_dense else a

    if is_last:
        return _unfold(res[0]), _unfold(res[1])
    return _unfold(res)


def basic_block_forward(x_nchw, params, *, stride, is_last=False):
    """NCHW wrapper (PyTorch layout, f32 outputs).  Chained blocks should use
    the NHWC entry point so the transposes only happen at model boundaries."""
    x = jnp.transpose(x_nchw, (0, 2, 3, 1))
    res = basic_block_forward_nhwc(x, params, stride=stride, is_last=is_last)
    if is_last:
        out, pre = res
        return jnp.transpose(out, (0, 3, 1, 2)), jnp.transpose(pre, (0, 3, 1, 2))
    return jnp.transpose(res, (0, 3, 1, 2))


def init_basic_block_params(key, in_planes, planes, stride):
    keys = jax.random.split(key, 8)

    def conv_w(k, o, i, kh, kw):
        bound = 1.0 / np.sqrt(i * kh * kw)
        return jax.random.uniform(k, (o, i, kh, kw), jnp.float32, -bound, bound)

    def bn_p(k, c):
        k1, k2, k3, k4 = jax.random.split(k, 4)
        gamma = 1.0 + 0.1 * jax.random.normal(k1, (c,), jnp.float32)
        beta = 0.1 * jax.random.normal(k2, (c,), jnp.float32)
        mean = 0.1 * jax.random.normal(k3, (c,), jnp.float32)
        var = 0.5 + jax.random.uniform(k4, (c,), jnp.float32)
        return (gamma, beta, mean, var)

    params = {
        "w1": conv_w(keys[0], planes, in_planes, 3, 3),
        "bn1": bn_p(keys[1], planes),
        "w2": conv_w(keys[2], planes, planes, 3, 3),
        "bn2": bn_p(keys[3], planes),
    }
    if stride != 1 or in_planes != planes:
        params["ws"] = conv_w(keys[4], planes, in_planes, 1, 1)
        params["bns"] = bn_p(keys[5], planes)
    return params


def _ref_basic_block(x, params, *, stride, is_last=False):
    """Pure-JAX f32 reference (eval-mode BN), NCHW, for correctness checking."""
    hi = jax.lax.Precision.HIGHEST

    def conv(x, w, s, pad):
        return jax.lax.conv_general_dilated(
            x, w, window_strides=(s, s), padding=pad,
            dimension_numbers=("NCHW", "OIHW", "NCHW"), precision=hi)

    def bn(x, p, eps=1e-5):
        gamma, beta, mean, var = p
        rs = lambda a: a.reshape(1, -1, 1, 1)
        return (x - rs(mean)) / jnp.sqrt(rs(var) + eps) * rs(gamma) + rs(beta)

    out = jax.nn.relu(bn(conv(x, params["w1"], stride, ((1, 1), (1, 1))), params["bn1"]))
    out = bn(conv(out, params["w2"], 1, ((1, 1), (1, 1))), params["bn2"])
    if "ws" in params:
        sc = bn(conv(x, params["ws"], stride, ((0, 0), (0, 0))), params["bns"])
    else:
        sc = x
    preact = out + sc
    out = jax.nn.relu(preact)
    return (out, preact) if is_last else out


if __name__ == "__main__":
    key = jax.random.PRNGKey(0)
    kx1, kx2, kp1, kp2 = jax.random.split(key, 4)

    # Tolerances vs. the f32 reference: the kernel feeds the MXU bf16 operands
    # AND (new) DMAs the activations -- including the identity residual -- in
    # bf16, so a bit more slack than the pure-f32 path is needed.
    TOL = dict(atol=4e-2, rtol=4e-2)

    # Config 1: projection shortcut (stride=2, 4 -> 8 channels), is_last=True.
    x1 = jax.random.normal(kx1, (2, 4, 16, 16), jnp.float32)
    p1 = init_basic_block_params(kp1, 4, 8, stride=2)
    out1, pre1 = basic_block_forward(x1, p1, stride=2, is_last=True)
    out1, pre1 = jax.block_until_ready((out1, pre1))
    ref_out1, ref_pre1 = _ref_basic_block(x1, p1, stride=2, is_last=True)
    np.testing.assert_allclose(np.asarray(out1), np.asarray(ref_out1), **TOL)
    np.testing.assert_allclose(np.asarray(pre1), np.asarray(ref_pre1), **TOL)

    # Config 2: identity shortcut (stride=1, 8 -> 8 channels), is_last=False.
    x2 = jax.random.normal(kx2, (2, 8, 16, 16), jnp.float32)
    p2 = init_basic_block_params(kp2, 8, 8, stride=1)
    out2 = jax.block_until_ready(basic_block_forward(x2, p2, stride=1, is_last=False))
    ref_out2 = _ref_basic_block(x2, p2, stride=1, is_last=False)
    np.testing.assert_allclose(np.asarray(out2), np.asarray(ref_out2), **TOL)

    print("KERNEL_OK")
</pallas_src>

<mosaic_0001>
module attributes {stable_mosaic.version = 11 : i64} {
  func.func @_basic_block_kernel(%arg0: i32, %arg1: memref<2x36x9x4xbf16, #tpu.memory_space<vmem>>, %arg2: memref<36x8xbf16, #tpu.memory_space<vmem>>, %arg3: memref<1x8xf32, #tpu.memory_space<vmem>>, %arg4: memref<1x8xf32, #tpu.memory_space<vmem>>, %arg5: memref<72x8xbf16, #tpu.memory_space<vmem>>, %arg6: memref<1x8xf32, #tpu.memory_space<vmem>>, %arg7: memref<1x8xf32, #tpu.memory_space<vmem>>, %arg8: memref<4x8xbf16, #tpu.memory_space<vmem>>, %arg9: memref<1x8xf32, #tpu.memory_space<vmem>>, %arg10: memref<1x8xf32, #tpu.memory_space<vmem>>, %arg11: memref<2x8x64xf32, #tpu.memory_space<vmem>>, %arg12: memref<2x8x64xf32, #tpu.memory_space<vmem>>, %arg13: memref<2x10x10x8xbf16, #tpu.memory_space<vmem>>, %arg14: memref<128x36xbf16, #tpu.memory_space<vmem>>, %arg15: memref<128x72xbf16, #tpu.memory_space<vmem>>) attributes {dimension_semantics = [#tpu.dimension_semantics<parallel>], iteration_bounds = array<i64: 1>, scalar_prefetch = 0 : i64, scratch_operands = 3 : i64, tpu.core_type = #tpu.core_type<tc>, window_params = [{transform_indices = @transform_0, window_bounds = array<i64: 2, 36, 9, 4>}, {pipeline_mode = #tpu.pipeline_mode<synchronous>, transform_indices = @transform_1, window_bounds = array<i64: 36, 8>}, {pipeline_mode = #tpu.pipeline_mode<synchronous>, transform_indices = @transform_2, window_bounds = array<i64: 1, 8>}, {pipeline_mode = #tpu.pipeline_mode<synchronous>, transform_indices = @transform_3, window_bounds = array<i64: 1, 8>}, {pipeline_mode = #tpu.pipeline_mode<synchronous>, transform_indices = @transform_4, window_bounds = array<i64: 72, 8>}, {pipeline_mode = #tpu.pipeline_mode<synchronous>, transform_indices = @transform_5, window_bounds = array<i64: 1, 8>}, {pipeline_mode = #tpu.pipeline_mode<synchronous>, transform_indices = @transform_6, window_bounds = array<i64: 1, 8>}, {pipeline_mode = #tpu.pipeline_mode<synchronous>, transform_indices = @transform_7, window_bounds = array<i64: 4, 8>}, {pipeline_mode = #tpu.pipeline_mode<synchronous>, transform_indices = @transform_8, window_bounds = array<i64: 1, 8>}, {pipeline_mode = #tpu.pipeline_mode<synchronous>, transform_indices = @transform_9, window_bounds = array<i64: 1, 8>}, {transform_indices = @transform_10, window_bounds = array<i64: 2, 8, 64>}, {transform_indices = @transform_11, window_bounds = array<i64: 2, 8, 64>}]} {
    %c0 = arith.constant 0 : index
    %c0_0 = arith.constant 0 : index
    %c0_1 = arith.constant 0 : index
    %c0_2 = arith.constant 0 : index
    %0 = vector.load %arg1[%c0, %c0_0, %c0_1, %c0_2] : memref<2x36x9x4xbf16, #tpu.memory_space<vmem>>, vector<1x8x8x4xbf16>
    %1 = vector.shape_cast %0 : vector<1x8x8x4xbf16> to vector<64x4xbf16>
    %c0_3 = arith.constant 0 : index
    %c0_4 = arith.constant 0 : index
    %2 = vector.load %arg14[%c0_3, %c0_4] : memref<128x36xbf16, #tpu.memory_space<vmem>>, vector<64x4xbf16>
    tpu.vector_store %arg14[%c0_3, %c0_4], %1 {strides = array<i32>} : memref<128x36xbf16, #tpu.memory_space<vmem>>, vector<64x4xbf16>,
    %c0_5 = arith.constant 0 : index
    %c9 = arith.constant 9 : index
    %c0_6 = arith.constant 0 : index
    %c0_7 = arith.constant 0 : index
    %3 = vector.load %arg1[%c0_5, %c9, %c0_6, %c0_7] : memref<2x36x9x4xbf16, #tpu.memory_space<vmem>>, vector<1x8x8x4xbf16>
    %4 = vector.shape_cast %3 : vector<1x8x8x4xbf16> to vector<64x4xbf16>
    %c0_8 = arith.constant 0 : index
    %c4 = arith.constant 4 : index
    %5 = vector.load %arg14[%c0_8, %c4] : memref<128x36xbf16, #tpu.memory_space<vmem>>, vector<64x4xbf16>
    tpu.vector_store %arg14[%c0_8, %c4], %4 {strides = array<i32>} : memref<128x36xbf16, #tpu.memory_space<vmem>>, vector<64x4xbf16>,
    %c0_9 = arith.constant 0 : index
    %c0_10 = arith.constant 0 : index
    %c1 = arith.constant 1 : index
    %c0_11 = arith.constant 0 : index
    %6 = vector.load %arg1[%c0_9, %c0_10, %c1, %c0_11] : memref<2x36x9x4xbf16, #tpu.memory_space<vmem>>, vector<1x8x8x4xbf16>
    %7 = vector.shape_cast %6 : vector<1x8x8x4xbf16> to vector<64x4xbf16>
    %c0_12 = arith.constant 0 : index
    %c8 = arith.constant 8 : index
    %8 = vector.load %arg14[%c0_12, %c8] : memref<128x36xbf16, #tpu.memory_space<vmem>>, vector<64x4xbf16>
    tpu.vector_store %arg14[%c0_12, %c8], %7 {strides = array<i32>} : memref<128x36xbf16, #tpu.memory_space<vmem>>, vector<64x4xbf16>,
    %c0_13 = arith.constant 0 : index
    %c18 = arith.constant 18 : index
    %c0_14 = arith.constant 0 : index
    %c0_15 = arith.constant 0 : index
    %9 = vector.load %arg1[%c0_13, %c18, %c0_14, %c0_15] : memref<2x36x9x4xbf16, #tpu.memory_space<vmem>>, vector<1x8x8x4xbf16>
    %10 = vector.shape_cast %9 : vector<1x8x8x4xbf16> to vector<64x4xbf16>
    %c0_16 = arith.constant 0 : index
    %c12 = arith.constant 12 : index
    %11 = vector.load %arg14[%c0_16, %c12] : memref<128x36xbf16, #tpu.memory_space<vmem>>, vector<64x4xbf16>
    tpu.vector_store %arg14[%c0_16, %c12], %10 {strides = array<i32>} : memref<128x36xbf16, #tpu.memory_space<vmem>>, vector<64x4xbf16>,
    %c0_17 = arith.constant 0 : index
    %c27 = arith.constant 27 : index
    %c0_18 = arith.constant 0 : index
    %c0_19 = arith.constant 0 : index
    %12 = vector.load %arg1[%c0_17, %c27, %c0_18, %c0_19] : memref<2x36x9x4xbf16, #tpu.memory_space<vmem>>, vector<1x8x8x4xbf16>
    %13 = vector.shape_cast %12 : vector<1x8x8x4xbf16> to vector<64x4xbf16>
    %c0_20 = arith.constant 0 : index
    %c16 = arith.constant 16 : index
    %14 = vector.load %arg14[%c0_20, %c16] : memref<128x36xbf16, #tpu.memory_space<vmem>>, vector<64x4xbf16>
    tpu.vector_store %arg14[%c0_20, %c16], %13 {strides = array<i32>} : memref<128x36xbf16, #tpu.memory_space<vmem>>, vector<64x4xbf16>,
    %c0_21 = arith.constant 0 : index
    %c18_22 = arith.constant 18 : index
    %c1_23 = arith.constant 1 : index
    %c0_24 = arith.constant 0 : index
    %15 = vector.load %arg1[%c0_21, %c18_22, %c1_23, %c0_24] : memref<2x36x9x4xbf16, #tpu.memory_space<vmem>>, vector<1x8x8x4xbf16>
    %16 = vector.shape_cast %15 : vector<1x8x8x4xbf16> to vector<64x4xbf16>
    %c0_25 = arith.constant 0 : index
    %c20 = arith.constant 20 : index
    %17 = vector.load %arg14[%c0_25, %c20] : memref<128x36xbf16, #tpu.memory_space<vmem>>, vector<64x4xbf16>
    tpu.vector_store %arg14[%c0_25, %c20], %16 {strides = array<i32>} : memref<128x36xbf16, #tpu.memory_space<vmem>>, vector<64x4xbf16>,
    %c0_26 = arith.constant 0 : index
    %c1_27 = arith.constant 1 : index
    %c0_28 = arith.constant 0 : index
    %c0_29 = arith.constant 0 : index
    %18 = vector.load %arg1[%c0_26, %c1_27, %c0_28, %c0_29] : memref<2x36x9x4xbf16, #tpu.memory_space<vmem>>, vector<1x8x8x4xbf16>
    %19 = vector.shape_cast %18 : vector<1x8x8x4xbf16> to vector<64x4xbf16>
    %c0_30 = arith.constant 0 : index
    %c24 = arith.constant 24 : index
    %20 = vector.load %arg14[%c0_30, %c24] : memref<128x36xbf16, #tpu.memory_space<vmem>>, vector<64x4xbf16>
    tpu.vector_store %arg14[%c0_30, %c24], %19 {strides = array<i32>} : memref<128x36xbf16, #tpu.memory_space<vmem>>, vector<64x4xbf16>,
    %c0_31 = arith.constant 0 : index
    %c10 = arith.constant 10 : index
    %c0_32 = arith.constant 0 : index
    %c0_33 = arith.constant 0 : index
    %21 = vector.load %arg1[%c0_31, %c10, %c0_32, %c0_33] : memref<2x36x9x4xbf16, #tpu.memory_space<vmem>>, vector<1x8x8x4xbf16>
    %22 = vector.shape_cast %21 : vector<1x8x8x4xbf16> to vector<64x4xbf16>
    %c0_34 = arith.constant 0 : index
    %c28 = arith.constant 28 : index
    %23 = vector.load %arg14[%c0_34, %c28] : memref<128x36xbf16, #tpu.memory_space<vmem>>, vector<64x4xbf16>
    tpu.vector_store %arg14[%c0_34, %c28], %22 {strides = array<i32>} : memref<128x36xbf16, #tpu.memory_space<vmem>>, vector<64x4xbf16>,
    %c0_35 = arith.constant 0 : index
    %c1_36 = arith.constant 1 : index
    %c1_37 = arith.constant 1 : index
    %c0_38 = arith.constant 0 : index
    %24 = vector.load %arg1[%c0_35, %c1_36, %c1_37, %c0_38] : memref<2x36x9x4xbf16, #tpu.memory_space<vmem>>, vector<1x8x8x4xbf16>
    %25 = vector.shape_cast %24 : vector<1x8x8x4xbf16> to vector<64x4xbf16>
    %c0_39 = arith.constant 0 : index
    %c32 = arith.constant 32 : index
    %26 = vector.load %arg14[%c0_39, %c32] : memref<128x36xbf16, #tpu.memory_space<vmem>>, vector<64x4xbf16>
    tpu.vector_store %arg14[%c0_39, %c32], %25 {strides = array<i32>} : memref<128x36xbf16, #tpu.memory_space<vmem>>, vector<64x4xbf16>,
    %c1_40 = arith.constant 1 : index
    %c0_41 = arith.constant 0 : index
    %c0_42 = arith.constant 0 : index
    %c0_43 = arith.constant 0 : index
    %27 = vector.load %arg1[%c1_40, %c0_41, %c0_42, %c0_43] : memref<2x36x9x4xbf16, #tpu.memory_space<vmem>>, vector<1x8x8x4xbf16>
    %28 = vector.shape_cast %27 : vector<1x8x8x4xbf16> to vector<64x4xbf16>
    %c64 = arith.constant 64 : index
    %c0_44 = arith.constant 0 : index
    %29 = vector.load %arg14[%c64, %c0_44] : memref<128x36xbf16, #tpu.memory_space<vmem>>, vector<64x4xbf16>
    tpu.vector_store %arg14[%c64, %c0_44], %28 {strides = array<i32>} : memref<128x36xbf16, #tpu.memory_space<vmem>>, vector<64x4xbf16>,
    %c1_45 = arith.constant 1 : index
    %c9_46 = arith.constant 9 : index
    %c0_47 = arith.constant 0 : index
    %c0_48 = arith.constant 0 : index
    %30 = vector.load %arg1[%c1_45, %c9_46, %c0_47, %c0_48] : memref<2x36x9x4xbf16, #tpu.memory_space<vmem>>, vector<1x8x8x4xbf16>
    %31 = vector.shape_cast %30 : vector<1x8x8x4xbf16> to vector<64x4xbf16>
    %c64_49 = arith.constant 64 : index
    %c4_50 = arith.constant 4 : index
    %32 = vector.load %arg14[%c64_49, %c4_50] : memref<128x36xbf16, #tpu.memory_space<vmem>>, vector<64x4xbf16>
    tpu.vector_store %arg14[%c64_49, %c4_50], %31 {strides = array<i32>} : memref<128x36xbf16, #tpu.memory_space<vmem>>, vector<64x4xbf16>,
    %c1_51 = arith.constant 1 : index
    %c0_52 = arith.constant 0 : index
    %c1_53 = arith.constant 1 : index
    %c0_54 = arith.constant 0 : index
    %33 = vector.load %arg1[%c1_51, %c0_52, %c1_53, %c0_54] : memref<2x36x9x4xbf16, #tpu.memory_space<vmem>>, vector<1x8x8x4xbf16>
    %34 = vector.shape_cast %33 : vector<1x8x8x4xbf16> to vector<64x4xbf16>
    %c64_55 = arith.constant 64 : index
    %c8_56 = arith.constant 8 : index
    %35 = vector.load %arg14[%c64_55, %c8_56] : memref<128x36xbf16, #tpu.memory_space<vmem>>, vector<64x4xbf16>
    tpu.vector_store %arg14[%c64_55, %c8_56], %34 {strides = array<i32>} : memref<128x36xbf16, #tpu.memory_space<vmem>>, vector<64x4xbf16>,
    %c1_57 = arith.constant 1 : index
    %c18_58 = arith.constant 18 : index
    %c0_59 = arith.constant 0 : index
    %c0_60 = arith.constant 0 : index
    %36 = vector.load %arg1[%c1_57, %c18_58, %c0_59, %c0_60] : memref<2x36x9x4xbf16, #tpu.memory_space<vmem>>, vector<1x8x8x4xbf16>
    %37 = vector.shape_cast %36 : vector<1x8x8x4xbf16> to vector<64x4xbf16>
    %c64_61 = arith.constant 64 : index
    %c12_62 = arith.constant 12 : index
    %38 = vector.load %arg14[%c64_61, %c12_62] : memref<128x36xbf16, #tpu.memory_space<vmem>>, vector<64x4xbf16>
    tpu.vector_store %arg14[%c64_61, %c12_62], %37 {strides = array<i32>} : memref<128x36xbf16, #tpu.memory_space<vmem>>, vector<64x4xbf16>,
    %c1_63 = arith.constant 1 : index
    %c27_64 = arith.constant 27 : index
    %c0_65 = arith.constant 0 : index
    %c0_66 = arith.constant 0 : index
    %39 = vector.load %arg1[%c1_63, %c27_64, %c0_65, %c0_66] : memref<2x36x9x4xbf16, #tpu.memory_space<vmem>>, vector<1x8x8x4xbf16>
    %40 = vector.shape_cast %39 : vector<1x8x8x4xbf16> to vector<64x4xbf16>
    %c64_67 = arith.constant 64 : index
    %c16_68 = arith.constant 16 : index
    %41 = vector.load %arg14[%c64_67, %c16_68] : memref<128x36xbf16, #tpu.memory_space<vmem>>, vector<64x4xbf16>
    tpu.vector_store %arg14[%c64_67, %c16_68], %40 {strides = array<i32>} : memref<128x36xbf16, #tpu.memory_space<vmem>>, vector<64x4xbf16>,
    %c1_69 = arith.constant 1 : index
    %c18_70 = arith.constant 18 : index
    %c1_71 = arith.constant 1 : index
    %c0_72 = arith.constant 0 : index
    %42 = vector.load %arg1[%c1_69, %c18_70, %c1_71, %c0_72] : memref<2x36x9x4xbf16, #tpu.memory_space<vmem>>, vector<1x8x8x4xbf16>
    %43 = vector.shape_cast %42 : vector<1x8x8x4xbf16> to vector<64x4xbf16>
    %c64_73 = arith.constant 64 : index
    %c20_74 = arith.constant 20 : index
    %44 = vector.load %arg14[%c64_73, %c20_74] : memref<128x36xbf16, #tpu.memory_space<vmem>>, vector<64x4xbf16>
    tpu.vector_store %arg14[%c64_73, %c20_74], %43 {strides = array<i32>} : memref<128x36xbf16, #tpu.memory_space<vmem>>, vector<64x4xbf16>,
    %c1_75 = arith.constant 1 : index
    %c1_76 = arith.constant 1 : index
    %c0_77 = arith.constant 0 : index
    %c0_78 = arith.constant 0 : index
    %45 = vector.load %arg1[%c1_75, %c1_76, %c0_77, %c0_78] : memref<2x36x9x4xbf16, #tpu.memory_space<vmem>>, vector<1x8x8x4xbf16>
    %46 = vector.shape_cast %45 : vector<1x8x8x4xbf16> to vector<64x4xbf16>
    %c64_79 = arith.constant 64 : index
    %c24_80 = arith.constant 24 : index
    %47 = vector.load %arg14[%c64_79, %c24_80] : memref<128x36xbf16, #tpu.memory_space<vmem>>, vector<64x4xbf16>
    tpu.vector_store %arg14[%c64_79, %c24_80], %46 {strides = array<i32>} : memref<128x36xbf16, #tpu.memory_space<vmem>>, vector<64x4xbf16>,
    %c1_81 = arith.constant 1 : index
    %c10_82 = arith.constant 10 : index
    %c0_83 = arith.constant 0 : index
    %c0_84 = arith.constant 0 : index
    %48 = vector.load %arg1[%c1_81, %c10_82, %c0_83, %c0_84] : memref<2x36x9x4xbf16, #tpu.memory_space<vmem>>, vector<1x8x8x4xbf16>
    %49 = vector.shape_cast %48 : vector<1x8x8x4xbf16> to vector<64x4xbf16>
    %c64_85 = arith.constant 64 : index
    %c28_86 = arith.constant 28 : index
    %50 = vector.load %arg14[%c64_85, %c28_86] : memref<128x36xbf16, #tpu.memory_space<vmem>>, vector<64x4xbf16>
    tpu.vector_store %arg14[%c64_85, %c28_86], %49 {strides = array<i32>} : memref<128x36xbf16, #tpu.memory_space<vmem>>, vector<64x4xbf16>,
    %c1_87 = arith.constant 1 : index
    %c1_88 = arith.constant 1 : index
    %c1_89 = arith.constant 1 : index
    %c0_90 = arith.constant 0 : index
    %51 = vector.load %arg1[%c1_87, %c1_88, %c1_89, %c0_90] : memref<2x36x9x4xbf16, #tpu.memory_space<vmem>>, vector<1x8x8x4xbf16>
    %52 = vector.shape_cast %51 : vector<1x8x8x4xbf16> to vector<64x4xbf16>
    %c64_91 = arith.constant 64 : index
    %c32_92 = arith.constant 32 : index
    %53 = vector.load %arg14[%c64_91, %c32_92] : memref<128x36xbf16, #tpu.memory_space<vmem>>, vector<64x4xbf16>
    tpu.vector_store %arg14[%c64_91, %c32_92], %52 {strides = array<i32>} : memref<128x36xbf16, #tpu.memory_space<vmem>>, vector<64x4xbf16>,
    %c0_93 = arith.constant 0 : index
    %c27_94 = arith.constant 27 : index
    %c0_95 = arith.constant 0 : index
    %c0_96 = arith.constant 0 : index
    %54 = vector.load %arg1[%c0_93, %c27_94, %c0_95, %c0_96] : memref<2x36x9x4xbf16, #tpu.memory_space<vmem>>, vector<2x8x8x4xbf16>
    %55 = vector.shape_cast %54 : vector<2x8x8x4xbf16> to vector<128x4xbf16>
    %c0_97 = arith.constant 0 : index
    %c0_98 = arith.constant 0 : index
    %56 = vector.load %arg14[%c0_97, %c0_98] : memref<128x36xbf16, #tpu.memory_space<vmem>>, vector<128x36xbf16>
    %c0_99 = arith.constant 0 : index
    %c0_100 = arith.constant 0 : index
    %57 = vector.load %arg2[%c0_99, %c0_100] : memref<36x8xbf16, #tpu.memory_space<vmem>>, vector<36x8xbf16>
    %cst = arith.constant dense<0.000000e+00> : vector<128x8xf32>
    %58 = tpu.matmul %56, %57, %cst {dimension_numbers = #tpu.dot_dimension_numbers<[1], [0], [0], [1], [0, 0, 1, 1], [], []>} : vector<128x36xbf16>, vector<36x8xbf16>, vector<128x8xf32> -> vector<128x8xf32>
    %c0_101 = arith.constant 0 : index
    %c0_102 = arith.constant 0 : index
    %59 = vector.load %arg3[%c0_101, %c0_102] : memref<1x8xf32, #tpu.memory_space<vmem>>, vector<1x8xf32>
    %60 = vector.broadcast %59 : vector<1x8xf32> to vector<128x8xf32>
    %61 = arith.mulf %58, %60 : vector<128x8xf32>
    %c0_103 = arith.constant 0 : index
    %c0_104 = arith.constant 0 : index
    %62 = vector.load %arg4[%c0_103, %c0_104] : memref<1x8xf32, #tpu.memory_space<vmem>>, vector<1x8xf32>
    %63 = vector.broadcast %62 : vector<1x8xf32> to vector<128x8xf32>
    %64 = arith.addf %61, %63 : vector<128x8xf32>
    %cst_105 = arith.constant 0.000000e+00 : f32
    %65 = vector.broadcast %cst_105 : f32 to vector<128x8xf32>
    %66 = arith.maximumf %64, %65 : vector<128x8xf32>
    %cst_106 = arith.constant 0.000000e+00 : bf16
    %67 = vector.broadcast %cst_106 : bf16 to vector<2x1x10x8xbf16>
    %c0_107 = arith.constant 0 : index
    %c0_108 = arith.constant 0 : index
    %c0_109 = arith.constant 0 : index
    %c0_110 = arith.constant 0 : index
    %68 = vector.load %arg13[%c0_107, %c0_108, %c0_109, %c0_110] : memref<2x10x10x8xbf16, #tpu.memory_space<vmem>>, vector<2x1x10x8xbf16>
    tpu.vector_store %arg13[%c0_107, %c0_108, %c0_109, %c0_110], %67 {strides = array<i32>} : memref<2x10x10x8xbf16, #tpu.memory_space<vmem>>, vector<2x1x10x8xbf16>,
    %c0_111 = arith.constant 0 : index
    %c9_112 = arith.constant 9 : index
    %c0_113 = arith.constant 0 : index
    %c0_114 = arith.constant 0 : index
    %69 = vector.load %arg13[%c0_111, %c9_112, %c0_113, %c0_114] : memref<2x10x10x8xbf16, #tpu.memory_space<vmem>>, vector<2x1x10x8xbf16>
    tpu.vector_store %arg13[%c0_111, %c9_112, %c0_113, %c0_114], %67 {strides = array<i32>} : memref<2x10x10x8xbf16, #tpu.memory_space<vmem>>, vector<2x1x10x8xbf16>,
    %cst_115 = arith.constant 0.000000e+00 : bf16
    %70 = vector.broadcast %cst_115 : bf16 to vector<2x10x1x8xbf16>
    %c0_116 = arith.constant 0 : index
    %c0_117 = arith.constant 0 : index
    %c0_118 = arith.constant 0 : index
    %c0_119 = arith.constant 0 : index
    %71 = vector.load %arg13[%c0_116, %c0_117, %c0_118, %c0_119] : memref<2x10x10x8xbf16, #tpu.memory_space<vmem>>, vector<2x10x1x8xbf16>
    tpu.vector_store %arg13[%c0_116, %c0_117, %c0_118, %c0_119], %70 {strides = array<i32>} : memref<2x10x10x8xbf16, #tpu.memory_space<vmem>>, vector<2x10x1x8xbf16>,
    %c0_120 = arith.constant 0 : index
    %c0_121 = arith.constant 0 : index
    %c9_122 = arith.constant 9 : index
    %c0_123 = arith.constant 0 : index
    %72 = vector.load %arg13[%c0_120, %c0_121, %c9_122, %c0_123] : memref<2x10x10x8xbf16, #tpu.memory_space<vmem>>, vector<2x10x1x8xbf16>
    tpu.vector_store %arg13[%c0_120, %c0_121, %c9_122, %c0_123], %70 {strides = array<i32>} : memref<2x10x10x8xbf16, #tpu.memory_space<vmem>>, vector<2x10x1x8xbf16>,
    %73 = vector.shape_cast %66 : vector<128x8xf32> to vector<2x8x8x8xf32>
    %74 = arith.truncf %73 : vector<2x8x8x8xf32> to vector<2x8x8x8xbf16>
    %c0_124 = arith.constant 0 : index
    %c1_125 = arith.constant 1 : index
    %c1_126 = arith.constant 1 : index
    %c0_127 = arith.constant 0 : index
    %75 = vector.load %arg13[%c0_124, %c1_125, %c1_126, %c0_127] : memref<2x10x10x8xbf16, #tpu.memory_space<vmem>>, vector<2x8x8x8xbf16>
    tpu.vector_store %arg13[%c0_124, %c1_125, %c1_126, %c0_127], %74 {strides = array<i32>} : memref<2x10x10x8xbf16, #tpu.memory_space<vmem>>, vector<2x8x8x8xbf16>,
    %c0_128 = arith.constant 0 : index
    %c0_129 = arith.constant 0 : index
    %c0_130 = arith.constant 0 : index
    %c0_131 = arith.constant 0 : index
    %76 = vector.load %arg13[%c0_128, %c0_129, %c0_130, %c0_131] : memref<2x10x10x8xbf16, #tpu.memory_space<vmem>>, vector<1x8x8x8xbf16>
    %77 = vector.shape_cast %76 : vector<1x8x8x8xbf16> to vector<64x8xbf16>
    %c0_132 = arith.constant 0 : index
    %c0_133 = arith.constant 0 : index
    %78 = vector.load %arg15[%c0_132, %c0_133] : memref<128x72xbf16, #tpu.memory_space<vmem>>, vector<64x8xbf16>
    tpu.vector_store %arg15[%c0_132, %c0_133], %77 {strides = array<i32>} : memref<128x72xbf16, #tpu.memory_space<vmem>>, vector<64x8xbf16>,
    %c0_134 = arith.constant 0 : index
    %c0_135 = arith.constant 0 : index
    %c1_136 = arith.constant 1 : index
    %c0_137 = arith.constant 0 : index
    %79 = vector.load %arg13[%c0_134, %c0_135, %c1_136, %c0_137] : memref<2x10x10x8xbf16, #tpu.memory_space<vmem>>, vector<1x8x8x8xbf16>
    %80 = vector.shape_cast %79 : vector<1x8x8x8xbf16> to vector<64x8xbf16>
    %c0_138 = arith.constant 0 : index
    %c8_139 = arith.constant 8 : index
    %81 = vector.load %arg15[%c0_138, %c8_139] : memref<128x72xbf16, #tpu.memory_space<vmem>>, vector<64x8xbf16>
    tpu.vector_store %arg15[%c0_138, %c8_139], %80 {strides = array<i32>} : memref<128x72xbf16, #tpu.memory_space<vmem>>, vector<64x8xbf16>,
    %c0_140 = arith.constant 0 : index
    %c0_141 = arith.constant 0 : index
    %c2 = arith.constant 2 : index
    %c0_142 = arith.constant 0 : index
    %82 = vector.load %arg13[%c0_140, %c0_141, %c2, %c0_142] : memref<2x10x10x8xbf16, #tpu.memory_space<vmem>>, vector<1x8x8x8xbf16>
    %83 = vector.shape_cast %82 : vector<1x8x8x8xbf16> to vector<64x8xbf16>
    %c0_143 = arith.constant 0 : index
    %c16_144 = arith.constant 16 : index
    %84 = vector.load %arg15[%c0_143, %c16_144] : memref<128x72xbf16, #tpu.memory_space<vmem>>, vector<64x8xbf16>
    tpu.vector_store %arg15[%c0_143, %c16_144], %83 {strides = array<i32>} : memref<128x72xbf16, #tpu.memory_space<vmem>>, vector<64x8xbf16>,
    %c0_145 = arith.constant 0 : index
    %c1_146 = arith.constant 1 : index
    %c0_147 = arith.constant 0 : index
    %c0_148 = arith.constant 0 : index
    %85 = vector.load %arg13[%c0_145, %c1_146, %c0_147, %c0_148] : memref<2x10x10x8xbf16, #tpu.memory_space<vmem>>, vector<1x8x8x8xbf16>
    %86 = vector.shape_cast %85 : vector<1x8x8x8xbf16> to vector<64x8xbf16>
    %c0_149 = arith.constant 0 : index
    %c24_150 = arith.constant 24 : index
    %87 = vector.load %arg15[%c0_149, %c24_150] : memref<128x72xbf16, #tpu.memory_space<vmem>>, vector<64x8xbf16>
    tpu.vector_store %arg15[%c0_149, %c24_150], %86 {strides = array<i32>} : memref<128x72xbf16, #tpu.memory_space<vmem>>, vector<64x8xbf16>,
    %c0_151 = arith.constant 0 : index
    %c1_152 = arith.constant 1 : index
    %c1_153 = arith.constant 1 : index
    %c0_154 = arith.constant 0 : index
    %88 = vector.load %arg13[%c0_151, %c1_152, %c1_153, %c0_154] : memref<2x10x10x8xbf16, #tpu.memory_space<vmem>>, vector<1x8x8x8xbf16>
    %89 = vector.shape_cast %88 : vector<1x8x8x8xbf16> to vector<64x8xbf16>
    %c0_155 = arith.constant 0 : index
    %c32_156 = arith.constant 32 : index
    %90 = vector.load %arg15[%c0_155, %c32_156] : memref<128x72xbf16, #tpu.memory_space<vmem>>, vector<64x8xbf16>
    tpu.vector_store %arg15[%c0_155, %c32_156], %89 {strides = array<i32>} : memref<128x72xbf16, #tpu.memory_space<vmem>>, vector<64x8xbf16>,
    %c0_157 = arith.constant 0 : index
    %c1_158 = arith.constant 1 : index
    %c2_159 = arith.constant 2 : index
    %c0_160 = arith.constant 0 : index
    %91 = vector.load %arg13[%c0_157, %c1_158, %c2_159, %c0_160] : memref<2x10x10x8xbf16, #tpu.memory_space<vmem>>, vector<1x8x8x8xbf16>
    %92 = vector.shape_cast %91 : vector<1x8x8x8xbf16> to vector<64x8xbf16>
    %c0_161 = arith.constant 0 : index
    %c40 = arith.constant 40 : index
    %93 = vector.load %arg15[%c0_161, %c40] : memref<128x72xbf16, #tpu.memory_space<vmem>>, vector<64x8xbf16>
    tpu.vector_store %arg15[%c0_161, %c40], %92 {strides = array<i32>} : memref<128x72xbf16, #tpu.memory_space<vmem>>, vector<64x8xbf16>,
    %c0_162 = arith.constant 0 : index
    %c2_163 = arith.constant 2 : index
    %c0_164 = arith.constant 0 : index
    %c0_165 = arith.constant 0 : index
    %94 = vector.load %arg13[%c0_162, %c2_163, %c0_164, %c0_165] : memref<2x10x10x8xbf16, #tpu.memory_space<vmem>>, vector<1x8x8x8xbf16>
    %95 = vector.shape_cast %94 : vector<1x8x8x8xbf16> to vector<64x8xbf16>
    %c0_166 = arith.constant 0 : index
    %c48 = arith.constant 48 : index
    %96 = vector.load %arg15[%c0_166, %c48] : memref<128x72xbf16, #tpu.memory_space<vmem>>, vector<64x8xbf16>
    tpu.vector_store %arg15[%c0_166, %c48], %95 {strides = array<i32>} : memref<128x72xbf16, #tpu.memory_space<vmem>>, vector<64x8xbf16>,
    %c0_167 = arith.constant 0 : index
    %c2_168 = arith.constant 2 : index
    %c1_169 = arith.constant 1 : index
    %c0_170 = arith.constant 0 : index
    %97 = vector.load %arg13[%c0_167, %c2_168, %c1_169, %c0_170] : memref<2x10x10x8xbf16, #tpu.memory_space<vmem>>, vector<1x8x8x8xbf16>
    %98 = vector.shape_cast %97 : vector<1x8x8x8xbf16> to vector<64x8xbf16>
    %c0_171 = arith.constant 0 : index
    %c56 = arith.constant 56 : index
    %99 = vector.load %arg15[%c0_171, %c56] : memref<128x72xbf16, #tpu.memory_space<vmem>>, vector<64x8xbf16>
    tpu.vector_store %arg15[%c0_171, %c56], %98 {strides = array<i32>} : memref<128x72xbf16, #tpu.memory_space<vmem>>, vector<64x8xbf16>,
    %c0_172 = arith.constant 0 : index
    %c2_173 = arith.constant 2 : index
    %c2_174 = arith.constant 2 : index
    %c0_175 = arith.constant 0 : index
    %100 = vector.load %arg13[%c0_172, %c2_173, %c2_174, %c0_175] : memref<2x10x10x8xbf16, #tpu.memory_space<vmem>>, vector<1x8x8x8xbf16>
    %101 = vector.shape_cast %100 : vector<1x8x8x8xbf16> to vector<64x8xbf16>
    %c0_176 = arith.constant 0 : index
    %c64_177 = arith.constant 64 : index
    %102 = vector.load %arg15[%c0_176, %c64_177] : memref<128x72xbf16, #tpu.memory_space<vmem>>, vector<64x8xbf16>
    tpu.vector_store %arg15[%c0_176, %c64_177], %101 {strides = array<i32>} : memref<128x72xbf16, #tpu.memory_space<vmem>>, vector<64x8xbf16>,
    %c1_178 = arith.constant 1 : index
    %c0_179 = arith.constant 0 : index
    %c0_180 = arith.constant 0 : index
    %c0_181 = arith.constant 0 : index
    %103 = vector.load %arg13[%c1_178, %c0_179, %c0_180, %c0_181] : memref<2x10x10x8xbf16, #tpu.memory_space<vmem>>, vector<1x8x8x8xbf16>
    %104 = vector.shape_cast %103 : vector<1x8x8x8xbf16> to vector<64x8xbf16>
    %c64_182 = arith.constant 64 : index
    %c0_183 = arith.constant 0 : index
    %105 = vector.load %arg15[%c64_182, %c0_183] : memref<128x72xbf16, #tpu.memory_space<vmem>>, vector<64x8xbf16>
    tpu.vector_store %arg15[%c64_182, %c0_183], %104 {strides = array<i32>} : memref<128x72xbf16, #tpu.memory_space<vmem>>, vector<64x8xbf16>,
    %c1_184 = arith.constant 1 : index
    %c0_185 = arith.constant 0 : index
    %c1_186 = arith.constant 1 : index
    %c0_187 = arith.constant 0 : index
    %106 = vector.load %arg13[%c1_184, %c0_185, %c1_186, %c0_187] : memref<2x10x10x8xbf16, #tpu.memory_space<vmem>>, vector<1x8x8x8xbf16>
    %107 = vector.shape_cast %106 : vector<1x8x8x8xbf16> to vector<64x8xbf16>
    %c64_188 = arith.constant 64 : index
    %c8_189 = arith.constant 8 : index
    %108 = vector.load %arg15[%c64_188, %c8_189] : memref<128x72xbf16, #tpu.memory_space<vmem>>, vector<64x8xbf16>
    tpu.vector_store %arg15[%c64_188, %c8_189], %107 {strides = array<i32>} : memref<128x72xbf16, #tpu.memory_space<vmem>>, vector<64x8xbf16>,
    %c1_190 = arith.constant 1 : index
    %c0_191 = arith.constant 0 : index
    %c2_192 = arith.constant 2 : index
    %c0_193 = arith.constant 0 : index
    %109 = vector.load %arg13[%c1_190, %c0_191, %c2_192, %c0_193] : memref<2x10x10x8xbf16, #tpu.memory_space<vmem>>, vector<1x8x8x8xbf16>
    %110 = vector.shape_cast %109 : vector<1x8x8x8xbf16> to vector<64x8xbf16>
    %c64_194 = arith.constant 64 : index
    %c16_195 = arith.constant 16 : index
    %111 = vector.load %arg15[%c64_194, %c16_195] : memref<128x72xbf16, #tpu.memory_space<vmem>>, vector<64x8xbf16>
    tpu.vector_store %arg15[%c64_194, %c16_195], %110 {strides = array<i32>} : memref<128x72xbf16, #tpu.memory_space<vmem>>, vector<64x8xbf16>,
    %c1_196 = arith.constant 1 : index
    %c1_197 = arith.constant 1 : index
    %c0_198 = arith.constant 0 : index
    %c0_199 = arith.constant 0 : index
    %112 = vector.load %arg13[%c1_196, %c1_197, %c0_198, %c0_199] : memref<2x10x10x8xbf16, #tpu.memory_space<vmem>>, vector<1x8x8x8xbf16>
    %113 = vector.shape_cast %112 : vector<1x8x8x8xbf16> to vector<64x8xbf16>
    %c64_200 = arith.constant 64 : index
    %c24_201 = arith.constant 24 : index
    %114 = vector.load %arg15[%c64_200, %c24_201] : memref<128x72xbf16, #tpu.memory_space<vmem>>, vector<64x8xbf16>
    tpu.vector_store %arg15[%c64_200, %c24_201], %113 {strides = array<i32>} : memref<128x72xbf16, #tpu.memory_space<vmem>>, vector<64x8xbf16>,
    %c1_202 = arith.constant 1 : index
    %c1_203 = arith.constant 1 : index
    %c1_204 = arith.constant 1 : index
    %c0_205 = arith.constant 0 : index
    %115 = vector.load %arg13[%c1_202, %c1_203, %c1_204, %c0_205] : memref<2x10x10x8xbf16, #tpu.memory_space<vmem>>, vector<1x8x8x8xbf16>
    %116 = vector.shape_cast %115 : vector<1x8x8x8xbf16> to vector<64x8xbf16>
    %c64_206 = arith.constant 64 : index
    %c32_207 = arith.constant 32 : index
    %117 = vector.load %arg15[%c64_206, %c32_207] : memref<128x72xbf16, #tpu.memory_space<vmem>>, vector<64x8xbf16>
    tpu.vector_store %arg15[%c64_206, %c32_207], %116 {strides = array<i32>} : memref<128x72xbf16, #tpu.memory_space<vmem>>, vector<64x8xbf16>,
    %c1_208 = arith.constant 1 : index
    %c1_209 = arith.constant 1 : index
    %c2_210 = arith.constant 2 : index
    %c0_211 = arith.constant 0 : index
    %118 = vector.load %arg13[%c1_208, %c1_209, %c2_210, %c0_211] : memref<2x10x10x8xbf16, #tpu.memory_space<vmem>>, vector<1x8x8x8xbf16>
    %119 = vector.shape_cast %118 : vector<1x8x8x8xbf16> to vector<64x8xbf16>
    %c64_212 = arith.constant 64 : index
    %c40_213 = arith.constant 40 : index
    %120 = vector.load %arg15[%c64_212, %c40_213] : memref<128x72xbf16, #tpu.memory_space<vmem>>, vector<64x8xbf16>
    tpu.vector_store %arg15[%c64_212, %c40_213], %119 {strides = array<i32>} : memref<128x72xbf16, #tpu.memory_space<vmem>>, vector<64x8xbf16>,
    %c1_214 = arith.constant 1 : index
    %c2_215 = arith.constant 2 : index
    %c0_216 = arith.constant 0 : index
    %c0_217 = arith.constant 0 : index
    %121 = vector.load %arg13[%c1_214, %c2_215, %c0_216, %c0_217] : memref<2x10x10x8xbf16, #tpu.memory_space<vmem>>, vector<1x8x8x8xbf16>
    %122 = vector.shape_cast %121 : vector<1x8x8x8xbf16> to vector<64x8xbf16>
    %c64_218 = arith.constant 64 : index
    %c48_219 = arith.constant 48 : index
    %123 = vector.load %arg15[%c64_218, %c48_219] : memref<128x72xbf16, #tpu.memory_space<vmem>>, vector<64x8xbf16>
    tpu.vector_store %arg15[%c64_218, %c48_219], %122 {strides = array<i32>} : memref<128x72xbf16, #tpu.memory_space<vmem>>, vector<64x8xbf16>,
    %c1_220 = arith.constant 1 : index
    %c2_221 = arith.constant 2 : index
    %c1_222 = arith.constant 1 : index
    %c0_223 = arith.constant 0 : index
    %124 = vector.load %arg13[%c1_220, %c2_221, %c1_222, %c0_223] : memref<2x10x10x8xbf16, #tpu.memory_space<vmem>>, vector<1x8x8x8xbf16>
    %125 = vector.shape_cast %124 : vector<1x8x8x8xbf16> to vector<64x8xbf16>
    %c64_224 = arith.constant 64 : index
    %c56_225 = arith.constant 56 : index
    %126 = vector.load %arg15[%c64_224, %c56_225] : memref<128x72xbf16, #tpu.memory_space<vmem>>, vector<64x8xbf16>
    tpu.vector_store %arg15[%c64_224, %c56_225], %125 {strides = array<i32>} : memref<128x72xbf16, #tpu.memory_space<vmem>>, vector<64x8xbf16>,
    %c1_226 = arith.constant 1 : index
    %c2_227 = arith.constant 2 : index
    %c2_228 = arith.constant 2 : index
    %c0_229 = arith.constant 0 : index
    %127 = vector.load %arg13[%c1_226, %c2_227, %c2_228, %c0_229] : memref<2x10x10x8xbf16, #tpu.memory_space<vmem>>, vector<1x8x8x8xbf16>
    %128 = vector.shape_cast %127 : vector<1x8x8x8xbf16> to vector<64x8xbf16>
    %c64_230 = arith.constant 64 : index
    %c64_231 = arith.constant 64 : index
    %129 = vector.load %arg15[%c64_230, %c64_231] : memref<128x72xbf16, #tpu.memory_space<vmem>>, vector<64x8xbf16>
    tpu.vector_store %arg15[%c64_230, %c64_231], %128 {strides = array<i32>} : memref<128x72xbf16, #tpu.memory_space<vmem>>, vector<64x8xbf16>,
    %c0_232 = arith.constant 0 : index
    %c0_233 = arith.constant 0 : index
    %130 = vector.load %arg15[%c0_232, %c0_233] : memref<128x72xbf16, #tpu.memory_space<vmem>>, vector<128x72xbf16>
    %c0_234 = arith.constant 0 : index
    %c0_235 = arith.constant 0 : index
    %131 = vector.load %arg5[%c0_234, %c0_235] : memref<72x8xbf16, #tpu.memory_space<vmem>>, vector<72x8xbf16>
    %cst_236 = arith.constant dense<0.000000e+00> : vector<128x8xf32>
    %132 = tpu.matmul %130, %131, %cst_236 {dimension_numbers = #tpu.dot_dimension_numbers<[1], [0], [0], [1], [0, 0, 1, 1], [], []>} : vector<128x72xbf16>, vector<72x8xbf16>, vector<128x8xf32> -> vector<128x8xf32>
    %c0_237 = arith.constant 0 : index
    %c0_238 = arith.constant 0 : index
    %133 = vector.load %arg6[%c0_237, %c0_238] : memref<1x8xf32, #tpu.memory_space<vmem>>, vector<1x8xf32>
    %134 = vector.broadcast %133 : vector<1x8xf32> to vector<128x8xf32>
    %135 = arith.mulf %132, %134 : vector<128x8xf32>
    %c0_239 = arith.constant 0 : index
    %c0_240 = arith.constant 0 : index
    %136 = vector.load %arg7[%c0_239, %c0_240] : memref<1x8xf32, #tpu.memory_space<vmem>>, vector<1x8xf32>
    %137 = vector.broadcast %136 : vector<1x8xf32> to vector<128x8xf32>
    %138 = arith.addf %135, %137 : vector<128x8xf32>
    %c0_241 = arith.constant 0 : index
    %c0_242 = arith.constant 0 : index
    %139 = vector.load %arg8[%c0_241, %c0_242] : memref<4x8xbf16, #tpu.memory_space<vmem>>, vector<4x8xbf16>
    %cst_243 = arith.constant dense<0.000000e+00> : vector<128x8xf32>
    %140 = tpu.matmul %55, %139, %cst_243 {dimension_numbers = #tpu.dot_dimension_numbers<[1], [0], [0], [1], [0, 0, 1, 1], [], []>} : vector<128x4xbf16>, vector<4x8xbf16>, vector<128x8xf32> -> vector<128x8xf32>
    %c0_244 = arith.constant 0 : index
    %c0_245 = arith.constant 0 : index
    %141 = vector.load %arg9[%c0_244, %c0_245] : memref<1x8xf32, #tpu.memory_space<vmem>>, vector<1x8xf32>
    %142 = vector.broadcast %141 : vector<1x8xf32> to vector<128x8xf32>
    %143 = arith.mulf %140, %142 : vector<128x8xf32>
    %c0_246 = arith.constant 0 : index
    %c0_247 = arith.constant 0 : index
    %144 = vector.load %arg10[%c0_246, %c0_247] : memref<1x8xf32, #tpu.memory_space<vmem>>, vector<1x8xf32>
    %145 = vector.broadcast %144 : vector<1x8xf32> to vector<128x8xf32>
    %146 = arith.addf %143, %145 : vector<128x8xf32>
    %147 = arith.addf %138, %146 : vector<128x8xf32>
    %cst_248 = arith.constant 0.000000e+00 : f32
    %148 = vector.broadcast %cst_248 : f32 to vector<128x8xf32>
    %149 = arith.maximumf %147, %148 : vector<128x8xf32>
    %150 = vector.shape_cast %149 : vector<128x8xf32> to vector<2x8x8x8xf32>
    %151 = vector.extract_strided_slice %150 {offsets = [0, 0, 0, 0], sizes = [2, 8, 1, 8], strides = [1, 1, 1, 1]} : vector<2x8x8x8xf32> to vector<2x8x1x8xf32>
    %152 = vector.shape_cast %151 : vector<2x8x1x8xf32> to vector<2x8x8xf32>
    %153 = vector.extract_strided_slice %150 {offsets = [0, 0, 1, 0], sizes = [2, 8, 1, 8], strides = [1, 1, 1, 1]} : vector<2x8x8x8xf32> to vector<2x8x1x8xf32>
    %154 = vector.shape_cast %153 : vector<2x8x1x8xf32> to vector<2x8x8xf32>
    %155 = vector.extract_strided_slice %150 {offsets = [0, 0, 2, 0], sizes = [2, 8, 1, 8], strides = [1, 1, 1, 1]} : vector<2x8x8x8xf32> to vector<2x8x1x8xf32>
    %156 = vector.shape_cast %155 : vector<2x8x1x8xf32> to vector<2x8x8xf32>
    %157 = vector.extract_strided_slice %150 {offsets = [0, 0, 3, 0], sizes = [2, 8, 1, 8], strides = [1, 1, 1, 1]} : vector<2x8x8x8xf32> to vector<2x8x1x8xf32>
    %158 = vector.shape_cast %157 : vector<2x8x1x8xf32> to vector<2x8x8xf32>
    %159 = vector.extract_strided_slice %150 {offsets = [0, 0, 4, 0], sizes = [2, 8, 1, 8], strides = [1, 1, 1, 1]} : vector<2x8x8x8xf32> to vector<2x8x1x8xf32>
    %160 = vector.shape_cast %159 : vector<2x8x1x8xf32> to vector<2x8x8xf32>
    %161 = vector.extract_strided_slice %150 {offsets = [0, 0, 5, 0], sizes = [2, 8, 1, 8], strides = [1, 1, 1, 1]} : vector<2x8x8x8xf32> to vector<2x8x1x8xf32>
    %162 = vector.shape_cast %161 : vector<2x8x1x8xf32> to vector<2x8x8xf32>
    %163 = vector.extract_strided_slice %150 {offsets = [0, 0, 6, 0], sizes = [2, 8, 1, 8], strides = [1, 1, 1, 1]} : vector<2x8x8x8xf32> to vector<2x8x1x8xf32>
    %164 = vector.shape_cast %163 : vector<2x8x1x8xf32> to vector<2x8x8xf32>
    %165 = vector.extract_strided_slice %150 {offsets = [0, 0, 7, 0], sizes = [2, 8, 1, 8], strides = [1, 1, 1, 1]} : vector<2x8x8x8xf32> to vector<2x8x1x8xf32>
    %166 = vector.shape_cast %165 : vector<2x8x1x8xf32> to vector<2x8x8xf32>
    %167 = tpu.concatenate %152, %154, %156, %158, %160, %162, %164, %166 in 2 : vector<2x8x8xf32>, vector<2x8x8xf32>, vector<2x8x8xf32>, vector<2x8x8xf32>, vector<2x8x8xf32>, vector<2x8x8xf32>, vector<2x8x8xf32>, vector<2x8x8xf32> -> vector<2x8x64xf32>
    %c0_249 = arith.constant 0 : index
    %c0_250 = arith.constant 0 : index
    %c0_251 = arith.constant 0 : index
    %168 = vector.load %arg11[%c0_249, %c0_250, %c0_251] : memref<2x8x64xf32, #tpu.memory_space<vmem>>, vector<2x8x64xf32>
    tpu.vector_store %arg11[%c0_249, %c0_250, %c0_251], %167 {strides = array<i32>} : memref<2x8x64xf32, #tpu.memory_space<vmem>>, vector<2x8x64xf32>,
    %169 = vector.shape_cast %147 : vector<128x8xf32> to vector<2x8x8x8xf32>
    %170 = vector.extract_strided_slice %169 {offsets = [0, 0, 0, 0], sizes = [2, 8, 1, 8], strides = [1, 1, 1, 1]} : vector<2x8x8x8xf32> to vector<2x8x1x8xf32>
    %171 = vector.shape_cast %170 : vector<2x8x1x8xf32> to vector<2x8x8xf32>
    %172 = vector.extract_strided_slice %169 {offsets = [0, 0, 1, 0], sizes = [2, 8, 1, 8], strides = [1, 1, 1, 1]} : vector<2x8x8x8xf32> to vector<2x8x1x8xf32>
    %173 = vector.shape_cast %172 : vector<2x8x1x8xf32> to vector<2x8x8xf32>
    %174 = vector.extract_strided_slice %169 {offsets = [0, 0, 2, 0], sizes = [2, 8, 1, 8], strides = [1, 1, 1, 1]} : vector<2x8x8x8xf32> to vector<2x8x1x8xf32>
    %175 = vector.shape_cast %174 : vector<2x8x1x8xf32> to vector<2x8x8xf32>
    %176 = vector.extract_strided_slice %169 {offsets = [0, 0, 3, 0], sizes = [2, 8, 1, 8], strides = [1, 1, 1, 1]} : vector<2x8x8x8xf32> to vector<2x8x1x8xf32>
    %177 = vector.shape_cast %176 : vector<2x8x1x8xf32> to vector<2x8x8xf32>
    %178 = vector.extract_strided_slice %169 {offsets = [0, 0, 4, 0], sizes = [2, 8, 1, 8], strides = [1, 1, 1, 1]} : vector<2x8x8x8xf32> to vector<2x8x1x8xf32>
    %179 = vector.shape_cast %178 : vector<2x8x1x8xf32> to vector<2x8x8xf32>
    %180 = vector.extract_strided_slice %169 {offsets = [0, 0, 5, 0], sizes = [2, 8, 1, 8], strides = [1, 1, 1, 1]} : vector<2x8x8x8xf32> to vector<2x8x1x8xf32>
    %181 = vector.shape_cast %180 : vector<2x8x1x8xf32> to vector<2x8x8xf32>
    %182 = vector.extract_strided_slice %169 {offsets = [0, 0, 6, 0], sizes = [2, 8, 1, 8], strides = [1, 1, 1, 1]} : vector<2x8x8x8xf32> to vector<2x8x1x8xf32>
    %183 = vector.shape_cast %182 : vector<2x8x1x8xf32> to vector<2x8x8xf32>
    %184 = vector.extract_strided_slice %169 {offsets = [0, 0, 7, 0], sizes = [2, 8, 1, 8], strides = [1, 1, 1, 1]} : vector<2x8x8x8xf32> to vector<2x8x1x8xf32>
    %185 = vector.shape_cast %184 : vector<2x8x1x8xf32> to vector<2x8x8xf32>
    %186 = tpu.concatenate %171, %173, %175, %177, %179, %181, %183, %185 in 2 : vector<2x8x8xf32>, vector<2x8x8xf32>, vector<2x8x8xf32>, vector<2x8x8xf32>, vector<2x8x8xf32>, vector<2x8x8xf32>, vector<2x8x8xf32>, vector<2x8x8xf32> -> vector<2x8x64xf32>
    %c0_252 = arith.constant 0 : index
    %c0_253 = arith.constant 0 : index
    %c0_254 = arith.constant 0 : index
    %187 = vector.load %arg12[%c0_252, %c0_253, %c0_254] : memref<2x8x64xf32, #tpu.memory_space<vmem>>, vector<2x8x64xf32>
    tpu.vector_store %arg12[%c0_252, %c0_253, %c0_254], %186 {strides = array<i32>} : memref<2x8x64xf32, #tpu.memory_space<vmem>>, vector<2x8x64xf32>,
    return
  }
  func.func @transform_0(%arg0: i32) -> (i32, i32, i32, i32) {
    %c0_i32 = arith.constant 0 : i32
    %c0_i32_0 = arith.constant 0 : i32
    %c0_i32_1 = arith.constant 0 : i32
    %c0_i32_2 = arith.constant 0 : i32
    return %arg0, %c0_i32, %c0_i32_0, %c0_i32_1 : i32, i32, i32, i32
  }
  func.func @transform_1(%arg0: i32) -> (i32, i32) {
    %c0_i32 = arith.constant 0 : i32
    %c0_i32_0 = arith.constant 0 : i32
    %c0_i32_1 = arith.constant 0 : i32
    return %c0_i32, %c0_i32_0 : i32, i32
  }
  func.func @transform_2(%arg0: i32) -> (i32, i32) {
    %c0_i32 = arith.constant 0 : i32
    %c0_i32_0 = arith.constant 0 : i32
    %c0_i32_1 = arith.constant 0 : i32
    return %c0_i32, %c0_i32_0 : i32, i32
  }
  func.func @transform_3(%arg0: i32) -> (i32, i32) {
    %c0_i32 = arith.constant 0 : i32
    %c0_i32_0 = arith.constant 0 : i32
    %c0_i32_1 = arith.constant 0 : i32
    return %c0_i32, %c0_i32_0 : i32, i32
  }
  func.func @transform_4(%arg0: i32) -> (i32, i32) {
    %c0_i32 = arith.constant 0 : i32
    %c0_i32_0 = arith.constant 0 : i32
    %c0_i32_1 = arith.constant 0 : i32
    return %c0_i32, %c0_i32_0 : i32, i32
  }
  func.func @transform_5(%arg0: i32) -> (i32, i32) {
    %c0_i32 = arith.constant 0 : i32
    %c0_i32_0 = arith.constant 0 : i32
    %c0_i32_1 = arith.constant 0 : i32
    return %c0_i32, %c0_i32_0 : i32, i32
  }
  func.func @transform_6(%arg0: i32) -> (i32, i32) {
    %c0_i32 = arith.constant 0 : i32
    %c0_i32_0 = arith.constant 0 : i32
    %c0_i32_1 = arith.constant 0 : i32
    return %c0_i32, %c0_i32_0 : i32, i32
  }
  func.func @transform_7(%arg0: i32) -> (i32, i32) {
    %c0_i32 = arith.constant 0 : i32
    %c0_i32_0 = arith.constant 0 : i32
    %c0_i32_1 = arith.constant 0 : i32
    return %c0_i32, %c0_i32_0 : i32, i32
  }
  func.func @transform_8(%arg0: i32) -> (i32, i32) {
    %c0_i32 = arith.constant 0 : i32
    %c0_i32_0 = arith.constant 0 : i32
    %c0_i32_1 = arith.constant 0 : i32
    return %c0_i32, %c0_i32_0 : i32, i32
  }
  func.func @transform_9(%arg0: i32) -> (i32, i32) {
    %c0_i32 = arith.constant 0 : i32
    %c0_i32_0 = arith.constant 0 : i32
    %c0_i32_1 = arith.constant 0 : i32
    return %c0_i32, %c0_i32_0 : i32, i32
  }
  func.func @transform_10(%arg0: i32) -> (i32, i32, i32) {
    %c0_i32 = arith.constant 0 : i32
    %c0_i32_0 = arith.constant 0 : i32
    %c0_i32_1 = arith.constant 0 : i32
    return %arg0, %c0_i32, %c0_i32_0 : i32, i32, i32
  }
  func.func @transform_11(%arg0: i32) -> (i32, i32, i32) {
    %c0_i32 = arith.constant 0 : i32
    %c0_i32_0 = arith.constant 0 : i32
    %c0_i32_1 = arith.constant 0 : i32
    return %arg0, %c0_i32, %c0_i32_0 : i32, i32, i32
  }
}

</mosaic_0001>

<bundles_post_ra>
// kernel: tpu_custom_call.1
= control target key start
LH: loop header
LB: loop body
LE: loop exit
PB: predicated region body
PF: predicated region fallthrough
CT: control target
= control target key end

     0   :  { %17 = vsyncpa [#allocation6], 0  ;;  %s5776_s19 = smov 4   ;;  %s5777_s24 = smov 12   ;;  %vm139_vm0 = vsmask.f32 3328  ;;  %s8339_s0 = inlined_call_operand.vmem [shape: bf16[2,36,9,4], index: 0, kind: input, shape index: {}]   ;;  %s8340_s1 = inlined_call_operand.vmem [shape: bf16[36,8], index: 1, kind: input, shape index: {}]   ;;  %s8341_s2 = inlined_call_operand.vmem [shape: f32[1,8], index: 2, kind: input, shape index: {}]   ;;  %s8342_s3 = inlined_call_operand.vmem [shape: f32[1,8], index: 3, kind: input, shape index: {}]   ;;  %s8343_s4 = inlined_call_operand.vmem [shape: bf16[72,8], index: 4, kind: input, shape index: {}]   ;;  %s8344_s5 = inlined_call_operand.vmem [shape: f32[1,8], index: 5, kind: input, shape index: {}]   ;;  %s8345_s6 = inlined_call_operand.vmem [shape: f32[1,8], index: 6, kind: input, shape index: {}]   ;;  %s8346_s7 = inlined_call_operand.vmem [shape: bf16[4,8], index: 7, kind: input, shape index: {}]   ;;  %s8347_s8 = inlined_call_operand.vmem [shape: f32[1,8], index: 8, kind: input, shape index: {}]   ;;  %s8348_s9 = inlined_call_operand.vmem [shape: f32[1,8], index: 9, kind: input, shape index: {}]   ;;  %s8349_s10 = inlined_call_operand.hbm [shape: f32[2,8,64], index: 10, kind: output, shape index: {0}]   ;;  %s8350_s11 = inlined_call_operand.hbm [shape: f32[2,8,64], index: 11, kind: output, shape index: {1}]  }
   0x1   :  { %v5638_v0 = vld [vmem:[%s8339_s0 + $0x48] ss:$8 sps:$4 sm:$0xff]   ;;  %v5640_v2 = vld [vmem:[%s8339_s0 + $0x58] ss:$8 sps:$4 sm:$0xff]   ;;  %v124_v6 = vld [vmem:[%s8339_s0 + $0x4] sm:$0x1] }
   0x2   :  { %106 = vrot.lane.b32.xlu0 %v5638_v0, %s5776_s19  ;;  %v5639_v1 = vld [vmem:[%s8339_s0 + $0xa0] ss:$8 sps:$4 sm:$0xff]   ;;  %v5642_v4 = vld [vmem:[%s8339_s0 + $0x90] ss:$8 sps:$4 sm:$0xff]   ;;  %v126_v8 = vld [vmem:[%s8339_s0 + $0xc] sm:$0x1] }
   0x3   :  { %314 = vrot.lane.b32.xlu1 %v5639_v1, %s5777_s24  ;;  %v5641_v3 = vld [vmem:[%s8339_s0 + $0xe8] ss:$8 sps:$4 sm:$0xff]   ;;  %v123_v5 = vld [vmem:[%s8339_s0] sm:$0xf]  ;;  %vm140_vm1 = vsmask.f32 7440 }
   0x4   :  { %v125_v7 = vld [vmem:[%s8339_s0 + $0x8] sm:$0xf]  ;;  %v143_v9 = vshrl.u32 %v123_v5, 16  ;;  %v146_v10 = vshll.u32 %v123_v5, 16  ;;  %s5778_s18 = smov 16   ;;  %v152_v11 = vshll.u32 %v124_v6, 16  ;;  %vm5901_vm2 = vmor %vm139_vm0, %vm140_vm1 }
   0x5   :  { %v157_v12 = vshrl.u32 %v125_v7, 16  ;;  %v160_v13 = vshll.u32 %v125_v7, 16  ;;  %v166_v14 = vshll.u32 %v126_v8, 16  ;;  %v5643_v17 = vld [vmem:[%s8339_s0 + $0xd8] ss:$8 sps:$4 sm:$0xff]   ;;  %s5779_s29 = smov 8  }
   0x6   :  { %108 = vrot.lane.b32.xlu0 %v5640_v2, %s5776_s19  ;;  %v145_v15 = vrot.slane %v143_v9, 4  ;;  %v148_v16 = vrot.slane %v146_v10, 5  ;;  %v154_v18 = vrot.slane %v152_v11, 5  ;;  %v127_v22 = vld [vmem:[%s8339_s0 + $0x10] sm:$0xf]  ;;  %s5780_s26 = smov 20  }
   0x7   :  { %360 = vrot.lane.b32.xlu1 %v5641_v3, %s5778_s18  ;;  %v159_v19 = vrot.slane %v157_v12, 4  ;;  %v162_v20 = vrot.slane %v160_v13, 5  ;;  %v168_v21 = vrot.slane %v166_v14, 5  ;;  %v128_v24 = vld [vmem:[%s8339_s0 + $0x14] sm:$0x1]  ;;  %v171_v29 = vshrl.u32 %v127_v22, 16 }
   0x8   :  { %v149_v23 = vor.u32 %v148_v16, %v145_v15  ;;  %v129_v25 = vld [vmem:[%s8339_s0 + $0x18] sm:$0xf]  ;;  %v130_v26 = vld [vmem:[%s8339_s0 + $0x1c] sm:$0x1]  ;;  %v174_v30 = vshll.u32 %v127_v22, 16  ;;  %v180_v31 = vshll.u32 %v128_v24, 16 }
   0x9   :  { %v163_v28 = vor.u32 %v162_v20, %v159_v19  ;;  %v5103_v32 = vld [vmem:[%s8339_s0 + $0x90] sm:$0xf]  ;;  %v185_v34 = vshrl.u32 %v129_v25, 16  ;;  %v188_v35 = vshll.u32 %v129_v25, 16  ;;  %v194_v36 = vshll.u32 %v130_v26, 16  ;;  %s5781_s27 = smov 24  }
   0xa   :  { %312 = vrot.lane.b32.xlu0 %v5642_v4, %s5777_s24  ;;  %v150_v33 = vrot.slane %v149_v23, 4  ;;  %v5104_v37 = vld [vmem:[%s8339_s0 + $0x94] sm:$0x1]  ;;  %v173_v39 = vrot.slane %v171_v29, 4  ;;  %v176_v40 = vrot.slane %v174_v30, 5  ;;  %v182_v41 = vrot.slane %v180_v31, 5 }
   0xb   :  { %v164_v38 = vrot.slane %v163_v28, 4  ;;  %v5105_v42 = vld [vmem:[%s8339_s0 + $0x98] sm:$0xf]  ;;  %v187_v44 = vrot.slane %v185_v34, 4  ;;  %v190_v45 = vrot.slane %v188_v35, 5  ;;  %v196_v46 = vrot.slane %v194_v36, 5 }
   0xc   :  { %v155_v43 = vsel %vm5901_vm2, %v150_v33, %v154_v18  ;;  %v177_v48 = vor.u32 %v176_v40, %v173_v39  ;;  %v5106_v49 = vld [vmem:[%s8339_s0 + $0x9c] sm:$0x1]  ;;  %v392_v50 = vshrl.u32 %v5103_v32, 16  ;;  %v395_v51 = vshll.u32 %v5103_v32, 16  ;;  %v5107_v56 = vld [vmem:[%s8339_s0 + $0xa0] sm:$0xf] }
   0xd   :  { %v169_v47 = vsel %vm5901_vm2, %v164_v38, %v168_v21  ;;  %v191_v53 = vor.u32 %v190_v45, %v187_v44  ;;  %v401_v54 = vshll.u32 %v5104_v37, 16  ;;  %v406_v55 = vshrl.u32 %v5105_v42, 16  ;;  %v5108_v57 = vld [vmem:[%s8339_s0 + $0xa4] sm:$0x1]  ;;  %v5109_v62 = vld [vmem:[%s8339_s0 + $0xa8] sm:$0xf] }
   0xe   :  { %358 = vrot.lane.b32.xlu0 %v5643_v17, %s5778_s18  ;;  %v5075_v52 = vcombine.low %v155_v43, %v169_v47  ;;  %v178_v58 = vrot.slane %v177_v48, 4  ;;  %v394_v59 = vrot.slane %v392_v50, 4  ;;  %v397_v60 = vrot.slane %v395_v51, 5  ;;  %v5110_v6 = vld [vmem:[%s8339_s0 + $0xac] sm:$0x1]  ;;  %s5782_s16 = smov 28  }
   0xf   :  { %v409_v61 = vshll.u32 %v5105_v42, 16  ;;  %v192_v63 = vrot.slane %v191_v53, 4  ;;  %v403_v0 = vrot.slane %v401_v54, 5  ;;  %v408_v1 = vrot.slane %v406_v55, 4  ;;  %v5147_v29 = vld [vmem:[%s8339_s0 + $0x8] sm:$0xf] }
  0x10   :  { %266 = vrot.lane.b32.xlu1 %v5075_v52, %s5779_s29  ;;  %v415_v2 = vshll.u32 %v5106_v49, 16  ;;  %v183_v3 = vsel %vm5901_vm2, %v178_v58, %v182_v41  ;;  %v398_v4 = vor.u32 %v397_v60, %v394_v59  ;;  %v420_v7 = vshrl.u32 %v5107_v56, 16  ;;  %v5148_v30 = vld [vmem:[%s8339_s0 + $0xc] sm:$0x1]  ;;  %v5644_v34 = vld [vmem:[%s8339_s0 + $0x8] ss:$8 sps:$4 sm:$0xff]  }
  0x11   :  { %v411_v5 = vrot.slane %v409_v61, 5  ;;  %v197_v8 = vsel %vm5901_vm2, %v192_v63, %v196_v46  ;;  %v423_v10 = vshll.u32 %v5107_v56, 16  ;;  %v429_v11 = vshll.u32 %v5108_v57, 16  ;;  %v5149_v35 = vld [vmem:[%s8339_s0 + $0x10] sm:$0xf]  ;;  %v5680_v46 = vld [vmem:[%s8340_s1] sm:$0xff]  }
  0x12   :  { %v417_v9 = vrot.slane %v415_v2, 5  ;;  %v5076_v12 = vcombine.low %v183_v3, %v197_v8  ;;  %v399_v13 = vrot.slane %v398_v4, 4  ;;  %v422_v15 = vrot.slane %v420_v7, 4  ;;  %v5150_v36 = vld [vmem:[%s8339_s0 + $0x14] sm:$0x1]  ;;  %5546 = vmatprep.subr.bf16.mxu0 %v5680_v46  ;;  %5612 = vmatprep.subr.bf16.mxu1 %v5680_v46  ;;  %s5783_s17 = smov 32  }
  0x13   :  { %v412_v14 = vor.u32 %v411_v5, %v408_v1  ;;  %v425_v16 = vrot.slane %v423_v10, 5  ;;  %v434_v17 = vshrl.u32 %v5109_v62, 16  ;;  %v437_v18 = vshll.u32 %v5109_v62, 16  ;;  %v5646_v51 = vld [vmem:[%s8339_s0 + $0x50] ss:$8 sps:$4 sm:$0xff]   ;;  %5547 = vmatpush3.bf16.msra.mxu0 %v5680_v46  ;;  %5615 = vmatpush3.bf16.msra.mxu1 %v5680_v46 }
  0x14   :  { %268 = vrot.lane.b32.xlu1 %v5076_v12, %s5779_s29  ;;  %v404_v19 = vsel %vm5901_vm2, %v399_v13, %v403_v0  ;;  %v443_v21 = vshll.u32 %v5110_v6, 16  ;;  %v431_v23 = vrot.slane %v429_v11, 5  ;;  %v641_v37 = vshrl.u32 %v5147_v29, 16  ;;  %v5151_v54 = vld [vmem:[%s8339_s0 + $0x18] sm:$0xf] }
  0x15   :  { %v413_v20 = vrot.slane %v412_v14, 4  ;;  %v426_v22 = vor.u32 %v425_v16, %v422_v15  ;;  %v436_v24 = vrot.slane %v434_v17, 4  ;;  %v439_v25 = vrot.slane %v437_v18, 5  ;;  %v5152_v55 = vld [vmem:[%s8339_s0 + $0x1c] sm:$0x1] }
  0x16   :  { %v445_v28 = vrot.slane %v443_v21, 5  ;;  %v644_v38 = vshll.u32 %v5147_v29, 16  ;;  %v650_v39 = vshll.u32 %v5148_v30, 16  ;;  %v655_v40 = vshrl.u32 %v5149_v35, 16  ;;  %v5645_v57 = vld [vmem:[%s8339_s0 + $0x18] ss:$8 sps:$4 sm:$0xff]  }
  0x17   :  { %v418_v26 = vsel %vm5901_vm2, %v413_v20, %v417_v9  ;;  %v427_v32 = vrot.slane %v426_v22, 4  ;;  %v440_v33 = vor.u32 %v439_v25, %v436_v24  ;;  %v658_v41 = vshll.u32 %v5149_v35, 16  ;;  %v5153_v60 = vld [vmem:[%s8339_s0 + $0x20] sm:$0xf]  ;;  %v5154_v61 = vld [vmem:[%s8339_s0 + $0x24] sm:$0x1] }
  0x18   :  { %v5119_v31 = vcombine.low %v404_v19, %v418_v26  ;;  %v643_v44 = vrot.slane %v641_v37, 4  ;;  %v664_v45 = vshll.u32 %v5150_v36, 16  ;;  %v646_v47 = vrot.slane %v644_v38, 5  ;;  %v5647_v10 = vld [vmem:[%s8339_s0 + $0x60] ss:$8 sps:$4 sm:$0xff]  }
  0x19   :  { %v432_v42 = vsel %vm5901_vm2, %v427_v32, %v431_v23  ;;  %v441_v43 = vrot.slane %v440_v33, 4  ;;  %v657_v48 = vrot.slane %v655_v40, 4  ;;  %v660_v49 = vrot.slane %v658_v41, 5  ;;  %v131_v15 = vld [vmem:[%s8339_s0 + $0x20] sm:$0xf]  ;;  %v5682_v23 = vld [vmem:[%s8340_s1 + $0x8] sm:$0xff]  }
  0x1a   :  { %515 = vrot.lane.b32.xlu0 %v5119_v31, %s5780_s26  ;;  %v652_v52 = vrot.slane %v650_v39, 5  ;;  %v666_v53 = vrot.slane %v664_v45, 5  ;;  %v647_v58 = vor.u32 %v646_v47, %v643_v44  ;;  %v669_v62 = vshrl.u32 %v5151_v54, 16  ;;  %v132_v16 = vld [vmem:[%s8339_s0 + $0x24] sm:$0x1]  ;;  %5548 = vmatprep.subr.bf16.mxu0 %v5682_v23 }
  0x1b   :  { %v446_v50 = vsel %vm5901_vm2, %v441_v43, %v445_v28  ;;  %v661_v59 = vor.u32 %v660_v49, %v657_v48  ;;  %v672_v63 = vshll.u32 %v5151_v54, 16  ;;  %v678_v0 = vshll.u32 %v5152_v55, 16  ;;  %v133_v20 = vld [vmem:[%s8339_s0 + $0x28] sm:$0xf]  ;;  %v134_v21 = vld [vmem:[%s8339_s0 + $0x2c] sm:$0x1]  ;;  %5613 = vmatprep.subr.bf16.mxu1 %v5682_v23  ;;  %5549 = vmatpush3.bf16.msra.mxu0 %v5682_v23 }
  0x1c   :  { %v5120_v56 = vcombine.low %v432_v42, %v446_v50  ;;  %v683_v1 = vshrl.u32 %v5153_v60, 16  ;;  %v686_v2 = vshll.u32 %v5153_v60, 16  ;;  %v648_v3 = vrot.slane %v647_v58, 4  ;;  %v135_v29 = vld [vmem:[%s8339_s0 + $0x30] sm:$0xf]  ;;  %5616 = vmatpush3.bf16.msra.mxu1 %v5682_v23 }
  0x1d   :  { %v662_v4 = vrot.slane %v661_v59, 4  ;;  %v671_v5 = vrot.slane %v669_v62, 4  ;;  %v692_v6 = vshll.u32 %v5154_v61, 16  ;;  %v674_v7 = vrot.slane %v672_v63, 5  ;;  %v137_v39 = vld [vmem:[%s8339_s0 + $0x38] sm:$0xf] }
  0x1e   :  { %561 = vrot.lane.b32.xlu0 %v5644_v34, %s5781_s27  ;;  %517 = vrot.lane.b32.xlu1 %v5120_v56, %s5780_s26  ;;  %v685_v8 = vrot.slane %v683_v1, 4  ;;  %v688_v9 = vrot.slane %v686_v2, 5  ;;  %v653_v11 = vsel %vm5901_vm2, %v648_v3, %v652_v52  ;;  %v680_v13 = vrot.slane %v678_v0, 5  ;;  %v136_v34 = vld [vmem:[%s8339_s0 + $0x34] sm:$0x1] }
  0x1f   :  { %v667_v12 = vsel %vm5901_vm2, %v662_v4, %v666_v53  ;;  %v694_v14 = vrot.slane %v692_v6, 5  ;;  %v675_v18 = vor.u32 %v674_v7, %v671_v5  ;;  %v199_v22 = vshrl.u32 %v131_v15, 16  ;;  %v138_v43 = vld [vmem:[%s8339_s0 + $0x3c] sm:$0x1]  ;;  %v5648_v45 = vld [vmem:[%s8339_s0 + $0x68] ss:$8 sps:$4 sm:$0xff]  }
  0x20   :  { %v5163_v17 = vcombine.low %v653_v11, %v667_v12  ;;  %v689_v19 = vor.u32 %v688_v9, %v685_v8  ;;  %v202_v24 = vshll.u32 %v131_v15, 16  ;;  %v208_v25 = vshll.u32 %v132_v16, 16  ;;  %v5649_v58 = vld [vmem:[%s8339_s0 + $0x78] ss:$8 sps:$4 sm:$0xff]   ;;  %v5111_v6 = vld [vmem:[%s8339_s0 + $0xb0] sm:$0xf] }
  0x21   :  { %v213_v26 = vshrl.u32 %v133_v20, 16  ;;  %v216_v28 = vshll.u32 %v133_v20, 16  ;;  %v676_v30 = vrot.slane %v675_v18, 4  ;;  %v201_v32 = vrot.slane %v199_v22, 4  ;;  %v5650_v5 = vld [vmem:[%s8339_s0 + $0xb0] ss:$8 sps:$4 sm:$0xff]  }
  0x22   :  { %607 = vrot.lane.b32.xlu0 %v5646_v51, %s5782_s16  ;;  %563 = vrot.lane.b32.xlu1 %v5645_v57, %s5781_s27  ;;  %v690_v31 = vrot.slane %v689_v19, 4  ;;  %v222_v33 = vshll.u32 %v134_v21, 16  ;;  %v204_v35 = vrot.slane %v202_v24, 5  ;;  %v210_v36 = vrot.slane %v208_v25, 5  ;;  %v5112_v8 = vld [vmem:[%s8339_s0 + $0xb4] sm:$0x1] }
  0x23   :  { %v215_v37 = vrot.slane %v213_v26, 4  ;;  %v218_v38 = vrot.slane %v216_v28, 5  ;;  %v681_v40 = vsel %vm5901_vm2, %v676_v30, %v680_v13  ;;  %v227_v44 = vshrl.u32 %v135_v29, 16  ;;  %v5113_v9 = vld [vmem:[%s8339_s0 + $0xb8] sm:$0xf] }
  0x24   :  { %v695_v41 = vsel %vm5901_vm2, %v690_v31, %v694_v14  ;;  %v224_v42 = vrot.slane %v222_v33, 5  ;;  %v205_v47 = vor.u32 %v204_v35, %v201_v32  ;;  %v230_v49 = vshll.u32 %v135_v29, 16  ;;  %v5114_v12 = vld [vmem:[%s8339_s0 + $0xbc] sm:$0x1]  ;;  %v5115_v21 = vld [vmem:[%s8339_s0 + $0xc0] sm:$0xf] }
  0x25   :  { %v5164_v46 = vcombine.low %v681_v40, %v695_v41  ;;  %v219_v48 = vor.u32 %v218_v38, %v215_v37  ;;  %v229_v50 = vrot.slane %v227_v44, 4  ;;  %v236_v51 = vshll.u32 %v136_v34, 16  ;;  %v5651_v23 = vld [vmem:[%s8339_s0 + $0xc0] ss:$8 sps:$4 sm:$0xff]   ;;  %v5116_v28 = vld [vmem:[%s8339_s0 + $0xc4] sm:$0x1] }
  0x26   :  { %764 = vrot.lane.b32.xlu0 %v5163_v17, %s5783_s17  ;;  %609 = vrot.lane.b32.xlu1 %v5647_v10, %s5782_s16  ;;  %v241_v52 = vshrl.u32 %v137_v39, 16  ;;  %v244_v53 = vshll.u32 %v137_v39, 16  ;;  %v206_v54 = vrot.slane %v205_v47, 4  ;;  %v232_v56 = vrot.slane %v230_v49, 5  ;;  %v5652_v17 = vld [vmem:[%s8339_s0 + $0xf8] ss:$8 sps:$4 sm:$0xff]  }
  0x27   :  { %v220_v55 = vrot.slane %v219_v48, 4  ;;  %v250_v57 = vshll.u32 %v138_v43, 16  ;;  %v238_v0 = vrot.slane %v236_v51, 5  ;;  %v448_v10 = vshrl.u32 %v5111_v6, 16  ;;  %v5117_v31 = vld [vmem:[%s8339_s0 + $0xc8] sm:$0xf] }
  0x28   :  { %v243_v59 = vrot.slane %v241_v52, 4  ;;  %v246_v60 = vrot.slane %v244_v53, 5  ;;  %v211_v61 = vsel %vm5901_vm2, %v206_v54, %v210_v36  ;;  %v233_v63 = vor.u32 %v232_v56, %v229_v50  ;;  %v5118_v32 = vld [vmem:[%s8339_s0 + $0xcc] sm:$0x1]  ;;  %v5653_v41 = vld [vmem:[%s8339_s0 + $0x108] ss:$8 sps:$4 sm:$0xff]  }
  0x29   :  { %v225_v62 = vsel %vm5901_vm2, %v220_v55, %v224_v42  ;;  %v252_v3 = vrot.slane %v250_v57, 5  ;;  %v451_v13 = vshll.u32 %v5111_v6, 16  ;;  %v457_v14 = vshll.u32 %v5112_v8, 16  ;;  %v5654_v56 = vld [vmem:[%s8339_s0 + $0x28] ss:$8 sps:$4 sm:$0xff]  }
  0x2a   :  { %766 = vrot.lane.b32.xlu0 %v5164_v46, %s5783_s17  ;;  %110 = vrot.lane.b32.xlu1 %v5648_v45, %s5776_s19  ;;  %v5077_v1 = vcombine.low %v211_v61, %v225_v62  ;;  %v247_v2 = vor.u32 %v246_v60, %v243_v59  ;;  %v234_v4 = vrot.slane %v233_v63, 4  ;;  %v462_v15 = vshrl.u32 %v5113_v9, 16  ;;  %v5156_v59 = vld [vmem:[%s8339_s0 + $0x2c] sm:$0x1]  ;;  %v5157_v61 = vld [vmem:[%s8339_s0 + $0x30] sm:$0xf] }
  0x2b   :  { %v450_v18 = vrot.slane %v448_v10, 4  ;;  %v465_v19 = vshll.u32 %v5113_v9, 16  ;;  %v471_v20 = vshll.u32 %v5114_v12, 16  ;;  %v453_v24 = vrot.slane %v451_v13, 5  ;;  %v5158_v62 = vld [vmem:[%s8339_s0 + $0x34] sm:$0x1] }
  0x2c   :  { %v248_v7 = vrot.slane %v247_v2, 4  ;;  %v239_v11 = vsel %vm5901_vm2, %v234_v4, %v238_v0  ;;  %v459_v25 = vrot.slane %v457_v14, 5  ;;  %v464_v26 = vrot.slane %v462_v15, 4  ;;  %v5656_v8 = vld [vmem:[%s8339_s0 + $0x70] ss:$8 sps:$4 sm:$0xff]  }
  0x2d   :  { %v467_v29 = vrot.slane %v465_v19, 5  ;;  %v473_v30 = vrot.slane %v471_v20, 5  ;;  %v454_v33 = vor.u32 %v453_v24, %v450_v18  ;;  %v476_v34 = vshrl.u32 %v5115_v21, 16  ;;  %v5160_v12 = vld [vmem:[%s8339_s0 + $0x3c] sm:$0x1] }
  0x2e   :  { %270 = vrot.lane.b32.xlu0 %v5077_v1, %s5779_s29  ;;  %112 = vrot.lane.b32.xlu1 %v5649_v58, %s5776_s19  ;;  %v253_v16 = vsel %vm5901_vm2, %v248_v7, %v252_v3  ;;  %v479_v35 = vshll.u32 %v5115_v21, 16  ;;  %v485_v36 = vshll.u32 %v5116_v28, 16  ;;  %v490_v38 = vshrl.u32 %v5117_v31, 16  ;;  %v5155_v58 = vld [vmem:[%s8339_s0 + $0x28] sm:$0xf] }
  0x2f   :  { %v5078_v22 = vcombine.low %v239_v11, %v253_v16  ;;  %v468_v37 = vor.u32 %v467_v29, %v464_v26  ;;  %v493_v39 = vshll.u32 %v5117_v31, 16  ;;  %v499_v40 = vshll.u32 %v5118_v32, 16  ;;  %v5655_v7 = vld [vmem:[%s8339_s0 + $0x38] ss:$8 sps:$4 sm:$0xff]   ;;  %v5162_v20 = vld [vmem:[%s8339_s0 + $0x44] sm:$0x1] }
  0x30   :  { %v455_v42 = vrot.slane %v454_v33, 4  ;;  %v478_v43 = vrot.slane %v476_v34, 4  ;;  %v481_v44 = vrot.slane %v479_v35, 5  ;;  %v492_v46 = vrot.slane %v490_v38, 4  ;;  %v5161_v16 = vld [vmem:[%s8339_s0 + $0x40] sm:$0xf] }
  0x31   :  { %v469_v45 = vrot.slane %v468_v37, 4  ;;  %v495_v47 = vrot.slane %v493_v39, 5  ;;  %v487_v50 = vrot.slane %v485_v36, 5  ;;  %v501_v53 = vrot.slane %v499_v40, 5  ;;  %v5657_v31 = vld [vmem:[%s8339_s0 + $0x80] ss:$8 sps:$4 sm:$0xff]  }
  0x32   :  { %316 = vrot.lane.b32.xlu0 %v5650_v5, %s5777_s24  ;;  %272 = vrot.lane.b32.xlu1 %v5078_v22, %s5779_s29  ;;  %v460_v48 = vsel %vm5901_vm2, %v455_v42, %v459_v25  ;;  %v482_v49 = vor.u32 %v481_v44, %v478_v43  ;;  %v697_v63 = vshrl.u32 %v5155_v58, 16  ;;  %v700_v0 = vshll.u32 %v5155_v58, 16  ;;  %v5159_v5 = vld [vmem:[%s8339_s0 + $0x38] sm:$0xf]  ;;  %v5192_v42 = vld [vmem:[%s8339_s0 + $0x124] sm:$0x1] }
  0x33   :  { %v474_v51 = vsel %vm5901_vm2, %v469_v45, %v473_v30  ;;  %v496_v52 = vor.u32 %v495_v47, %v492_v46  ;;  %v706_v2 = vshll.u32 %v5156_v59, 16  ;;  %v711_v3 = vshrl.u32 %v5157_v61, 16  ;;  %v5658_v45 = vld [vmem:[%s8339_s0 + $0x168] ss:$8 sps:$4 sm:$0xff]   ;;  %v5194_v47 = vld [vmem:[%s8339_s0 + $0x12c] sm:$0x1] }
  0x34   :  { %v5121_v54 = vcombine.low %v460_v48, %v474_v51  ;;  %v483_v55 = vrot.slane %v482_v49, 4  ;;  %v714_v4 = vshll.u32 %v5157_v61, 16  ;;  %v699_v9 = vrot.slane %v697_v63, 4  ;;  %v5193_v46 = vld [vmem:[%s8339_s0 + $0x128] sm:$0xf] }
  0x35   :  { %v497_v57 = vrot.slane %v496_v52, 4  ;;  %v702_v10 = vrot.slane %v700_v0, 5  ;;  %v720_v11 = vshll.u32 %v5158_v62, 16  ;;  %v708_v13 = vrot.slane %v706_v2, 5  ;;  %v5196_v58 = vld [vmem:[%s8339_s0 + $0x134] sm:$0x1] }
  0x36   :  { %362 = vrot.lane.b32.xlu0 %v5652_v17, %s5778_s18  ;;  %318 = vrot.lane.b32.xlu1 %v5651_v23, %s5777_s24  ;;  %v488_v60 = vsel %vm5901_vm2, %v483_v55, %v487_v50  ;;  %v713_v14 = vrot.slane %v711_v3, 4  ;;  %v716_v15 = vrot.slane %v714_v4, 5  ;;  %v725_v17 = vshrl.u32 %v5159_v5, 16  ;;  %v5197_v63 = vld [vmem:[%s8339_s0 + $0x138] sm:$0xf] }
  0x37   :  { %v502_v1 = vsel %vm5901_vm2, %v497_v57, %v501_v53  ;;  %v703_v18 = vor.u32 %v702_v10, %v699_v9  ;;  %v722_v19 = vrot.slane %v720_v11, 5  ;;  %v728_v21 = vshll.u32 %v5159_v5, 16  ;;  %v5195_v53 = vld [vmem:[%s8339_s0 + $0x130] sm:$0xf]  ;;  %v5198_v4 = vld [vmem:[%s8339_s0 + $0x13c] sm:$0x1] }
  0x38   :  { %v5122_v6 = vcombine.low %v488_v60, %v502_v1  ;;  %v734_v22 = vshll.u32 %v5160_v12, 16  ;;  %v717_v23 = vor.u32 %v716_v15, %v713_v14  ;;  %v727_v24 = vrot.slane %v725_v17, 4  ;;  %v5659_v1 = vld [vmem:[%s8339_s0 + $0x178] ss:$8 sps:$4 sm:$0xff]  }
  0x39   :  { %v739_v25 = vshrl.u32 %v5161_v16, 16  ;;  %v742_v26 = vshll.u32 %v5161_v16, 16  ;;  %v704_v28 = vrot.slane %v703_v18, 4  ;;  %v730_v29 = vrot.slane %v728_v21, 5 }
  0x3a   :  { %364 = vrot.lane.b32.xlu1 %v5653_v41, %s5778_s18  ;;  %519 = vrot.lane.b32.xlu0 %v5121_v54, %s5780_s26  ;;  %v748_v30 = vshll.u32 %v5162_v20, 16  ;;  %v718_v32 = vrot.slane %v717_v23, 4  ;;  %v736_v37 = vrot.slane %v734_v22, 5  ;;  %v5191_v41 = vld [vmem:[%s8339_s0 + $0x120] sm:$0xf]  ;;  %v889_v51 = vshll.u32 %v5192_v42, 16 }
  0x3b   :  { %v741_v33 = vrot.slane %v739_v25, 4  ;;  %v744_v34 = vrot.slane %v742_v26, 5  ;;  %v709_v35 = vsel %vm5901_vm2, %v704_v28, %v708_v13  ;;  %v731_v36 = vor.u32 %v730_v29, %v727_v24  ;;  %v5660_v28 = vld [vmem:[%s8339_s0 + $0x1b0] ss:$8 sps:$4 sm:$0xff]  }
  0x3c   :  { %v723_v38 = vsel %vm5901_vm2, %v718_v32, %v722_v19  ;;  %v750_v40 = vrot.slane %v748_v30, 5  ;;  %v880_v48 = vshrl.u32 %v5191_v41, 16  ;;  %v883_v50 = vshll.u32 %v5191_v41, 16  ;;  %v5235_v30 = vld [vmem:[%s8339_s0 + $0x1b0] sm:$0xf] }
  0x3d   :  { %v745_v39 = vor.u32 %v744_v34, %v741_v33  ;;  %v5165_v43 = vcombine.low %v709_v35, %v723_v38  ;;  %v732_v44 = vrot.slane %v731_v36, 4  ;;  %v894_v52 = vshrl.u32 %v5193_v46, 16  ;;  %v5237_v33 = vld [vmem:[%s8339_s0 + $0x1b8] sm:$0xf]  ;;  %v5238_v34 = vld [vmem:[%s8339_s0 + $0x1bc] sm:$0x1] }
  0x3e   :  { %521 = vrot.lane.b32.xlu1 %v5122_v6, %s5780_s26  ;;  %565 = vrot.lane.b32.xlu0 %v5654_v56, %s5781_s27  ;;  %v882_v55 = vrot.slane %v880_v48, 4  ;;  %v897_v56 = vshll.u32 %v5193_v46, 16  ;;  %v903_v57 = vshll.u32 %v5194_v47, 16  ;;  %v885_v60 = vrot.slane %v883_v50, 5  ;;  %v5239_v41 = vld [vmem:[%s8339_s0 + $0x1c0] sm:$0xf] }
  0x3f   :  { %v746_v49 = vrot.slane %v745_v39, 4  ;;  %v737_v54 = vsel %vm5901_vm2, %v732_v44, %v736_v37  ;;  %v891_v61 = vrot.slane %v889_v51, 5  ;;  %v896_v62 = vrot.slane %v894_v52, 4  ;;  %v5662_v44 = vld [vmem:[%s8339_s0 + $0x1f8] ss:$8 sps:$4 sm:$0xff]  }
  0x40   :  { %v899_v2 = vrot.slane %v897_v56, 5  ;;  %v905_v3 = vrot.slane %v903_v57, 5  ;;  %v908_v5 = vshrl.u32 %v5195_v53, 16  ;;  %v886_v6 = vor.u32 %v885_v60, %v882_v55  ;;  %v5240_v48 = vld [vmem:[%s8339_s0 + $0x1c4] sm:$0x1] }
  0x41   :  { %v751_v59 = vsel %vm5901_vm2, %v746_v49, %v750_v40  ;;  %v922_v9 = vshrl.u32 %v5197_v63, 16  ;;  %v925_v12 = vshll.u32 %v5197_v63, 16  ;;  %v931_v13 = vshll.u32 %v5198_v4, 16  ;;  %v5241_v52 = vld [vmem:[%s8339_s0 + $0x1c8] sm:$0xf] }
  0x42   :  { %567 = vrot.lane.b32.xlu1 %v5655_v7, %s5781_s27  ;;  %611 = vrot.lane.b32.xlu0 %v5656_v8, %s5782_s16  ;;  %v5166_v0 = vcombine.low %v737_v54, %v751_v59  ;;  %v911_v7 = vshll.u32 %v5195_v53, 16  ;;  %v917_v8 = vshll.u32 %v5196_v58, 16  ;;  %v900_v10 = vor.u32 %v899_v2, %v896_v62  ;;  %v5242_v56 = vld [vmem:[%s8339_s0 + $0x1cc] sm:$0x1]  ;;  %v5663_v2 = vld [vmem:[%s8339_s0 + $0x208] ss:$8 sps:$4 sm:$0xff]  }
  0x43   :  { %v910_v11 = vrot.slane %v908_v5, 4  ;;  %v887_v14 = vrot.slane %v886_v6, 4  ;;  %v924_v16 = vrot.slane %v922_v9, 4  ;;  %v927_v18 = vrot.slane %v925_v12, 5 }
  0x44   :  { %v913_v15 = vrot.slane %v911_v7, 5  ;;  %v901_v17 = vrot.slane %v900_v10, 4  ;;  %v919_v21 = vrot.slane %v917_v8, 5  ;;  %v933_v24 = vrot.slane %v931_v13, 5 }
  0x45   :  { %v892_v19 = vsel %vm5901_vm2, %v887_v14, %v891_v61  ;;  %v928_v23 = vor.u32 %v927_v18, %v924_v16  ;;  %v1126_v35 = vshrl.u32 %v5235_v30, 16  ;;  %v1129_v36 = vshll.u32 %v5235_v30, 16  ;;  %v5280_v18 = vld [vmem:[%s8339_s0 + $0x12c] sm:$0x1] }
  0x46   :  { %613 = vrot.lane.b32.xlu1 %v5657_v31, %s5782_s16  ;;  %768 = vrot.lane.b32.xlu0 %v5165_v43, %s5783_s17  ;;  %v914_v20 = vor.u32 %v913_v15, %v910_v11  ;;  %v906_v22 = vsel %vm5901_vm2, %v901_v17, %v905_v3  ;;  %v5236_v31 = vld [vmem:[%s8339_s0 + $0x1b4] sm:$0x1]  ;;  %v1140_v39 = vshrl.u32 %v5237_v33, 16  ;;  %v1143_v40 = vshll.u32 %v5237_v33, 16  ;;  %v5661_v43 = vld [vmem:[%s8339_s0 + $0x1c0] ss:$8 sps:$4 sm:$0xff]  }
  0x47   :  { %v5207_v25 = vcombine.low %v892_v19, %v906_v22  ;;  %v929_v29 = vrot.slane %v928_v23, 4  ;;  %v1135_v38 = vshll.u32 %v5236_v31, 16  ;;  %v1131_v46 = vrot.slane %v1129_v36, 5  ;;  %v5664_v15 = vld [vmem:[%s8339_s0 + $0x128] ss:$8 sps:$4 sm:$0xff]  }
  0x48   :  { %v915_v26 = vrot.slane %v914_v20, 4  ;;  %v1149_v47 = vshll.u32 %v5238_v34, 16  ;;  %v1142_v50 = vrot.slane %v1140_v39, 4  ;;  %v1145_v51 = vrot.slane %v1143_v40, 5  ;;  %v5279_v17 = vld [vmem:[%s8339_s0 + $0x128] sm:$0xf] }
  0x49   :  { %v934_v37 = vsel %vm5901_vm2, %v929_v29, %v933_v24  ;;  %v1137_v49 = vrot.slane %v1135_v38, 5  ;;  %v1154_v53 = vshrl.u32 %v5239_v41, 16  ;;  %v1157_v57 = vshll.u32 %v5239_v41, 16  ;;  %v5281_v20 = vld [vmem:[%s8339_s0 + $0x130] sm:$0xf] }
  0x4a   :  { %770 = vrot.lane.b32.xlu1 %v5166_v0, %s5783_s17  ;;  %847 = vrot.lane.b32.xlu0 %v5658_v45, %s5776_s19  ;;  %v920_v32 = vsel %vm5901_vm2, %v915_v26, %v919_v21  ;;  %v1128_v45 = vrot.slane %v1126_v35, 4  ;;  %v1151_v55 = vrot.slane %v1149_v47, 5  ;;  %v1163_v58 = vshll.u32 %v5240_v48, 16  ;;  %v5282_v21 = vld [vmem:[%s8339_s0 + $0x134] sm:$0x1] }
  0x4b   :  { %v5208_v42 = vcombine.low %v920_v32, %v934_v37  ;;  %v1146_v59 = vor.u32 %v1145_v51, %v1142_v50  ;;  %v1156_v60 = vrot.slane %v1154_v53, 4  ;;  %v1168_v61 = vshrl.u32 %v5241_v52, 16  ;;  %v5665_v32 = vld [vmem:[%s8339_s0 + $0x138] ss:$8 sps:$4 sm:$0xff]   ;;  %v5284_v40 = vld [vmem:[%s8339_s0 + $0x13c] sm:$0x1] }
  0x4c   :  { %v1132_v54 = vor.u32 %v1131_v46, %v1128_v45  ;;  %v1171_v62 = vshll.u32 %v5241_v52, 16  ;;  %v1159_v0 = vrot.slane %v1157_v57, 5  ;;  %v1165_v8 = vrot.slane %v1163_v58, 5  ;;  %v5666_v33 = vld [vmem:[%s8339_s0 + $0x170] ss:$8 sps:$4 sm:$0xff]  }
  0x4d   :  { %v1147_v3 = vrot.slane %v1146_v59, 4  ;;  %v1170_v4 = vrot.slane %v1168_v61, 4  ;;  %v1372_v22 = vshrl.u32 %v5279_v17, 16  ;;  %v1375_v23 = vshll.u32 %v5279_v17, 16  ;;  %v5283_v39 = vld [vmem:[%s8339_s0 + $0x138] sm:$0xf] }
  0x4e   :  { %849 = vrot.lane.b32.xlu1 %v5659_v1, %s5776_s19  ;;  %1003 = vrot.lane.b32.xlu0 %v5207_v25, %s5779_s29  ;;  %v1133_v63 = vrot.slane %v1132_v54, 4  ;;  %v1177_v1 = vshll.u32 %v5242_v56, 16  ;;  %v1173_v5 = vrot.slane %v1171_v62, 5  ;;  %v1160_v7 = vor.u32 %v1159_v0, %v1156_v60  ;;  %v5667_v41 = vld [vmem:[%s8339_s0 + $0x180] ss:$8 sps:$4 sm:$0xff]  }
  0x4f   :  { %v1152_v9 = vsel %vm5901_vm2, %v1147_v3, %v1151_v55  ;;  %v1381_v25 = vshll.u32 %v5280_v18, 16  ;;  %v1386_v26 = vshrl.u32 %v5281_v20, 16  ;;  %v1374_v29 = vrot.slane %v1372_v22, 4  ;;  %v5668_v59 = vld [vmem:[%s8339_s0 + $0x188] ss:$8 sps:$4 sm:$0xff]  }
  0x50   :  { %v1138_v6 = vsel %vm5901_vm2, %v1133_v63, %v1137_v49  ;;  %v1174_v10 = vor.u32 %v1173_v5, %v1170_v4  ;;  %v1179_v11 = vrot.slane %v1177_v1, 5  ;;  %v1161_v13 = vrot.slane %v1160_v7, 4  ;;  %v5199_v63 = vld [vmem:[%s8339_s0 + $0x140] sm:$0xf]  ;;  %v5200_v0 = vld [vmem:[%s8339_s0 + $0x144] sm:$0x1] }
  0x51   :  { %v5251_v12 = vcombine.low %v1138_v6, %v1152_v9  ;;  %v1377_v30 = vrot.slane %v1375_v23, 5  ;;  %v1395_v31 = vshll.u32 %v5282_v21, 16  ;;  %v1388_v34 = vrot.slane %v1386_v26, 4  ;;  %v5201_v3 = vld [vmem:[%s8339_s0 + $0x148] sm:$0xf] }
  0x52   :  { %1005 = vrot.lane.b32.xlu1 %v5208_v42, %s5779_s29  ;;  %1048 = vrot.lane.b32.xlu0 %v5660_v28, %s5777_s24  ;;  %v1175_v14 = vrot.slane %v1174_v10, 4  ;;  %v1166_v16 = vsel %vm5901_vm2, %v1161_v13, %v1165_v8  ;;  %v1389_v28 = vshll.u32 %v5281_v20, 16  ;;  %v1383_v37 = vrot.slane %v1381_v25, 5  ;;  %v5202_v4 = vld [vmem:[%s8339_s0 + $0x14c] sm:$0x1] }
  0x53   :  { %v1378_v36 = vor.u32 %v1377_v30, %v1374_v29  ;;  %v1397_v38 = vrot.slane %v1395_v31, 5  ;;  %v1400_v45 = vshrl.u32 %v5283_v39, 16  ;;  %v1403_v46 = vshll.u32 %v5283_v39, 16  ;;  %v5205_v21 = vld [vmem:[%s8339_s0 + $0x158] sm:$0xf] }
  0x54   :  { %v1180_v19 = vsel %vm5901_vm2, %v1175_v14, %v1179_v11  ;;  %v1391_v35 = vrot.slane %v1389_v28, 5  ;;  %v1409_v48 = vshll.u32 %v5284_v40, 16  ;;  %v936_v5 = vshrl.u32 %v5199_v63, 16  ;;  %v5203_v11 = vld [vmem:[%s8339_s0 + $0x150] sm:$0xf] }
  0x55   :  { %v5252_v24 = vcombine.low %v1166_v16, %v1180_v19  ;;  %v1379_v47 = vrot.slane %v1378_v36, 4  ;;  %v1402_v52 = vrot.slane %v1400_v45, 4  ;;  %v1405_v53 = vrot.slane %v1403_v46, 5  ;;  %v5204_v16 = vld [vmem:[%s8339_s0 + $0x154] sm:$0x1] }
  0x56   :  { %1050 = vrot.lane.b32.xlu1 %v5661_v43, %s5777_s24  ;;  %1093 = vrot.lane.b32.xlu0 %v5662_v44, %s5778_s18  ;;  %v1392_v42 = vor.u32 %v1391_v35, %v1388_v34  ;;  %v5285_v43 = vld [vmem:[%s8339_s0 + $0x140] sm:$0xf]  ;;  %v5286_v44 = vld [vmem:[%s8339_s0 + $0x144] sm:$0x1]  ;;  %v1411_v61 = vrot.slane %v1409_v48, 5  ;;  %v939_v6 = vshll.u32 %v5199_v63, 16 }
  0x57   :  { %v1414_v49 = vshrl.u32 %v5285_v43, 16  ;;  %v1417_v50 = vshll.u32 %v5285_v43, 16  ;;  %v1423_v54 = vshll.u32 %v5286_v44, 16  ;;  %v1384_v55 = vsel %vm5901_vm2, %v1379_v47, %v1383_v37  ;;  %v5206_v25 = vld [vmem:[%s8339_s0 + $0x15c] sm:$0x1] }
  0x58   :  { %v1393_v51 = vrot.slane %v1392_v42, 4  ;;  %v1406_v60 = vor.u32 %v1405_v53, %v1402_v52  ;;  %v945_v8 = vshll.u32 %v5200_v0, 16  ;;  %v950_v9 = vshrl.u32 %v5201_v3, 16  ;;  %v5669_v29 = vld [vmem:[%s8339_s0 + $0x198] ss:$8 sps:$4 sm:$0xff]  }
  0x59   :  { %v1416_v56 = vrot.slane %v1414_v49, 4  ;;  %v1419_v57 = vrot.slane %v1417_v50, 5  ;;  %v1425_v62 = vrot.slane %v1423_v54, 5  ;;  %v953_v10 = vshll.u32 %v5201_v3, 16  ;;  %v5670_v50 = vld [vmem:[%s8339_s0 + $0x1d0] ss:$8 sps:$4 sm:$0xff]  }
  0x5a   :  { %1095 = vrot.lane.b32.xlu1 %v5663_v2, %s5778_s18  ;;  %1249 = vrot.lane.b32.xlu0 %v5251_v12, %s5780_s26  ;;  %v1398_v58 = vsel %vm5901_vm2, %v1393_v51, %v1397_v38  ;;  %v1407_v7 = vrot.slane %v1406_v60, 4  ;;  %v938_v13 = vrot.slane %v936_v5, 4  ;;  %v941_v14 = vrot.slane %v939_v6, 5  ;;  %v5243_v52 = vld [vmem:[%s8339_s0 + $0x1d0] sm:$0xf] }
  0x5b   :  { %v5295_v1 = vcombine.low %v1384_v55, %v1398_v58  ;;  %v1420_v2 = vor.u32 %v1419_v57, %v1416_v56  ;;  %v947_v18 = vrot.slane %v945_v8, 5  ;;  %v952_v19 = vrot.slane %v950_v9, 4  ;;  %v5244_v53 = vld [vmem:[%s8339_s0 + $0x1d4] sm:$0x1]  ;;  %v5245_v55 = vld [vmem:[%s8339_s0 + $0x1d8] sm:$0xf] }
  0x5c   :  { %v1412_v17 = vsel %vm5901_vm2, %v1407_v7, %v1411_v61  ;;  %v955_v20 = vrot.slane %v953_v10, 5  ;;  %v942_v23 = vor.u32 %v941_v14, %v938_v13  ;;  %v964_v26 = vshrl.u32 %v5203_v11, 16  ;;  %v5246_v56 = vld [vmem:[%s8339_s0 + $0x1dc] sm:$0x1]  ;;  %v5248_v6 = vld [vmem:[%s8339_s0 + $0x1e4] sm:$0x1] }
  0x5d   :  { %v1421_v12 = vrot.slane %v1420_v2, 4  ;;  %v967_v31 = vshll.u32 %v5203_v11, 16  ;;  %v978_v35 = vshrl.u32 %v5205_v21, 16  ;;  %v981_v36 = vshll.u32 %v5205_v21, 16  ;;  %v5672_v2 = vld [vmem:[%s8339_s0 + $0x218] ss:$8 sps:$4 sm:$0xff]  }
  0x5e   :  { %1251 = vrot.lane.b32.xlu1 %v5252_v24, %s5780_s26  ;;  %1294 = vrot.lane.b32.xlu0 %v5664_v15, %s5781_s27  ;;  %v959_v15 = vshll.u32 %v5202_v4, 16  ;;  %v956_v30 = vor.u32 %v955_v20, %v952_v19  ;;  %v966_v34 = vrot.slane %v964_v26, 4  ;;  %v987_v39 = vshll.u32 %v5206_v25, 16  ;;  %v5671_v8 = vld [vmem:[%s8339_s0 + $0x1e0] ss:$8 sps:$4 sm:$0xff]  }
  0x5f   :  { %v1426_v22 = vsel %vm5901_vm2, %v1421_v12, %v1425_v62  ;;  %v969_v38 = vrot.slane %v967_v31, 5  ;;  %v983_v42 = vrot.slane %v981_v36, 5  ;;  %vm72_vm3 = vcmask 31744   ;;  %v5247_v62 = vld [vmem:[%s8339_s0 + $0x1e0] sm:$0xf] }
  0x60   :  { %v961_v24 = vrot.slane %v959_v15, 5  ;;  %v5296_v28 = vcombine.low %v1412_v17, %v1426_v22  ;;  %v957_v37 = vrot.slane %v956_v30, 4  ;;  %v989_v49 = vrot.slane %v987_v39, 5  ;;  %v5249_v12 = vld [vmem:[%s8339_s0 + $0x1e8] sm:$0xf] }
  0x61   :  { %v970_v45 = vor.u32 %v969_v38, %v966_v34  ;;  %v1182_v57 = vshrl.u32 %v5243_v52, 16  ;;  %v1191_v60 = vshll.u32 %v5244_v53, 16  ;;  %v1196_v61 = vshrl.u32 %v5245_v55, 16  ;;  %v5250_v15 = vld [vmem:[%s8339_s0 + $0x1ec] sm:$0x1] }
  0x62   :  { %1296 = vrot.lane.b32.xlu1 %v5665_v32, %s5781_s27  ;;  %1339 = vrot.lane.b32.xlu0 %v5666_v33, %s5782_s16  ;;  %v973_v32 = vshll.u32 %v5204_v16, 16  ;;  %v943_v33 = vrot.slane %v942_v23, 4  ;;  %v962_v44 = vsel %vm5901_vm2, %v957_v37, %v961_v24  ;;  %v1199_v4 = vshll.u32 %v5245_v55, 16  ;;  %v5673_v26 = vld [vmem:[%s8339_s0 + $0x228] ss:$8 sps:$4 sm:$0xff]  }
  0x63   :  { %v971_v51 = vrot.slane %v970_v45, 4  ;;  %v1184_v3 = vrot.slane %v1182_v57, 4  ;;  %v1205_v5 = vshll.u32 %v5246_v56, 16  ;;  %v1193_v10 = vrot.slane %v1191_v60, 5  ;;  %v5674_v31 = vld [vmem:[%s8339_s0] ss:$8 sps:$4 sm:$0xff]  }
  0x64   :  { %v948_v40 = vsel %vm5901_vm2, %v943_v33, %v947_v18  ;;  %v975_v46 = vrot.slane %v973_v32, 5  ;;  %v1198_v11 = vrot.slane %v1196_v61, 4  ;;  %v1201_v13 = vrot.slane %v1199_v4, 5  ;;  %73 = vst.msk [vmem:[#allocation3] sm:$0xff] %vm72_vm3, %v5674_v31  ;;  %v5677_v45 = vld [vmem:[%s8339_s0 + $0x10] ss:$8 sps:$4 sm:$0xff]  }
  0x65   :  { %v5209_v47 = vcombine.low %v948_v40, %v962_v44  ;;  %v1207_v14 = vrot.slane %v1205_v5, 5  ;;  %v1210_v16 = vshrl.u32 %v5247_v62, 16  ;;  %v1213_v17 = vshll.u32 %v5247_v62, 16  ;;  %74 = vst.msk [vmem:[#allocation3 + $0x8] sm:$0xff] %vm72_vm3, %v5677_v45  ;;  %v5676_v53 = vld [vmem:[%s8339_s0 + $0x158] ss:$8 sps:$4 sm:$0xff]  }
  0x66   :  { %1341 = vrot.lane.b32.xlu1 %v5667_v41, %s5782_s16  ;;  %1495 = vrot.lane.b32.xlu0 %v5295_v1, %s5783_s17  ;;  %v980_v41 = vrot.slane %v978_v35, 4  ;;  %v976_v58 = vsel %vm5901_vm2, %v971_v51, %v975_v46  ;;  %v1219_v19 = vshll.u32 %v5248_v6, 16  ;;  %v1224_v20 = vshrl.u32 %v5249_v12, 16  ;;  %v5287_v51 = vld [vmem:[%s8339_s0 + $0x148] sm:$0xf] }
  0x67   :  { %v1227_v21 = vshll.u32 %v5249_v12, 16  ;;  %v1202_v22 = vor.u32 %v1201_v13, %v1198_v11  ;;  %v1212_v23 = vrot.slane %v1210_v16, 4  ;;  %v1215_v24 = vrot.slane %v1213_v17, 5  ;;  %v5289_v55 = vld [vmem:[%s8339_s0 + $0x150] sm:$0xf] }
  0x68   :  { %v984_v48 = vor.u32 %v983_v42, %v980_v41  ;;  %v1233_v25 = vshll.u32 %v5250_v15, 16  ;;  %vm118_vm4 = vcmask 64544   ;;  %v1221_v36 = vrot.slane %v1219_v19, 5  ;;  %v5290_v56 = vld [vmem:[%s8339_s0 + $0x154] sm:$0x1] }
  0x69   :  { %v1229_v30 = vrot.slane %v1227_v21, 5  ;;  %v1203_v34 = vrot.slane %v1202_v22, 4  ;;  %v1216_v35 = vor.u32 %v1215_v24, %v1212_v23  ;;  %vm278_vm5 = vcmask 97344   ;;  %v5293_v4 = vld [vmem:[%s8339_s0 + $0x160] sm:$0xf] }
  0x6a   :  { %851 = vrot.lane.b32.xlu1 %v5668_v59, %s5776_s19  ;;  %1497 = vrot.lane.b32.xlu0 %v5296_v28, %s5783_s17  ;;  %v985_v54 = vrot.slane %v984_v48, 4  ;;  %v1185_v59 = vshll.u32 %v5243_v52, 16  ;;  %v1235_v39 = vrot.slane %v1233_v25, 5  ;;  %vm324_vm6 = vcmask 130144   ;;  %v5288_v52 = vld [vmem:[%s8339_s0 + $0x14c] sm:$0x1] }
  0x6b   :  { %v1208_v40 = vsel %vm5901_vm2, %v1203_v34, %v1207_v14  ;;  %v1217_v41 = vrot.slane %v1216_v35, 4  ;;  %vm370_vm7 = vcmask 162944   ;;  %vm527_vm8 = vcmask 195744   ;;  %v5679_v11 = vld [vmem:[%s8339_s0 + $0x1a0] ss:$8 sps:$4 sm:$0xff]  }
  0x6c   :  { %v990_v1 = vsel %vm5901_vm2, %v985_v54, %v989_v49  ;;  %v1187_v9 = vrot.slane %v1185_v59, 5  ;;  %v5678_v54 = vld [vmem:[%s8339_s0 + $0x190] ss:$8 sps:$4 sm:$0xff]   ;;  %v1428_v57 = vshrl.u32 %v5287_v51, 16  ;;  %v1437_v59 = vshll.u32 %v5288_v52, 16 }
  0x6d   :  { %v5210_v7 = vcombine.low %v976_v58, %v990_v1  ;;  %v1222_v46 = vsel %vm5901_vm2, %v1217_v41, %v1221_v36  ;;  %v1431_v58 = vshll.u32 %v5287_v51, 16  ;;  %v1442_v60 = vshrl.u32 %v5289_v55, 16  ;;  %v5681_v31 = vld [vmem:[%s8339_s0 + $0x20] ss:$8 sps:$4 sm:$0xff]  }
  0x6e   :  { %853 = vrot.lane.b32.xlu1 %v5669_v29, %s5776_s19  ;;  %1007 = vrot.lane.b32.xlu0 %v5209_v47, %s5779_s29  ;;  %v1188_v18 = vor.u32 %v1187_v9, %v1184_v3  ;;  %v1226_v29 = vrot.slane %v1224_v20, 4  ;;  %v5675_v47 = vld [vmem:[%s8339_s0 + $0x148] ss:$8 sps:$4 sm:$0xff]   ;;  %v1445_v61 = vshll.u32 %v5289_v55, 16  ;;  %v1451_v62 = vshll.u32 %v5290_v56, 16  ;;  %75 = vst.msk [vmem:[#allocation3 + $0x10] sm:$0xff] %vm72_vm3, %v5681_v31 }
  0x6f   :  { %vm1580_vm9 = vcmask 1041408   ;;  %v1430_v1 = vrot.slane %v1428_v57, 4  ;;  %v5292_v3 = vld [vmem:[%s8339_s0 + $0x15c] sm:$0x1]  ;;  %vm573_vm10 = vcmask 228544   ;;  %v1439_v5 = vrot.slane %v1437_v59, 5 }
  0x70   :  { %v1189_v28 = vrot.slane %v1188_v18, 4  ;;  %v1230_v38 = vor.u32 %v1229_v30, %v1226_v29  ;;  %v1444_v6 = vrot.slane %v1442_v60, 4  ;;  %v5294_v9 = vld [vmem:[%s8339_s0 + $0x164] sm:$0x1]  ;;  %v1465_v15 = vshll.u32 %v5292_v3, 16 }
  0x71   :  { %v1470_v17 = vshrl.u32 %v5293_v4, 16  ;;  %v1473_v18 = vshll.u32 %v5293_v4, 16  ;;  %v1479_v19 = vshll.u32 %v5294_v9, 16  ;;  %vm619_vm11 = vcmask 261344  }
  0x72   :  { %1052 = vrot.lane.b32.xlu0 %v5670_v50, %s5777_s24  ;;  %1009 = vrot.lane.b32.xlu1 %v5210_v7, %s5779_s29  ;;  %v1194_v37 = vsel %vm5901_vm2, %v1189_v28, %v1193_v10  ;;  %v1231_v44 = vrot.slane %v1230_v38, 4  ;;  %v1447_v7 = vrot.slane %v1445_v61, 5  ;;  %v1467_v23 = vrot.slane %v1465_v15, 5 }
  0x73   :  { %v5253_v42 = vcombine.low %v1194_v37, %v1208_v40  ;;  %v1472_v25 = vrot.slane %v1470_v17, 4  ;;  %v1481_v28 = vrot.slane %v1479_v19, 5  ;;  %v5684_v37 = vld [vmem:[%s8340_s1 + $0x10] ss:$0 sps:$4 sm:$0x33]   ;;  %vm776_vm12 = vcmask 294144  }
  0x74   :  { %v6323_v43 = vpop.permute.xlu0 %106  ;;  %v1448_v16 = vor.u32 %v1447_v7, %v1444_v6  ;;  %5618 = vmatprep.subr.msk.bf16.mxu0 %vm1580_vm9, %v5684_v37  ;;  %v1582_v41 = vsel %vm1580_vm9, %v5684_v37, 0  ;;  %5619 = vmatprep.subr.msk.bf16.mxu1 %vm1580_vm9, %v5684_v37 }
  0x75   :  { %v6349_v63 = vpop.permute.xlu1 %314  ;;  %119 = vst.msk [vmem:[#allocation3] sm:$0xff] %vm118_vm4, %v6323_v43  ;;  %v1236_v43 = vsel %vm5901_vm2, %v1231_v44, %v1235_v39  ;;  %5551 = vmatpush3.bf16.msra.mxu0 %v1582_v41  ;;  %5617 = vmatpush3.bf16.msra.mxu1 %v1582_v41 }
  0x76   :  { %1097 = vrot.lane.b32.xlu0 %v5672_v2, %s5778_s18  ;;  %1054 = vrot.lane.b32.xlu1 %v5671_v8, %s5777_s24  ;;  %v5254_v50 = vcombine.low %v1222_v46, %v1236_v43  ;;  %v1433_v2 = vrot.slane %v1431_v58, 5  ;;  %v1453_v8 = vrot.slane %v1451_v62, 5  ;;  %v1449_v24 = vrot.slane %v1448_v16, 4  ;;  %v5686_v46 = vld [vmem:[%s8339_s0 + $0x130] ss:$8 sps:$4 sm:$0xff]  }
  0x77   :  { %v5687_v43 = vld [vmem:[%s8339_s0 + $0x140] ss:$8 sps:$4 sm:$0xff]   ;;  %815 = vst.msk [vmem:[#allocation3 + $0x28] sm:$0xff] %vm72_vm3, %v5686_v46 }
  0x78   :  { %v6351_v0 = vpop.permute.xlu0 %108  ;;  %v1434_v12 = vor.u32 %v1433_v2, %v1430_v1  ;;  %816 = vst.msk [vmem:[#allocation3 + $0x30] sm:$0xff] %vm72_vm3, %v5687_v43 }
  0x79   :  { %v6378_v32 = vpop.permute.xlu1 %360  ;;  %120 = vst.msk [vmem:[#allocation3 + $0x8] sm:$0xff] %vm118_vm4, %v6351_v0  ;;  %v5291_v0 = vld [vmem:[%s8339_s0 + $0x158] sm:$0xf] }
  0x7a   :  { %1099 = vrot.lane.b32.xlu1 %v5673_v26, %s5778_s18  ;;  %1253 = vrot.lane.b32.xlu0 %v5253_v42, %s5780_s26  ;;  %v1456_v13 = vshrl.u32 %v5291_v0, 16  ;;  %v1459_v14 = vshll.u32 %v5291_v0, 16  ;;  %v1435_v20 = vrot.slane %v1434_v12, 4  ;;  %v1475_v26 = vrot.slane %v1473_v18, 5  ;;  %v5685_v42 = vld [vmem:[%s8339_s0 + $0x120] ss:$8 sps:$4 sm:$0xff]  }
  0x7b   :  { %814 = vst.msk [vmem:[#allocation3 + $0x20] sm:$0xff] %vm72_vm3, %v5685_v42 }
  0x7c   :  { %v313_v33 = vpop.permute.xlu0 %312  ;;  %v1458_v21 = vrot.slane %v1456_v13, 4  ;;  %v1461_v22 = vrot.slane %v1459_v14, 5  ;;  %v1440_v29 = vsel %vm5901_vm2, %v1435_v20, %v1439_v5  ;;  %v1476_v34 = vor.u32 %v1475_v26, %v1472_v25 }
  0x7e   :  { %1255 = vrot.lane.b32.xlu1 %v5254_v50, %s5780_s26  ;;  %1298 = vrot.lane.b32.xlu0 %v5675_v47, %s5781_s27  ;;  %v1462_v30 = vor.u32 %v1461_v22, %v1458_v21  ;;  %v1477_v38 = vrot.slane %v1476_v34, 4 }
  0x80   :  { %v359_v49 = vpop.permute.xlu0 %358  ;;  %v1463_v36 = vrot.slane %v1462_v30, 4  ;;  %v1482_v44 = vsel %vm5901_vm2, %v1477_v38, %v1481_v28 }
  0x82   :  { %v267_v48 = vpop.permute.xlu1 %266  ;;  %1300 = vrot.lane.b32.xlu1 %v5676_v53, %s5781_s27  ;;  %1343 = vrot.lane.b32.xlu0 %v5678_v54, %s5782_s16  ;;  %v1468_v39 = vsel %vm5901_vm2, %v1463_v36, %v1467_v23 }
  0x83   :  { %279 = vst.msk [vmem:[#allocation3] sm:$0xff] %vm278_vm5, %v267_v48  ;;  %v5298_v47 = vcombine.low %v1468_v39, %v1482_v44  ;;  %v5688_v48 = vld [vmem:[%s8339_s0 + $0x150] ss:$8 sps:$4 sm:$0xff]  }
  0x84   :  { %325 = vst.msk [vmem:[#allocation3] sm:$0xff] %vm324_vm6, %v313_v33  ;;  %v1454_v33 = vsel %vm5901_vm2, %v1449_v24, %v1453_v8 }
  0x85   :  { %371 = vst.msk [vmem:[#allocation3] sm:$0xff] %vm370_vm7, %v359_v49  ;;  %v5297_v35 = vcombine.low %v1440_v29, %v1454_v33 }
  0x86   :  { %v269_v10 = vpop.permute.xlu1 %268  ;;  %1345 = vrot.lane.b32.xlu1 %v5679_v11, %s5782_s16  ;;  %817 = vst.msk [vmem:[#allocation3 + $0x38] sm:$0xff] %vm72_vm3, %v5688_v48 }
  0x87   :  { %280 = vst.msk [vmem:[#allocation3 + $0x8] sm:$0xff] %vm278_vm5, %v269_v10  ;;  %1499 = vrot.lane.b32.xlu0 %v5297_v35, %s5783_s17 }
  0x88   :  { %326 = vst.msk [vmem:[#allocation3 + $0x8] sm:$0xff] %vm324_vm6, %v6349_v63 }
  0x89   :  { %372 = vst.msk [vmem:[#allocation3 + $0x8] sm:$0xff] %vm370_vm7, %v6378_v32  ;;  %v5683_v32 = vld [vmem:[%s8339_s0 + $0x30] ss:$8 sps:$4 sm:$0xff]  }
  0x8a   :  { %76 = vst.msk [vmem:[#allocation3 + $0x18] sm:$0xff] %vm72_vm3, %v5683_v32  ;;  %1501 = vrot.lane.b32.xlu1 %v5298_v47, %s5783_s17 }
  0x8c   :  { %v516_v63 = vpop.permute.xlu0 %515 }
  0x8d   :  { %528 = vst.msk [vmem:[#allocation3] sm:$0xff] %vm527_vm8, %v516_v63 }
  0x90   :  { %v562_v40 = vpop.permute.xlu0 %561  ;;  %v518_v45 = vpop.permute.xlu1 %517 }
  0x91   :  { %574 = vst.msk [vmem:[#allocation3] sm:$0xff] %vm573_vm10, %v562_v40 }
  0x92   :  { %529 = vst.msk [vmem:[#allocation3 + $0x8] sm:$0xff] %vm527_vm8, %v518_v45 }
  0x94   :  { %v608_v49 = vpop.permute.xlu0 %607  ;;  %v564_v50 = vpop.permute.xlu1 %563 }
  0x95   :  { %620 = vst.msk [vmem:[#allocation3] sm:$0xff] %vm619_vm11, %v608_v49 }
  0x96   :  { %575 = vst.msk [vmem:[#allocation3 + $0x8] sm:$0xff] %vm573_vm10, %v564_v50 }
  0x98   :  { %v765_v51 = vpop.permute.xlu0 %764  ;;  %v610_v52 = vpop.permute.xlu1 %609 }
  0x99   :  { %777 = vst.msk [vmem:[#allocation3] sm:$0xff] %vm776_vm12, %v765_v51 }
  0x9a   :  { %621 = vst.msk [vmem:[#allocation3 + $0x8] sm:$0xff] %vm619_vm11, %v610_v52 }
  0x9c   :  { %v767_v53 = vpop.permute.xlu0 %766 }
  0x9d   :  { %18 = vsyncpa [#allocation8], 0  ;;  %v111_v54 = vpop.permute.xlu1 %110  ;;  %778 = vst.msk [vmem:[#allocation3 + $0x8] sm:$0xff] %vm776_vm12, %v767_v53  ;;  %vm1555_vm13 = vcmask 293888   ;;  %vm1745_vm14 = vcmask 57344   ;;  %s5785_s22 = smov 48  }
  0x9e   :  { %121 = vst.msk [vmem:[#allocation3 + $0x10] sm:$0xff] %vm118_vm4, %v111_v54  ;;  %vm1755_vm15 = vsmask.f32 256  ;;  %v1766_v42 = vld [vmem:[#allocation2 + $0x18] sm:$0x1]  ;;  %s5786_s24 = smov 40  }
  0x9f   :  { %vm6550_vm0 = vmand %vm1745_vm14, %vm1755_vm15  ;;  %vm1817_vm1 = vsmask.f32 7938  ;;  %v1828_v45 = vld [vmem:[#allocation2 + $0x1c] sm:$0x1]  ;;  %v1760_v52 = vld [vmem:[#allocation2 + $0x8] sm:$0x1] }
  0xa0   :  { %v271_v55 = vpop.permute.xlu0 %270  ;;  %v1527_v56 = vld [vmem:[#allocation3] sm:$0xff]  ;;  %v1767_v46 = vsel %vm6550_vm0, 0, %v1766_v42  ;;  %v1822_v53 = vld [vmem:[#allocation2 + $0xc] sm:$0x1]  ;;  %v1761_v54 = vsel %vm6550_vm0, 0, %v1760_v52  ;;  %s5787_s23 = smov 64  }
  0xa1   :  { %v113_v57 = vpop.permute.xlu1 %112  ;;  %281 = vst.msk [vmem:[#allocation3 + $0x10] sm:$0xff] %vm278_vm5, %v271_v55  ;;  %5552 = vmatprep.mubr.msk.bf16.mxu0 %vm1555_vm13, %v1527_v56  ;;  %1768 = vst [vmem:[#allocation2 + $0x18] sm:$0x1] %v1767_v46  ;;  %v1769_v56 = vld [vmem:[#allocation2 + $0x20] sm:$0x1]  ;;  %s5788_s19 = smov 56  }
  0xa2   :  { %122 = vst.msk [vmem:[#allocation3 + $0x18] sm:$0xff] %vm118_vm4, %v113_v57  ;;  %v1831_v57 = vld [vmem:[#allocation2 + $0x24] sm:$0x1]  ;;  %1762 = vst [vmem:[#allocation2 + $0x8] sm:$0x1] %v1761_v54  ;;  %vm2689_vm15 = vcmask 326912  }
  0xa3   :  { %v1855_v42 = vld [vmem:[#allocation2 + $0x64] sm:$0x1]  ;;  %v1808_v46 = vld [vmem:[#allocation2 + $0x88] sm:$0x1]  ;;  %v1864_v52 = vld [vmem:[#allocation2 + $0x7c] sm:$0x1] }
  0xa4   :  { %v317_v58 = vpop.permute.xlu0 %316  ;;  %v1528_v59 = vld [vmem:[#allocation3 + $0x8] sm:$0xff] }
  0xa5   :  { %v273_v60 = vpop.permute.xlu1 %272  ;;  %327 = vst.msk [vmem:[#allocation3 + $0x10] sm:$0xff] %vm324_vm6, %v317_v58  ;;  %5553 = vmatmul.mubr.msk.bf16.vlgmr.msra.gmra.mrb[0].mxu0 %vm1555_vm13, %v1528_v59  ;;  %v1770_v59 = vsel %vm6550_vm0, 0, %v1769_v56  ;;  %v1873_v56 = vld [vmem:[#allocation2 + $0x94] sm:$0x1] }
  0xa6   :  { %282 = vst.msk [vmem:[#allocation3 + $0x18] sm:$0xff] %vm278_vm5, %v273_v60  ;;  %1771 = vst [vmem:[#allocation2 + $0x20] sm:$0x1] %v1770_v59  ;;  %v1805_v59 = vld [vmem:[#allocation2 + $0x80] sm:$0x1] }
  0xa8   :  { %v363_v61 = vpop.permute.xlu0 %362 }
  0xa9   :  { %v319_v62 = vpop.permute.xlu1 %318  ;;  %373 = vst.msk [vmem:[#allocation3 + $0x10] sm:$0xff] %vm370_vm7, %v363_v61  ;;  %v1763_v61 = vld [vmem:[#allocation2 + $0x10] sm:$0x1] }
  0xaa   :  { %328 = vst.msk [vmem:[#allocation3 + $0x18] sm:$0xff] %vm324_vm6, %v319_v62  ;;  %v1764_v62 = vsel %vm6550_vm0, 0, %v1763_v61  ;;  %v1867_v61 = vld [vmem:[#allocation2 + $0x84] sm:$0x1] }
  0xab   :  { %1765 = vst [vmem:[#allocation2 + $0x10] sm:$0x1] %v1764_v62  ;;  %v6650_v62 = vld [vmem:[%s8341_s2] ss:$0 sm:$0xff] }
  0xac   :  { %v520_v1 = vpop.permute.xlu0 %519 }
  0xad   :  { %v365_v0 = vpop.permute.xlu1 %364  ;;  %530 = vst.msk [vmem:[#allocation3 + $0x10] sm:$0xff] %vm527_vm8, %v520_v1 }
  0xae   :  { %374 = vst.msk [vmem:[#allocation3 + $0x18] sm:$0xff] %vm370_vm7, %v365_v0  ;;  %v1825_v0 = vld [vmem:[#allocation2 + $0x14] sm:$0x1] }
  0xb0   :  { %v566_v3 = vpop.permute.xlu0 %565 }
  0xb1   :  { %v522_v2 = vpop.permute.xlu1 %521  ;;  %576 = vst.msk [vmem:[#allocation3 + $0x10] sm:$0xff] %vm573_vm10, %v566_v3 }
  0xb2   :  { %531 = vst.msk [vmem:[#allocation3 + $0x18] sm:$0xff] %vm527_vm8, %v522_v2  ;;  %v5784_v2 = vmov 0  }
  0xb3   :  { %1746 = vst.msk [vmem:[#allocation2 + $0x4] sm:$0x1] %vm1745_vm14, %v5784_v2  ;;  %1748 = vst.msk [vmem:[#allocation2 + $0x54] sm:$0x1] %vm1745_vm14, %v5784_v2 }
  0xb4   :  { %v612_v5 = vpop.permute.xlu0 %611  ;;  %1751 = vst.msk [vmem:[#allocation2 + $0x4c] sm:$0x1] %vm1745_vm14, %v5784_v2  ;;  %1753 = vst.msk [vmem:[#allocation2 + $0x9c] sm:$0x1] %vm1745_vm14, %v5784_v2 }
  0xb5   :  { %v568_v4 = vpop.permute.xlu1 %567  ;;  %622 = vst.msk [vmem:[#allocation3 + $0x10] sm:$0xff] %vm619_vm11, %v612_v5 }
  0xb6   :  { %577 = vst.msk [vmem:[#allocation3 + $0x18] sm:$0xff] %vm573_vm10, %v568_v4 }
  0xb8   :  { %v769_v7 = vpop.permute.xlu0 %768 }
  0xb9   :  { %v614_v6 = vpop.permute.xlu1 %613  ;;  %779 = vst.msk [vmem:[#allocation3 + $0x10] sm:$0xff] %vm776_vm12, %v769_v7 }
  0xba   :  { %623 = vst.msk [vmem:[#allocation3 + $0x18] sm:$0xff] %vm619_vm11, %v614_v6  ;;  %v1819_v4 = vld [vmem:[#allocation2 + $0x4] sm:$0x1] }
  0xbc   :  { %v848_v9 = vpop.permute.xlu0 %847 }
  0xbd   :  { %v771_v8 = vpop.permute.xlu1 %770  ;;  %859 = vst.msk [vmem:[#allocation3 + $0x20] sm:$0xff] %vm118_vm4, %v848_v9  ;;  %v1840_v9 = vld [vmem:[#allocation2 + $0x3c] sm:$0x1] }
  0xbe   :  { %780 = vst.msk [vmem:[#allocation3 + $0x18] sm:$0xff] %vm776_vm12, %v771_v8  ;;  %v1778_v8 = vld [vmem:[#allocation2 + $0x38] sm:$0x1] }
  0xc0   :  { %v1529_v11 = vld [vmem:[#allocation3 + $0x10] sm:$0xff]  ;;  %v1004_v12 = vpop.permute.xlu0 %1003 }
  0xc1   :  { %v850_v10 = vpop.permute.xlu1 %849  ;;  %5556 = vmatprep.mubr.msk.bf16.mxu1 %vm1555_vm13, %v1529_v11  ;;  %1015 = vst.msk [vmem:[#allocation3 + $0x20] sm:$0xff] %vm278_vm5, %v1004_v12  ;;  %v1772_v12 = vld [vmem:[#allocation2 + $0x28] sm:$0x1] }
  0xc2   :  { %860 = vst.msk [vmem:[#allocation3 + $0x28] sm:$0xff] %vm118_vm4, %v850_v10  ;;  %v1779_v10 = vsel %vm6550_vm0, 0, %v1778_v8 }
  0xc3   :  { %1780 = vst [vmem:[#allocation2 + $0x38] sm:$0x1] %v1779_v10 }
  0xc4   :  { %v1049_v15 = vpop.permute.xlu0 %1048 }
  0xc5   :  { %v1530_v13 = vld [vmem:[#allocation3 + $0x18] sm:$0xff]  ;;  %v1006_v14 = vpop.permute.xlu1 %1005  ;;  %1060 = vst.msk [vmem:[#allocation3 + $0x20] sm:$0xff] %vm324_vm6, %v1049_v15 }
  0xc6   :  { %5557 = vmatmul.mubr.msk.bf16.vlgmr.msra.gmra.mrb[0].mxu1 %vm1555_vm13, %v1530_v13  ;;  %1016 = vst.msk [vmem:[#allocation3 + $0x28] sm:$0xff] %vm278_vm5, %v1006_v14  ;;  %v1834_v13 = vld [vmem:[#allocation2 + $0x2c] sm:$0x1]  ;;  %v1773_v14 = vsel %vm6550_vm0, 0, %v1772_v12 }
  0xc7   :  { %1774 = vst [vmem:[#allocation2 + $0x28] sm:$0x1] %v1773_v14 }
  0xc8   :  { %v1094_v17 = vpop.permute.xlu0 %1093 }
  0xc9   :  { %v1051_v16 = vpop.permute.xlu1 %1050  ;;  %1105 = vst.msk [vmem:[#allocation3 + $0x20] sm:$0xff] %vm370_vm7, %v1094_v17 }
  0xca   :  { %1061 = vst.msk [vmem:[#allocation3 + $0x28] sm:$0xff] %vm324_vm6, %v1051_v16  ;;  %v1781_v16 = vld [vmem:[#allocation2 + $0x40] sm:$0x1] }
  0xcb   :  { %v1782_v17 = vsel %vm6550_vm0, 0, %v1781_v16 }
  0xcc   :  { %v1250_v19 = vpop.permute.xlu0 %1249  ;;  %1783 = vst [vmem:[#allocation2 + $0x40] sm:$0x1] %v1782_v17 }
  0xcd   :  { %v1096_v18 = vpop.permute.xlu1 %1095  ;;  %1261 = vst.msk [vmem:[#allocation3 + $0x20] sm:$0xff] %vm527_vm8, %v1250_v19  ;;  %v1775_v19 = vld [vmem:[#allocation2 + $0x30] sm:$0x1] }
  0xce   :  { %1106 = vst.msk [vmem:[#allocation3 + $0x28] sm:$0xff] %vm370_vm7, %v1096_v18  ;;  %v1843_v18 = vld [vmem:[#allocation2 + $0x44] sm:$0x1] }
  0xd0   :  { %v1295_v21 = vpop.permute.xlu0 %1294 }
  0xd1   :  { %v1252_v20 = vpop.permute.xlu1 %1251  ;;  %1306 = vst.msk [vmem:[#allocation3 + $0x20] sm:$0xff] %vm573_vm10, %v1295_v21  ;;  %v1776_v21 = vsel %vm6550_vm0, 0, %v1775_v19 }
  0xd2   :  { %1262 = vst.msk [vmem:[#allocation3 + $0x28] sm:$0xff] %vm527_vm8, %v1252_v20  ;;  %1777 = vst [vmem:[#allocation2 + $0x30] sm:$0x1] %v1776_v21 }
  0xd4   :  { %v1340_v23 = vpop.permute.xlu0 %1339 }
  0xd5   :  { %v1297_v22 = vpop.permute.xlu1 %1296  ;;  %1351 = vst.msk [vmem:[#allocation3 + $0x20] sm:$0xff] %vm619_vm11, %v1340_v23 }
  0xd6   :  { %1307 = vst.msk [vmem:[#allocation3 + $0x28] sm:$0xff] %vm573_vm10, %v1297_v22  ;;  %v1837_v22 = vld [vmem:[#allocation2 + $0x34] sm:$0x1] }
  0xd8   :  { %v1496_v25 = vpop.permute.xlu0 %1495 }
  0xd9   :  { %v1342_v24 = vpop.permute.xlu1 %1341  ;;  %1507 = vst.msk [vmem:[#allocation3 + $0x20] sm:$0xff] %vm776_vm12, %v1496_v25  ;;  %v1846_v25 = vld [vmem:[#allocation2 + $0x4c] sm:$0x1] }
  0xda   :  { %1352 = vst.msk [vmem:[#allocation3 + $0x28] sm:$0xff] %vm619_vm11, %v1342_v24 }
  0xdc   :  { %v1498_v28 = vpop.permute.xlu0 %1497 }
  0xdd   :  { %v852_v26 = vpop.permute.xlu1 %851  ;;  %1508 = vst.msk [vmem:[#allocation3 + $0x28] sm:$0xff] %vm776_vm12, %v1498_v28 }
  0xde   :  { %861 = vst.msk [vmem:[#allocation3 + $0x30] sm:$0xff] %vm118_vm4, %v852_v26 }
  0xe0   :  { %v1531_v30 = vld [vmem:[#allocation3 + $0x20] sm:$0xff]  ;;  %v1008_v63 = vpop.permute.xlu0 %1007 }
  0xe1   :  { %v854_v29 = vpop.permute.xlu1 %853  ;;  %5560 = vmatprep.mubr.msk.bf16.mxu1 %vm1555_vm13, %v1531_v30  ;;  %1017 = vst.msk [vmem:[#allocation3 + $0x30] sm:$0xff] %vm278_vm5, %v1008_v63  ;;  %v1858_v30 = vld [vmem:[#allocation2 + $0x6c] sm:$0x1] }
  0xe2   :  { %862 = vst.msk [vmem:[#allocation3 + $0x38] sm:$0xff] %vm118_vm4, %v854_v29  ;;  %vm6557_vm4 = vmand %vm1745_vm14, %vm1817_vm1  ;;  %v1796_v29 = vld [vmem:[#allocation2 + $0x68] sm:$0x1]  ;;  %vm2532_vm14 = vcmask 261312  }
  0xe3   :  { %v1829_v48 = vsel %vm6557_vm4, 0, %v1828_v45  ;;  %v1823_v55 = vsel %vm6557_vm4, 0, %v1822_v53  ;;  %v1832_v60 = vsel %vm6557_vm4, 0, %v1831_v57  ;;  %v1826_v1 = vsel %vm6557_vm4, 0, %v1825_v0 }
  0xe4   :  { %v1532_v31 = vld [vmem:[#allocation3 + $0x28] sm:$0xff]  ;;  %v1053_v33 = vpop.permute.xlu0 %1052  ;;  %1830 = vst [vmem:[#allocation2 + $0x1c] sm:$0x1] %v1829_v48  ;;  %1824 = vst [vmem:[#allocation2 + $0xc] sm:$0x1] %v1823_v55  ;;  %v1820_v5 = vsel %vm6557_vm4, 0, %v1819_v4 }
  0xe5   :  { %5561 = vmatmul.mubr.msk.bf16.gmra.mrb[4].mxu1 %vm1555_vm13, %v1532_v31  ;;  %v1010_v34 = vpop.permute.xlu1 %1009  ;;  %1062 = vst.msk [vmem:[#allocation3 + $0x30] sm:$0xff] %vm324_vm6, %v1053_v33  ;;  %1833 = vst [vmem:[#allocation2 + $0x24] sm:$0x1] %v1832_v60  ;;  %v1841_v11 = vsel %vm6557_vm4, 0, %v1840_v9  ;;  %v1835_v15 = vsel %vm6557_vm4, 0, %v1834_v13  ;;  %v1844_v20 = vsel %vm6557_vm4, 0, %v1843_v18 }
  0xe6   :  { %1018 = vst.msk [vmem:[#allocation3 + $0x38] sm:$0xff] %vm278_vm5, %v1010_v34  ;;  %vm1743_vm5 = vcmask 60416   ;;  %1827 = vst [vmem:[#allocation2 + $0x14] sm:$0x1] %v1826_v1  ;;  %v1838_v23 = vsel %vm6557_vm4, 0, %v1837_v22  ;;  %v1847_v28 = vsel %vm6557_vm4, 0, %v1846_v25 }
  0xe7   :  { %1750 = vst.msk [vmem:[#allocation2 + $0x48] sm:$0xf] %vm1743_vm5, %v5784_v2  ;;  %1744 = vst.msk [vmem:[#allocation2] sm:$0xf] %vm1743_vm5, %v5784_v2  ;;  %v1797_v63 = vsel %vm6550_vm0, 0, %v1796_v29  ;;  %v1859_v31 = vsel %vm6557_vm4, 0, %v1858_v30 }
  0xe8   :  { %v1098_v32 = vpop.permute.xlu0 %1097  ;;  %1747 = vst.msk [vmem:[#allocation2 + $0x50] sm:$0xf] %vm1743_vm5, %v5784_v2  ;;  %1752 = vst.msk [vmem:[#allocation2 + $0x98] sm:$0xf] %vm1743_vm5, %v5784_v2  ;;  %v1790_v33 = vld [vmem:[#allocation2 + $0x58] sm:$0x1] }
  0xe9   :  { %v1055_v35 = vpop.permute.xlu1 %1054  ;;  %1107 = vst.msk [vmem:[#allocation3 + $0x30] sm:$0xff] %vm370_vm7, %v1098_v32  ;;  %1821 = vst [vmem:[#allocation2 + $0x4] sm:$0x1] %v1820_v5  ;;  %v1852_v34 = vld [vmem:[#allocation2 + $0x5c] sm:$0x1]  ;;  %v1791_v32 = vsel %vm6550_vm0, 0, %v1790_v33 }
  0xea   :  { %1063 = vst.msk [vmem:[#allocation3 + $0x38] sm:$0xff] %vm324_vm6, %v1055_v35  ;;  %vm6566_vm6 = vmand %vm1743_vm5, %vm1817_vm1  ;;  %v1853_v35 = vsel %vm6557_vm4, 0, %v1852_v34  ;;  %v1856_v45 = vsel %vm6557_vm4, 0, %v1855_v42  ;;  %v1809_v48 = vsel %vm6550_vm0, 0, %v1808_v46  ;;  %v1865_v54 = vsel %vm6557_vm4, 0, %v1864_v52 }
  0xeb   :  { %1842 = vst [vmem:[#allocation2 + $0x3c] sm:$0x1] %v1841_v11  ;;  %1836 = vst [vmem:[#allocation2 + $0x2c] sm:$0x1] %v1835_v15  ;;  %v1811_v55 = vld [vmem:[#allocation2 + $0x90] sm:$0x1] }
  0xec   :  { %v1254_v37 = vpop.permute.xlu0 %1253  ;;  %1845 = vst [vmem:[#allocation2 + $0x44] sm:$0x1] %v1844_v20  ;;  %1839 = vst [vmem:[#allocation2 + $0x34] sm:$0x1] %v1838_v23  ;;  %v1812_v57 = vsel %vm6550_vm0, 0, %v1811_v55  ;;  %v1806_v60 = vsel %vm6550_vm0, 0, %v1805_v59 }
  0xed   :  { %v1100_v36 = vpop.permute.xlu1 %1099  ;;  %1263 = vst.msk [vmem:[#allocation3 + $0x30] sm:$0xff] %vm527_vm8, %v1254_v37  ;;  %1848 = vst [vmem:[#allocation2 + $0x4c] sm:$0x1] %v1847_v28  ;;  %v1861_v37 = vld [vmem:[#allocation2 + $0x74] sm:$0x1]  ;;  %v1868_v0 = vsel %vm6557_vm4, 0, %v1867_v61 }
  0xee   :  { %1108 = vst.msk [vmem:[#allocation3 + $0x38] sm:$0xff] %vm370_vm7, %v1100_v36  ;;  %v1757_v6 = vld [vmem:[#allocation2] sm:$0x1]  ;;  %v1784_v24 = vld [vmem:[#allocation2 + $0x48] sm:$0x1]  ;;  %vm2428_vm7 = vcmask 1042432  }
  0xef   :  { %v1758_v7 = vsel %vm6550_vm0, 0, %v1757_v6  ;;  %v1785_v26 = vsel %vm6550_vm0, 0, %v1784_v24  ;;  %1798 = vst [vmem:[#allocation2 + $0x68] sm:$0x1] %v1797_v63  ;;  %1860 = vst [vmem:[#allocation2 + $0x6c] sm:$0x1] %v1859_v31 }
  0xf0   :  { %v1299_v39 = vpop.permute.xlu0 %1298  ;;  %1759 = vst [vmem:[#allocation2] sm:$0x1] %v1758_v7  ;;  %1786 = vst [vmem:[#allocation2 + $0x48] sm:$0x1] %v1785_v26  ;;  %v1799_v36 = vld [vmem:[#allocation2 + $0x70] sm:$0x1] }
  0xf1   :  { %v1256_v38 = vpop.permute.xlu1 %1255  ;;  %1308 = vst.msk [vmem:[#allocation3 + $0x30] sm:$0xff] %vm573_vm10, %v1299_v39  ;;  %1792 = vst [vmem:[#allocation2 + $0x58] sm:$0x1] %v1791_v32  ;;  %v1862_v39 = vsel %vm6557_vm4, 0, %v1861_v37  ;;  %v6657_v2 = vld [vmem:[%s8342_s3] ss:$0 sm:$0xff] }
  0xf2   :  { %1264 = vst.msk [vmem:[#allocation3 + $0x38] sm:$0xff] %vm527_vm8, %v1256_v38  ;;  %1854 = vst [vmem:[#allocation2 + $0x5c] sm:$0x1] %v1853_v35  ;;  %v1800_v38 = vsel %vm6550_vm0, 0, %v1799_v36  ;;  %v2118_v22 = vld [vmem:[#allocation2 + $0x18] sm:$0xf] }
  0xf3   :  { %1801 = vst [vmem:[#allocation2 + $0x70] sm:$0x1] %v1800_v38  ;;  %1863 = vst [vmem:[#allocation2 + $0x74] sm:$0x1] %v1862_v39  ;;  %v2121_v23 = vld [vmem:[#allocation2 + $0x1c] sm:$0x1] }
  0xf4   :  { %v1344_v41 = vpop.permute.xlu0 %1343  ;;  %1857 = vst [vmem:[#allocation2 + $0x64] sm:$0x1] %v1856_v45  ;;  %1810 = vst [vmem:[#allocation2 + $0x88] sm:$0x1] %v1809_v48  ;;  %v2106_v29 = vld [vmem:[#allocation2 + $0x8] sm:$0xf] }
  0xf5   :  { %v1301_v40 = vpop.permute.xlu1 %1300  ;;  %1353 = vst.msk [vmem:[#allocation3 + $0x30] sm:$0xff] %vm619_vm11, %v1344_v41  ;;  %1866 = vst [vmem:[#allocation2 + $0x7c] sm:$0x1] %v1865_v54  ;;  %v2109_v30 = vld [vmem:[#allocation2 + $0xc] sm:$0x1]  ;;  %vm2429_vm8 = vcmask 1046532  }
  0xf6   :  { %1309 = vst.msk [vmem:[#allocation3 + $0x38] sm:$0xff] %vm573_vm10, %v1301_v40  ;;  %v1793_v40 = vld [vmem:[#allocation2 + $0x60] sm:$0x1]  ;;  %1813 = vst [vmem:[#allocation2 + $0x90] sm:$0x1] %v1812_v57  ;;  %vm4023_vm1 = vcmask 1043456  }
  0xf7   :  { %v1794_v41 = vsel %vm6550_vm0, 0, %v1793_v40  ;;  %1807 = vst [vmem:[#allocation2 + $0x80] sm:$0x1] %v1806_v60  ;;  %1869 = vst [vmem:[#allocation2 + $0x84] sm:$0x1] %v1868_v0  ;;  %vm3998_vm5 = vcmask 588800  }
  0xf8   :  { %1795 = vst [vmem:[#allocation2 + $0x60] sm:$0x1] %v1794_v41  ;;  %v2124_v34 = vld [vmem:[#allocation2 + $0x20] sm:$0xf]  ;;  %v2127_v39 = vld [vmem:[#allocation2 + $0x24] sm:$0x1]  ;;  %vm6733_vm10 = vmor %vm2428_vm7, %vm2429_vm8 }
  0xf9   :  { %v1346_v43 = vpop.permute.xlu1 %1345  ;;  %v1500_v49 = vpop.permute.xlu0 %1499  ;;  %v2239_v46 = vld [vmem:[#allocation2] sm:$0xf]  ;;  %v2112_v52 = vld [vmem:[#allocation2 + $0x10] sm:$0xf]  ;;  %v2847_v0 = vld [vmem:[#allocation2 + $0x48] sm:$0xf] }
  0xfa   :  { %1354 = vst.msk [vmem:[#allocation3 + $0x38] sm:$0xff] %vm619_vm11, %v1346_v43  ;;  %v1870_v43 = vld [vmem:[#allocation2 + $0x8c] sm:$0x1]  ;;  %v2256_v60 = vshrl.u32 %v2239_v46, 16  ;;  %v2259_v61 = vshll.u32 %v2239_v46, 16  ;;  %vm2234_vm11 = vcmask 64512  }
  0xfb   :  { %1509 = vst.msk [vmem:[#allocation3 + $0x30] sm:$0xff] %vm776_vm12, %v1500_v49  ;;  %v1871_v49 = vsel %vm6557_vm4, 0, %v1870_v43  ;;  %vm4436_vm7 = vcmask 1043459   ;;  %vm4442_vm8 = vcmask 1045509  }
  0xfc   :  { %1872 = vst [vmem:[#allocation2 + $0x8c] sm:$0x1] %v1871_v49 }
  0xfd   :  { %v1502_v51 = vpop.permute.xlu1 %1501 }
  0xfe   :  { %1510 = vst.msk [vmem:[#allocation3 + $0x38] sm:$0xff] %vm776_vm12, %v1502_v51  ;;  %v1802_v51 = vld [vmem:[#allocation2 + $0x78] sm:$0x1]  ;;  %vm2391_vm12 = vcmask 130112  }
  0xff   :  { %v1803_v53 = vsel %vm6550_vm0, 0, %v1802_v51 }
 0x100   :  { %1804 = vst [vmem:[#allocation2 + $0x78] sm:$0x1] %v1803_v53  ;;  %v2115_v53 = vld [vmem:[#allocation2 + $0x14] sm:$0x1] }
 0x102   :  { %v1533_v58 = vld [vmem:[#allocation3 + $0x30] sm:$0xff] }
 0x103   :  { %5564 = vmatprep.mubr.msk.bf16.mxu1 %vm1555_vm13, %v1533_v58  ;;  %v1874_v58 = vsel %vm6557_vm4, 0, %v1873_v56 }
 0x104   :  { %1875 = vst [vmem:[#allocation2 + $0x94] sm:$0x1] %v1874_v58 }
 0x105   :  { %v1534_v3 = vld [vmem:[#allocation3 + $0x38] sm:$0xff] }
 0x106   :  { %5565 = vmatmul.mubr.msk.bf16.gmra.mrb[8].mxu1 %vm1555_vm13, %v1534_v3  ;;  %vm2487_vm13 = vcmask 195712  }
 0x178   :  { %v5554_v1 = vpop.f32.mrb[0].mxu0 }
 0x179   :  { %v1690_v3 = vmul.f32 %v5554_v1, %v6650_v62  ;;  %v1618_v4 = vpop.f32.mrb[1].mxu0 }
 0x17a   :  { %v1688_v5 = vmul.f32 %v6650_v62, %v1618_v4  ;;  %v5555_v6 = vpop.f32.mrb[2].mxu0  ;;  %v2948_v4 = vshrl.u32 %v2847_v0, 16 }
 0x17b   :  { %v1713_v7 = vadd.f32 %v6657_v2, %v1690_v3  ;;  %v1691_v8 = vmul.f32 %v5555_v6, %v6650_v62  ;;  %v1621_v9 = vpop.f32.mrb[3].mxu0  ;;  %v2258_v6 = vrot.slane %v2256_v60, 4 }
 0x17c   :  { %v1711_v10 = vadd.f32 %v6657_v2, %v1688_v5  ;;  %v1689_v11 = vmul.f32 %v6650_v62, %v1621_v9  ;;  %v2951_v5 = vshll.u32 %v2847_v0, 16 }
 0x17d   :  { %v1729_v12 = vmax.f32 %v1713_v7, 0.0  ;;  %v1714_v13 = vadd.f32 %v6657_v2, %v1691_v8  ;;  %v2261_v7 = vrot.slane %v2259_v61, 5  ;;  %v1849_v8 = vld [vmem:[#allocation2 + $0x54] sm:$0x1] }
 0x17e   :  { %v1727_v14 = vmax.f32 %v1711_v10, 0.0  ;;  %v1712_v15 = vadd.f32 %v6657_v2, %v1689_v11  ;;  %v1850_v9 = vsel %vm6557_vm4, 0, %v1849_v8  ;;  %v2240_v10 = vld [vmem:[#allocation2 + $0x4] sm:$0x1]  ;;  %v6685_v11 = vld [vmem:[#allocation2] sm:$0xe] }
 0x17f   :  { %v5499_v16 = vpack.c.bf16 %v1729_v12, %v1729_v12  ;;  %v1730_v17 = vmax.f32 %v1714_v13, 0.0  ;;  %1851 = vst [vmem:[#allocation2 + $0x54] sm:$0x1] %v1850_v9  ;;  %v6687_v12 = vld [vmem:[#allocation2 + $0x4] sm:$0x1] }
 0x180   :  { %v5497_v18 = vpack.c.bf16 %v1727_v14, %v1727_v14  ;;  %v1728_v19 = vmax.f32 %v1712_v15, 0.0  ;;  %v2848_v13 = vld [vmem:[#allocation2 + $0x4c] sm:$0x1]  ;;  %v2950_v14 = vrot.slane %v2948_v4, 4  ;;  %v2953_v15 = vrot.slane %v2951_v5, 5 }
 0x181   :  { %v1960_v20 = vshrl.u32 %v5499_v16, 16  ;;  %v5500_v21 = vpack.c.bf16 %v1730_v17, %v1730_v17  ;;  %v1963_v28 = vshll.u32 %v5499_v16, 16  ;;  %v2262_v17 = vor.u32 %v2261_v7, %v2258_v6 }
 0x182   :  { %v1944_v24 = vshrl.u32 %v5497_v18, 16  ;;  %v5498_v25 = vpack.c.bf16 %v1728_v19, %v1728_v19  ;;  %v1947_v33 = vshll.u32 %v5497_v18, 16  ;;  %v2265_v19 = vshll.u32 %v2240_v10, 16 }
 0x183   :  { %v1962_v26 = vrot.slane %v1960_v20, 7  ;;  %v1968_v63 = vshrl.u32 %v5500_v21, 16  ;;  %v1971_v38 = vshll.u32 %v5500_v21, 16  ;;  %v2957_v20 = vshll.u32 %v2848_v13, 16  ;;  %v6691_v21 = vld [vmem:[#allocation2 + $0x48] sm:$0xe] }
 0x184   :  { %v1946_v31 = vrot.slane %v1944_v24, 7  ;;  %v1952_v32 = vshrl.u32 %v5498_v25, 16  ;;  %v1955_v45 = vshll.u32 %v5498_v25, 16  ;;  %v2433_v24 = vrot.slane %v6687_v12, 5  ;;  %v2133_v12 = vld [vmem:[#allocation2 + $0x2c] sm:$0x1] }
 0x185   :  { %v1965_v35 = vor.u32 %v1963_v28, %v1962_v26  ;;  %v1966_v36 = vrot.slane %v1962_v26, 4  ;;  %v1970_v37 = vrot.slane %v1968_v63, 7  ;;  %v6697_v25 = vrot.slane %v2262_v17, 4 }
 0x186   :  { %v1949_v40 = vor.u32 %v1947_v33, %v1946_v31  ;;  %v1950_v41 = vrot.slane %v1946_v31, 4  ;;  %v1954_v42 = vrot.slane %v1952_v32, 7  ;;  %v2954_v26 = vor.u32 %v2953_v15, %v2950_v14 }
 0x187   :  { %v2119_v43 = vsel %vm6566_vm6, %v1965_v35, %v2118_v22  ;;  %v2122_v48 = vsel %vm6550_vm0, %v1966_v36, %v2121_v23  ;;  %v1973_v49 = vor.u32 %v1971_v38, %v1970_v37  ;;  %v1974_v51 = vrot.slane %v1970_v37, 4  ;;  %v6693_v22 = vld [vmem:[#allocation2 + $0x4c] sm:$0x1] }
 0x188   :  { %2120 = vst [vmem:[#allocation2 + $0x18] sm:$0xf] %v2119_v43  ;;  %2123 = vst [vmem:[#allocation2 + $0x1c] sm:$0x1] %v2122_v48  ;;  %v2107_v54 = vsel %vm6566_vm6, %v1949_v40, %v2106_v29  ;;  %v2110_v55 = vsel %vm6550_vm0, %v1950_v41, %v2109_v30  ;;  %v1957_v56 = vor.u32 %v1955_v45, %v1954_v42  ;;  %v1958_v57 = vrot.slane %v1954_v42, 4 }
 0x189   :  { %2108 = vst [vmem:[#allocation2 + $0x8] sm:$0xf] %v2107_v54  ;;  %2111 = vst [vmem:[#allocation2 + $0xc] sm:$0x1] %v2110_v55  ;;  %v2125_v58 = vsel %vm6566_vm6, %v1973_v49, %v2124_v34  ;;  %v2128_v59 = vsel %vm6550_vm0, %v1974_v51, %v2127_v39  ;;  %v5352_v23 = vrot.slane %v6685_v11, 9  ;;  %v6707_v34 = vrot.slane %v2265_v19, 5 }
 0x18a   :  { %2126 = vst [vmem:[#allocation2 + $0x20] sm:$0xf] %v2125_v58  ;;  %2129 = vst [vmem:[#allocation2 + $0x24] sm:$0x1] %v2128_v59  ;;  %v2113_v1 = vsel %vm6566_vm6, %v1957_v56, %v2112_v52  ;;  %v2116_v3 = vsel %vm6550_vm0, %v1958_v57, %v2115_v53  ;;  %v6701_v30 = vld [vmem:[#allocation2 + $0x50] sm:$0xe] }
 0x18b   :  { %2114 = vst [vmem:[#allocation2 + $0x10] sm:$0xf] %v2113_v1  ;;  %2117 = vst [vmem:[#allocation2 + $0x14] sm:$0x1] %v2116_v3  ;;  %v6709_v32 = vrot.slane %v2957_v20, 5  ;;  %v6721_v41 = vrot.slane %v2954_v26, 4  ;;  %v6760_v11 = vsel %vm6733_vm10, %v5352_v23, %v2433_v24 }
 0x18c   :  { %v2139_v55 = vld [vmem:[#allocation2 + $0x34] sm:$0x1]  ;;  %v5718_v53 = vld [vmem:[%s8339_s0 + $0x108] ss:$8 sps:$4 sm:$0xff]  }
 0x18f   :  { %v6712_v35 = vld [vmem:[#allocation2 + $0x18] sm:$0xe]  ;;  %v6714_v36 = vld [vmem:[#allocation2 + $0x1c] sm:$0x1] }
 0x190   :  { %v6699_v29 = vld [vmem:[#allocation2 + $0x8] sm:$0xe]  ;;  %v6703_v63 = vld [vmem:[#allocation2 + $0xc] sm:$0x1]  ;;  %v6780_v39 = vld [vmem:[#allocation2 + $0x1c] sm:$0x1] }
 0x191   :  { %v5689_v16 = vld [vmem:[#allocation2 + $0x18] ss:$8 sps:$4 sm:$0xff]   ;;  %v6719_v40 = vld [vmem:[#allocation2 + $0x24] sm:$0x1]  ;;  %v2437_v43 = vrot.slane %v6703_v63, 5  ;;  %v8365_v63 = vrot.slane %v6712_v35, 9 }
 0x192   :  { %v5690_v18 = vld [vmem:[#allocation2 + $0x8] ss:$8 sps:$4 sm:$0xff]   ;;  %2522 = vrot.lane.b32.xlu1 %v5689_v16, %s5781_s27  ;;  %v6716_v37 = vld [vmem:[#allocation2 + $0x20] sm:$0xe]  ;;  %v6728_v49 = vld [vmem:[#allocation2 + $0x24] sm:$0x1] }
 0x193   :  { %2520 = vrot.lane.b32.xlu0 %v5690_v18, %s5781_s27  ;;  %v5691_v28 = vld [vmem:[#allocation2 + $0x10] ss:$8 sps:$4 sm:$0xff]   ;;  %v6726_v48 = vld [vmem:[#allocation2 + $0x20] sm:$0xe]  ;;  %v6745_v0 = vld [vmem:[#allocation2 + $0x24] sm:$0x1] }
 0x194   :  { %v6740_v57 = vld [vmem:[#allocation2 + $0x20] sm:$0xe]  ;;  %v6747_v1 = vld [vmem:[#allocation2 + $0x8] sm:$0xe]  ;;  %v6753_v7 = vld [vmem:[#allocation2 + $0xc] sm:$0x1] }
 0x195   :  { %v6755_v8 = vld [vmem:[#allocation2 + $0x10] sm:$0xe]  ;;  %v6763_v13 = vld [vmem:[#allocation2 + $0x14] sm:$0x1]  ;;  %v2241_v14 = vld [vmem:[#allocation2 + $0x8] sm:$0xf] }
 0x196   :  { %v6770_v23 = vld [vmem:[#allocation2 + $0x10] sm:$0xe] }
 0x197   :  { %2816 = vrot.lane.b32.xlu0 %v5691_v28, %s5785_s22 }
 0x199   :  { %v5558_v38 = vpop.f32.mrb[0].mxu1 }
 0x19a   :  { %v1694_v45 = vmul.f32 %v5558_v38, %v6650_v62  ;;  %v1634_v46 = vpop.f32.mrb[1].mxu1 }
 0x19b   :  { %v1692_v51 = vmul.f32 %v6650_v62, %v1634_v46  ;;  %v5559_v52 = vpop.f32.mrb[2].mxu1  ;;  %v6773_v46 = vld [vmem:[#allocation2 + $0x14] sm:$0x1] }
 0x19c   :  { %v1717_v58 = vadd.f32 %v6657_v2, %v1694_v45  ;;  %v1695_v59 = vmul.f32 %v5559_v52, %v6650_v62  ;;  %v1637_v60 = vpop.f32.mrb[3].mxu1 }
 0x19d   :  { %v1715_v3 = vadd.f32 %v6657_v2, %v1692_v51  ;;  %v1693_v4 = vmul.f32 %v6650_v62, %v1637_v60  ;;  %v2270_v51 = vshrl.u32 %v2241_v14, 16  ;;  %v6775_v60 = vld [vmem:[#allocation2 + $0x18] sm:$0xe] }
 0x19e   :  { %v1733_v9 = vmax.f32 %v1717_v58, 0.0  ;;  %v1718_v10 = vadd.f32 %v6657_v2, %v1695_v59 }
 0x19f   :  { %v1731_v15 = vmax.f32 %v1715_v3, 0.0  ;;  %v1716_v16 = vadd.f32 %v6657_v2, %v1693_v4  ;;  %v2273_v3 = vshll.u32 %v2241_v14, 16  ;;  %v2142_v4 = vld [vmem:[#allocation2 + $0x38] sm:$0xf]  ;;  %v2272_v31 = vrot.slane %v2270_v51, 4 }
 0x1a0   :  { %v5503_v19 = vpack.c.bf16 %v1733_v9, %v1733_v9  ;;  %v1734_v20 = vmax.f32 %v1718_v10, 0.0  ;;  %v2145_v9 = vld [vmem:[#allocation2 + $0x3c] sm:$0x1]  ;;  %v6788_v14 = vld [vmem:[#allocation2 + $0x14] sm:$0x1] }
 0x1a1   :  { %v5501_v24 = vpack.c.bf16 %v1731_v15, %v1731_v15  ;;  %v1732_v38 = vmax.f32 %v1716_v16, 0.0  ;;  %v2130_v16 = vld [vmem:[#allocation2 + $0x28] sm:$0xf]  ;;  %v2275_v26 = vrot.slane %v2273_v3, 5  ;;  %v2541_v3 = vld [vmem:[#allocation2 + $0x18] sm:$0xf] }
 0x1a2   :  { %v1992_v52 = vshrl.u32 %v5503_v19, 16  ;;  %v1995_v58 = vshll.u32 %v5503_v19, 16  ;;  %v5504_v59 = vpack.c.bf16 %v1734_v20, %v1734_v20  ;;  %v2148_v19 = vld [vmem:[#allocation2 + $0x40] sm:$0xf]  ;;  %v2151_v20 = vld [vmem:[#allocation2 + $0x44] sm:$0x1] }
 0x1a3   :  { %v1976_v10 = vshrl.u32 %v5501_v24, 16  ;;  %v1979_v42 = vshll.u32 %v5501_v24, 16  ;;  %v5502_v18 = vpack.c.bf16 %v1732_v38, %v1732_v38  ;;  %v2136_v38 = vld [vmem:[#allocation2 + $0x30] sm:$0xf] }
 0x1a4   :  { %v1994_v15 = vrot.slane %v1992_v52, 7  ;;  %v2000_v17 = vshrl.u32 %v5504_v59, 16  ;;  %v2003_v28 = vshll.u32 %v5504_v59, 16 }
 0x1a5   :  { %v1978_v5 = vrot.slane %v1976_v10, 7  ;;  %v1984_v6 = vshrl.u32 %v5502_v18, 16  ;;  %v1987_v59 = vshll.u32 %v5502_v18, 16  ;;  %v2242_v10 = vld [vmem:[#allocation2 + $0xc] sm:$0x1] }
 0x1a6   :  { %v1997_v33 = vor.u32 %v1995_v58, %v1994_v15  ;;  %v1998_v54 = vrot.slane %v1994_v15, 4  ;;  %v2002_v24 = vrot.slane %v2000_v17, 7  ;;  %v6786_v17 = vld [vmem:[#allocation2 + $0x10] sm:$0xe]  ;;  %v2542_v18 = vld [vmem:[#allocation2 + $0x1c] sm:$0x1] }
 0x1a7   :  { %v1981_v52 = vor.u32 %v1979_v42, %v1978_v5  ;;  %v1982_v56 = vrot.slane %v1978_v5, 4  ;;  %v1986_v61 = vrot.slane %v1984_v6, 7 }
 0x1a8   :  { %v2143_v45 = vsel %vm6566_vm6, %v1997_v33, %v2142_v4  ;;  %v2146_v51 = vsel %vm6550_vm0, %v1998_v54, %v2145_v9  ;;  %v2005_v58 = vor.u32 %v2003_v28, %v2002_v24  ;;  %v2006_v15 = vrot.slane %v2002_v24, 4  ;;  %v2543_v4 = vld [vmem:[#allocation2 + $0x20] sm:$0xf] }
 0x1a9   :  { %2144 = vst [vmem:[#allocation2 + $0x38] sm:$0xf] %v2143_v45  ;;  %2147 = vst [vmem:[#allocation2 + $0x3c] sm:$0x1] %v2146_v51  ;;  %v2131_v42 = vsel %vm6566_vm6, %v1981_v52, %v2130_v16  ;;  %v2134_v5 = vsel %vm6550_vm0, %v1982_v56, %v2133_v12  ;;  %v1989_v6 = vor.u32 %v1987_v59, %v1986_v61  ;;  %v1990_v33 = vrot.slane %v1986_v61, 4 }
 0x1aa   :  { %2132 = vst [vmem:[#allocation2 + $0x28] sm:$0xf] %v2131_v42  ;;  %2135 = vst [vmem:[#allocation2 + $0x2c] sm:$0x1] %v2134_v5  ;;  %v2149_v54 = vsel %vm6566_vm6, %v2005_v58, %v2148_v19  ;;  %v2152_v28 = vsel %vm6550_vm0, %v2006_v15, %v2151_v20  ;;  %v6798_v45 = vld [vmem:[#allocation2 + $0x18] sm:$0xe]  ;;  %v2276_v9 = vor.u32 %v2275_v26, %v2272_v31 }
 0x1ab   :  { %v2279_v24 = vshll.u32 %v2242_v10, 16  ;;  %v2544_v16 = vld [vmem:[#allocation2 + $0x24] sm:$0x1]  ;;  %2150 = vst [vmem:[#allocation2 + $0x40] sm:$0xf] %v2149_v54  ;;  %v2137_v56 = vsel %vm6566_vm6, %v1989_v6, %v2136_v38  ;;  %v2140_v61 = vsel %vm6550_vm0, %v1990_v33, %v2139_v55  ;;  %v2582_v52 = vshrl.u32 %v2541_v3, 16 }
 0x1ac   :  { %2153 = vst [vmem:[#allocation2 + $0x44] sm:$0x1] %v2152_v28  ;;  %v6804_v12 = vld [vmem:[#allocation2 + $0x1c] sm:$0x1]  ;;  %v2585_v19 = vshll.u32 %v2541_v3, 16  ;;  %v2445_v20 = vrot.slane %v6780_v39, 5 }
 0x1ad   :  { %2138 = vst [vmem:[#allocation2 + $0x30] sm:$0xf] %v2137_v56  ;;  %2141 = vst [vmem:[#allocation2 + $0x34] sm:$0x1] %v2140_v61  ;;  %v2591_v59 = vshll.u32 %v2542_v18, 16  ;;  %v2596_v31 = vshrl.u32 %v2543_v4, 16 }
 0x1ae   :  { %v2599_v26 = vshll.u32 %v2543_v4, 16  ;;  %v5392_v10 = vrot.slane %v6786_v17, 9  ;;  %v3024_v51 = vrot.slane %v6788_v14, 5  ;;  %v5393_v38 = vrot.slane %v6798_v45, 9  ;;  %v6810_v15 = vld [vmem:[#allocation2 + $0x20] sm:$0xf] }
 0x1af   :  { %v2605_v58 = vshll.u32 %v2544_v16, 16  ;;  %v3028_v55 = vrot.slane %v6804_v12, 5  ;;  %v6813_v42 = vrot.slane %v2276_v9, 4  ;;  %v6815_v3 = vrot.slane %v2279_v24, 5  ;;  %v6827_v33 = vld [vmem:[#allocation2 + $0x24] sm:$0x1] }
 0x1b0   :  { %v6817_v5 = vrot.slane %v2582_v52, 4  ;;  %v6819_v39 = vrot.slane %v2585_v19, 5  ;;  %v6821_v6 = vrot.slane %v2591_v59, 5  ;;  %v6823_v17 = vrot.slane %v2596_v31, 4  ;;  %v5705_v18 = vld [vmem:[#allocation2] ss:$8 sps:$4 sm:$0xff]  }
 0x1b1   :  { %v6825_v14 = vrot.slane %v2599_v26, 5  ;;  %v8361_v4 = vrot.slane %v6699_v29, 9  ;;  %v8362_v28 = vrot.slane %v6719_v40, 5  ;;  %v8363_v45 = vrot.slane %v6716_v37, 9  ;;  %v5692_v56 = vld [vmem:[#allocation2 + $0x20] ss:$8 sps:$4 sm:$0xff]  }
 0x1b2   :  { %v6845_v24 = vrot.slane %v2605_v58, 5  ;;  %v2878_v16 = vshrl.u32 %v6810_v15, 16  ;;  %2235 = vst.msk [vmem:[#allocation4] sm:$0xff] %vm2234_vm11, %v5705_v18  ;;  %v8364_v29 = vrot.slane %v6714_v36, 5  ;;  %v2706_v37 = vld [vmem:[#allocation2 + $0x38] sm:$0xe]  ;;  %2818 = vrot.lane.b32.xlu1 %v5692_v56, %s5785_s22  ;;  %v2268_v19 = vsel %vm5901_vm2, %v6697_v25, %v6707_v34 }
 0x1b3   :  { %v6835_v54 = vsel %vm6733_vm10, %v8361_v4, %v2437_v43  ;;  %v6843_v9 = vsel %vm6733_vm10, %v8363_v45, %v8362_v28  ;;  %v8366_v52 = vrot.slane %v6693_v22, 5  ;;  %v8367_v36 = vrot.slane %v6691_v21, 9  ;;  %v5694_v59 = vld [vmem:[#allocation2 + $0x38] ss:$8 sps:$4 sm:$0xff]   ;;  %v2996_v31 = vld [vmem:[#allocation2 + $0x28] sm:$0xe] }
 0x1b4   :  { %v6855_v40 = vsel %vm6733_vm10, %v8365_v63, %v8364_v29  ;;  %v5693_v43 = vld [vmem:[#allocation2 + $0x28] ss:$8 sps:$4 sm:$0xff]   ;;  %v5360_v61 = vcombine.low %v6760_v11, %v6835_v54  ;;  %v8368_v26 = vrot.slane %v6728_v49, 5  ;;  %v8369_v58 = vrot.slane %v6726_v48, 9  ;;  %v2997_v48 = vld [vmem:[#allocation2 + $0x2c] sm:$0x1] }
 0x1b5   :  { %v5381_v12 = vcombine.low %v6855_v40, %v6843_v9  ;;  %v6868_v35 = vsel %vm6733_vm10, %v8367_v36, %v8366_v52  ;;  %v8370_v21 = vrot.slane %v6763_v13, 5  ;;  %v8371_v18 = vrot.slane %v6755_v8, 9  ;;  %2524 = vrot.lane.b32.xlu0 %v5693_v43, %s5781_s27  ;;  %v5695_v49 = vld [vmem:[#allocation2 + $0x30] ss:$8 sps:$4 sm:$0xff]   ;;  %v2707_v45 = vld [vmem:[#allocation2 + $0x3c] sm:$0x1] }
 0x1b6   :  { %v6880_v22 = vsel %vm6733_vm10, %v8369_v58, %v8368_v26  ;;  %v2881_v25 = vshll.u32 %v6810_v15, 16  ;;  %v2887_v34 = vshll.u32 %v6827_v33, 16  ;;  %v5395_v28 = vrot.slane %v2996_v31, 9  ;;  %v2708_v31 = vld [vmem:[#allocation2 + $0x40] sm:$0xe]  ;;  %2526 = vrot.lane.b32.xlu1 %v5694_v59, %s5781_s27 }
 0x1b7   :  { %v6888_v4 = vsel %vm6733_vm10, %v8371_v18, %v8370_v21  ;;  %v5378_v56 = vrot.slane %v2706_v37, 9  ;;  %v8372_v29 = vrot.slane %v6745_v0, 5  ;;  %v8373_v13 = vrot.slane %v6740_v57, 9  ;;  %v2709_v26 = vld [vmem:[#allocation2 + $0x44] sm:$0x1] }
 0x1b8   :  { %v8374_v63 = vrot.slane %v6773_v46, 5  ;;  %v8375_v52 = vrot.slane %v6770_v23, 9  ;;  %v3036_v36 = vrot.slane %v2997_v48, 5  ;;  %v2752_v37 = vrot.slane %v2707_v45, 5  ;;  %v5696_v23 = vld [vmem:[#allocation2 + $0x40] ss:$8 sps:$4 sm:$0xff]  }
 0x1b9   :  { %v6899_v8 = vsel %vm6733_vm10, %v8373_v13, %v8372_v29  ;;  %v8376_v0 = vrot.slane %v6753_v7, 5  ;;  %v8377_v57 = vrot.slane %v6747_v1, 9  ;;  %v6919_v46 = vsel %vm6733_vm10, %v5392_v10, %v3024_v51  ;;  %v2406_v48 = vld [vmem:[#allocation2 + $0x28] sm:$0xe]  ;;  %v2407_v29 = vld [vmem:[#allocation2 + $0x2c] sm:$0x1]  ;;  %2820 = vrot.lane.b32.xlu0 %v5695_v49, %s5785_s22 }
 0x1ba   :  { %v6907_v43 = vsel %vm6733_vm10, %v8375_v52, %v8374_v63  ;;  %v5379_v21 = vrot.slane %v2708_v31, 9  ;;  %v2756_v18 = vrot.slane %v2709_v26, 5  ;;  %v8378_v1 = vrot.slane %v6775_v60, 9  ;;  %v3002_v10 = vld [vmem:[#allocation2 + $0x40] sm:$0xe]  ;;  %2822 = vrot.lane.b32.xlu1 %v5696_v23, %s5785_s22 }
 0x1bb   :  { %v6915_v58 = vsel %vm6733_vm10, %v8377_v57, %v8376_v0  ;;  %v5357_v13 = vrot.slane %v2406_v48, 9  ;;  %v2453_v63 = vrot.slane %v2407_v29, 5  ;;  %v3003_v51 = vld [vmem:[#allocation2 + $0x44] sm:$0x1]  ;;  %v6934_v52 = vsel %vm6733_vm10, %v5393_v38, %v3028_v55  ;;  %v2409_v0 = vld [vmem:[#allocation2 + $0x34] sm:$0x1] }
 0x1bc   :  { %v5380_v7 = vcombine.low %v6915_v58, %v6888_v4  ;;  %v6928_v45 = vsel %vm6733_vm10, %v8378_v1, %v2445_v20  ;;  %v5398_v31 = vrot.slane %v3002_v10, 9  ;;  %v3048_v26 = vrot.slane %v3003_v51, 5  ;;  %v2408_v20 = vld [vmem:[#allocation2 + $0x30] sm:$0xe]  ;;  %v2410_v55 = vld [vmem:[#allocation2 + $0x38] sm:$0xe] }
 0x1bd   :  { %v2282_v57 = vsel %vm5901_vm2, %v6813_v42, %v6815_v3  ;;  %v3037_v48 = vsel %vm6733_vm10, %v5395_v28, %v3036_v36  ;;  %v2753_v38 = vsel %vm6733_vm10, %v5378_v56, %v2752_v37  ;;  %v2411_v49 = vld [vmem:[#allocation2 + $0x3c] sm:$0x1]  ;;  %v5358_v29 = vrot.slane %v2408_v20, 9  ;;  %v2702_v3 = vld [vmem:[#allocation2 + $0x28] sm:$0xe]  ;;  %2475 = vrot.lane.b32.xlu0 %v5360_v61, %s5778_s18 }
 0x1be   :  { %v2457_v1 = vrot.slane %v2409_v0, 5  ;;  %v2757_v10 = vsel %vm6733_vm10, %v5379_v21, %v2756_v18  ;;  %v2454_v51 = vsel %vm6733_vm10, %v5357_v13, %v2453_v63  ;;  %v5359_v60 = vrot.slane %v2410_v55, 9  ;;  %v2703_v59 = vld [vmem:[#allocation2 + $0x2c] sm:$0x1]  ;;  %v2704_v56 = vld [vmem:[#allocation2 + $0x30] sm:$0xe]  ;;  %2772 = vrot.lane.b32.xlu1 %v5381_v12, %s5786_s24 }
 0x1bf   :  { %v2461_v42 = vrot.slane %v2411_v49, 5  ;;  %v6954_v28 = vsel %vm6733_vm10, %v5398_v31, %v3048_v26  ;;  %v2705_v36 = vld [vmem:[#allocation2 + $0x34] sm:$0x1]  ;;  %v5376_v37 = vrot.slane %v2702_v3, 9  ;;  %v2744_v20 = vrot.slane %v2703_v59, 5  ;;  %v5562_v26 = vpop.f32.mrb[4].mxu1 }
 0x1c0   :  { %v6956_v0 = vcombine.low %v2268_v19, %v2282_v57  ;;  %v5377_v23 = vrot.slane %v2704_v56, 9  ;;  %v2748_v21 = vrot.slane %v2705_v36, 5  ;;  %v2998_v18 = vld [vmem:[#allocation2 + $0x30] sm:$0xe]  ;;  %v2999_v13 = vld [vmem:[#allocation2 + $0x34] sm:$0x1]  ;;  %v2588_v63 = vor.u32 %v6819_v39, %v6817_v5 }
 0x1c1   :  { %v2602_v31 = vor.u32 %v6825_v14, %v6823_v17  ;;  %v5401_v59 = vcombine.low %v6880_v22, %v3037_v48  ;;  %v5383_v19 = vcombine.low %v2753_v38, %v2757_v10  ;;  %v5362_v57 = vcombine.low %v6899_v8, %v2454_v51  ;;  %v3000_v55 = vld [vmem:[#allocation2 + $0x38] sm:$0xe]  ;;  %v3001_v49 = vld [vmem:[#allocation2 + $0x3c] sm:$0x1]  ;;  %v1650_v61 = vpop.f32.mrb[5].mxu1 }
 0x1c2   :  { %v5396_v11 = vrot.slane %v2998_v18, 9  ;;  %v1698_v54 = vmul.f32 %v5562_v26, %v6650_v62  ;;  %v5403_v5 = vcombine.low %v6954_v28, %v6868_v35  ;;  %v6977_v39 = vsel %vm6733_vm10, %v5358_v29, %v2457_v1  ;;  %v5563_v22 = vpop.f32.mrb[6].mxu1 }
 0x1c3   :  { %v3040_v17 = vrot.slane %v2999_v13, 5  ;;  %v1696_v14 = vmul.f32 %v6650_v62, %v1650_v61  ;;  %v6982_v8 = vsel %vm6733_vm10, %v5377_v23, %v2748_v21  ;;  %v5397_v48 = vrot.slane %v3000_v55, 9  ;;  %v1653_v12 = vpop.f32.mrb[7].mxu1  ;;  %3068 = vrot.lane.b32.xlu0 %v5401_v59, %s5787_s23  ;;  %2776 = vrot.lane.b32.xlu1 %v5383_v19, %s5786_s24 }
 0x1c4   :  { %v3044_v38 = vrot.slane %v3001_v49, 5  ;;  %v1721_v9 = vadd.f32 %v6657_v2, %v1698_v54  ;;  %v1699_v40 = vmul.f32 %v5563_v22, %v6650_v62  ;;  %v6989_v35 = vsel %vm6733_vm10, %v5359_v60, %v2461_v42  ;;  %v2169_v54 = vld [vmem:[#allocation2 + $0x6c] sm:$0x1] }
 0x1c5   :  { %v6991_v29 = vrot.slane %v2602_v31, 4  ;;  %v1719_v1 = vadd.f32 %v6657_v2, %v1696_v14  ;;  %v1697_v10 = vmul.f32 %v6650_v62, %v1653_v12  ;;  %v6997_v51 = vsel %vm6733_vm10, %v5376_v37, %v2744_v20  ;;  %v2839_v62 = vld [vmem:[#allocation2 + $0x28] sm:$0xf]  ;;  %v2172_v12 = vld [vmem:[#allocation2 + $0x70] sm:$0xf] }
 0x1c6   :  { %v7001_v3 = vsel %vm6733_vm10, %v5396_v11, %v3040_v17  ;;  %v1737_v28 = vmax.f32 %v1721_v9, 0.0  ;;  %v1722_v56 = vadd.f32 %v6657_v2, %v1699_v40  ;;  %v5363_v60 = vcombine.low %v6977_v39, %v6989_v35  ;;  %v2166_v11 = vld [vmem:[#allocation2 + $0x68] sm:$0xf]  ;;  %v2154_v9 = vld [vmem:[#allocation2 + $0x58] sm:$0xf] }
 0x1c7   :  { %v5382_v42 = vcombine.low %v6997_v51, %v6982_v8  ;;  %v1735_v36 = vmax.f32 %v1719_v1, 0.0  ;;  %v1720_v37 = vadd.f32 %v6657_v2, %v1697_v10  ;;  %v7012_v20 = vsel %vm6733_vm10, %v5397_v48, %v3044_v38  ;;  %2479 = vrot.lane.b32.xlu0 %v5362_v57, %s5778_s18  ;;  %3072 = vrot.lane.b32.xlu1 %v5403_v5, %s5787_s23  ;;  %v2157_v40 = vld [vmem:[#allocation2 + $0x5c] sm:$0x1]  ;;  %v2175_v1 = vld [vmem:[#allocation2 + $0x74] sm:$0x1] }
 0x1c8   :  { %v7014_v23 = vrot.slane %v2588_v63, 4  ;;  %v5507_v21 = vpack.c.bf16 %v1737_v28, %v1737_v28  ;;  %v1738_v18 = vmax.f32 %v1722_v56, 0.0  ;;  %v5402_v13 = vcombine.low %v7001_v3, %v7012_v20 }
 0x1c9   :  { %v2608_v31 = vsel %vm5901_vm2, %v6991_v29, %v6845_v24  ;;  %v5505_v26 = vpack.c.bf16 %v1735_v36, %v1735_v36  ;;  %v1736_v2 = vmax.f32 %v1720_v37, 0.0  ;;  %v2892_v59 = vshrl.u32 %v2839_v62, 16  ;;  %v2160_v36 = vld [vmem:[#allocation2 + $0x60] sm:$0xf]  ;;  %v2163_v37 = vld [vmem:[#allocation2 + $0x64] sm:$0x1] }
 0x1ca   :  { %v2895_v19 = vshll.u32 %v2839_v62, 16  ;;  %v2024_v55 = vshrl.u32 %v5507_v21, 16  ;;  %v5508_v49 = vpack.c.bf16 %v1738_v18, %v1738_v18  ;;  %v7026_v63 = vrot.slane %v2878_v16, 4  ;;  %v2247_v18 = vld [vmem:[#allocation2 + $0x20] sm:$0xf] }
 0x1cb   :  { %v7030_v57 = vrot.slane %v2881_v25, 5  ;;  %v2008_v61 = vshrl.u32 %v5505_v26, 16  ;;  %v5506_v17 = vpack.c.bf16 %v1736_v2, %v1736_v2  ;;  %v7034_v14 = vrot.slane %v2887_v34, 5  ;;  %2770 = vrot.lane.b32.xlu0 %v5380_v7, %s5786_s24 }
 0x1cc   :  { %v2894_v22 = vrot.slane %v2892_v59, 4  ;;  %v2026_v48 = vrot.slane %v2024_v55, 7  ;;  %v2027_v38 = vshll.u32 %v5507_v21, 16  ;;  %v2011_v5 = vshll.u32 %v5505_v26, 16  ;;  %v2840_v26 = vld [vmem:[#allocation2 + $0x2c] sm:$0x1] }
 0x1cd   :  { %v2032_v16 = vshrl.u32 %v5508_v49, 16  ;;  %v2010_v15 = vrot.slane %v2008_v61, 7  ;;  %v2035_v25 = vshll.u32 %v5508_v49, 16  ;;  %v2016_v10 = vshrl.u32 %v5506_v17, 16  ;;  %v2248_v59 = vld [vmem:[#allocation2 + $0x24] sm:$0x1] }
 0x1ce   :  { %v2897_v33 = vrot.slane %v2895_v19, 5  ;;  %v2029_v34 = vor.u32 %v2027_v38, %v2026_v48  ;;  %v2030_v28 = vrot.slane %v2026_v48, 4  ;;  %v2019_v62 = vshll.u32 %v5506_v17, 16  ;;  %v2249_v55 = vld [vmem:[#allocation2 + $0x28] sm:$0xf] }
 0x1cf   :  { %v2034_v56 = vrot.slane %v2032_v16, 7  ;;  %v8379_v21 = vcombine.low %v6907_v43, %v6928_v45  ;;  %v2013_v4 = vor.u32 %v2011_v5, %v2010_v15  ;;  %v2014_v58 = vrot.slane %v2010_v15, 4  ;;  %v2250_v45 = vld [vmem:[#allocation2 + $0x2c] sm:$0x1]  ;;  %v7052_v48 = vld [vmem:[#allocation2 + $0x8] sm:$0xf] }
 0x1d0   :  { %v2018_v7 = vrot.slane %v2016_v10, 7  ;;  %v2898_v2 = vor.u32 %v2897_v33, %v2894_v22  ;;  %v2167_v19 = vsel %vm6566_vm6, %v2029_v34, %v2166_v11  ;;  %v2170_v49 = vsel %vm6550_vm0, %v2030_v28, %v2169_v54  ;;  %v5706_v5 = vld [vmem:[#allocation2 + $0x20] ss:$8 sps:$4 sm:$0xff]   ;;  %v5709_v16 = vld [vmem:[#allocation2 + $0x10] ss:$8 sps:$4 sm:$0xff]  }
 0x1d1   :  { %2477 = vrot.lane.b32.xlu1 %v8379_v21, %s5778_s18  ;;  %v2037_v61 = vor.u32 %v2035_v25, %v2034_v56  ;;  %v2038_v17 = vrot.slane %v2034_v56, 4  ;;  %v8380_v43 = vcombine.low %v6919_v46, %v6934_v52  ;;  %2168 = vst [vmem:[#allocation2 + $0x68] sm:$0xf] %v2167_v19  ;;  %2171 = vst [vmem:[#allocation2 + $0x6c] sm:$0x1] %v2170_v49  ;;  %v2321_v35 = vshll.u32 %v2248_v59, 16 }
 0x1d2   :  { %v2155_v22 = vsel %vm6566_vm6, %v2013_v4, %v2154_v9  ;;  %v2158_v11 = vsel %vm6550_vm0, %v2014_v58, %v2157_v40  ;;  %v2021_v38 = vor.u32 %v2019_v62, %v2018_v7  ;;  %v2022_v54 = vrot.slane %v2018_v7, 4  ;;  %v2538_v10 = vld [vmem:[#allocation2 + $0xc] sm:$0x1]  ;;  %2237 = vst.msk [vmem:[#allocation4 + $0x10] sm:$0xff] %vm2234_vm11, %v5706_v5  ;;  %2236 = vst.msk [vmem:[#allocation4 + $0x8] sm:$0xff] %vm2234_vm11, %v5709_v16 }
 0x1d3   :  { %3066 = vrot.lane.b32.xlu0 %v8380_v43, %s5787_s23  ;;  %2156 = vst [vmem:[#allocation2 + $0x58] sm:$0xf] %v2155_v22  ;;  %2159 = vst [vmem:[#allocation2 + $0x5c] sm:$0x1] %v2158_v11  ;;  %v2173_v46 = vsel %vm6566_vm6, %v2037_v61, %v2172_v12  ;;  %v2176_v52 = vsel %vm6550_vm0, %v2038_v17, %v2175_v1  ;;  %v2884_v9 = vor.u32 %v7030_v57, %v7026_v63  ;;  %v5711_v57 = vld [vmem:[#allocation2 + $0x30] ss:$8 sps:$4 sm:$0xff]  }
 0x1d4   :  { %v2901_v40 = vshll.u32 %v2840_v26, 16  ;;  %2174 = vst [vmem:[#allocation2 + $0x70] sm:$0xf] %v2173_v46  ;;  %2177 = vst [vmem:[#allocation2 + $0x74] sm:$0x1] %v2176_v52  ;;  %v2161_v15 = vsel %vm6566_vm6, %v2021_v38, %v2160_v36  ;;  %v2164_v25 = vsel %vm6550_vm0, %v2022_v54, %v2163_v37  ;;  %v2312_v12 = vshrl.u32 %v2247_v18, 16 }
 0x1d5   :  { %2481 = vrot.lane.b32.xlu1 %v5363_v60, %s5778_s18  ;;  %v2315_v1 = vshll.u32 %v2247_v18, 16  ;;  %2162 = vst [vmem:[#allocation2 + $0x60] sm:$0xf] %v2161_v15  ;;  %2165 = vst [vmem:[#allocation2 + $0x64] sm:$0x1] %v2164_v25  ;;  %v2899_v39 = vrot.slane %v2898_v2, 4  ;;  %v2594_v3 = vsel %vm5901_vm2, %v7014_v23, %v6821_v6  ;;  %v2960_v6 = vsel %vm5901_vm2, %v6721_v41, %v6709_v32 }
 0x1d6   :  { %v2326_v60 = vshrl.u32 %v2249_v55, 16  ;;  %v2329_v63 = vshll.u32 %v2249_v55, 16  ;;  %v2314_v33 = vrot.slane %v2312_v12, 4  ;;  %v2335_v28 = vshll.u32 %v2250_v45, 16  ;;  %v2539_v56 = vld [vmem:[#allocation2 + $0x10] sm:$0xf] }
 0x1d7   :  { %2774 = vrot.lane.b32.xlu0 %v5382_v42, %s5786_s24  ;;  %v2317_v34 = vrot.slane %v2315_v1, 5  ;;  %v2554_v62 = vshrl.u32 %v7052_v48, 16  ;;  %v2885_v36 = vrot.slane %v2884_v9, 4  ;;  %v2903_v37 = vrot.slane %v2901_v40, 5  ;;  %v2540_v4 = vld [vmem:[#allocation2 + $0x14] sm:$0x1] }
 0x1d8   :  { %v2328_v21 = vrot.slane %v2326_v60, 4  ;;  %v2331_v18 = vrot.slane %v2329_v63, 5  ;;  %2238 = vst.msk [vmem:[#allocation4 + $0x18] sm:$0xff] %vm2234_vm11, %v5711_v57  ;;  %v2323_v51 = vrot.slane %v2321_v35, 5  ;;  %v2337_v42 = vrot.slane %v2335_v28, 5 }
 0x1d9   :  { %v2318_v8 = vor.u32 %v2317_v34, %v2314_v33  ;;  %v2556_v58 = vrot.slane %v2554_v62, 4  ;;  %v2904_v7 = vsel %vm5901_vm2, %v2899_v39, %v2903_v37  ;;  %v2557_v2 = vshll.u32 %v7052_v48, 16  ;;  %v2549_v55 = vld [vmem:[#allocation2 + $0x38] sm:$0xf]  ;;  %v2550_v43 = vld [vmem:[#allocation2 + $0x3c] sm:$0x1] }
 0x1da   :  { %v2332_v26 = vor.u32 %v2331_v18, %v2328_v21  ;;  %v2563_v59 = vshll.u32 %v2538_v10, 16  ;;  %v2568_v49 = vshrl.u32 %v2539_v56, 16  ;;  %v2571_v61 = vshll.u32 %v2539_v56, 16  ;;  %v2551_v54 = vld [vmem:[#allocation2 + $0x40] sm:$0xf] }
 0x1db   :  { %3070 = vrot.lane.b32.xlu0 %v5402_v13, %s5787_s23  ;;  %v2319_v19 = vrot.slane %v2318_v8, 4  ;;  %v2577_v17 = vshll.u32 %v2540_v4, 16  ;;  %v5697_v45 = vld [vmem:[#allocation2 + $0x68] ss:$8 sps:$4 sm:$0xff]   ;;  %v2890_v20 = vsel %vm5901_vm2, %v2885_v36, %v7034_v14  ;;  %v2559_v22 = vrot.slane %v2557_v2, 5 }
 0x1dc   :  { %v2333_v13 = vrot.slane %v2332_v26, 4  ;;  %v5369_v48 = vcombine.low %v2594_v3, %v2608_v31  ;;  %v5389_v11 = vcombine.low %v2890_v20, %v2904_v7  ;;  %3399 = vrot.lane.b32.xlu1 %v5697_v45, %s5781_s27  ;;  %v2565_v29 = vrot.slane %v2563_v59, 5  ;;  %v2552_v14 = vld [vmem:[#allocation2 + $0x44] sm:$0x1]  ;;  %v2833_v5 = vld [vmem:[#allocation2 + $0x10] sm:$0xf] }
 0x1dd   :  { %v2324_v38 = vsel %vm5901_vm2, %v2319_v19, %v2323_v51  ;;  %v2560_v24 = vor.u32 %v2559_v22, %v2556_v58  ;;  %v2570_v31 = vrot.slane %v2568_v49, 4  ;;  %v2573_v52 = vrot.slane %v2571_v61, 5  ;;  %v2834_v16 = vld [vmem:[#allocation2 + $0x14] sm:$0x1]  ;;  %v5698_v15 = vld [vmem:[#allocation2 + $0x58] ss:$8 sps:$4 sm:$0xff]  }
 0x1de   :  { %v2338_v23 = vsel %vm5901_vm2, %v2333_v13, %v2337_v42  ;;  %v2579_v9 = vrot.slane %v2577_v17, 5  ;;  %v2638_v40 = vshrl.u32 %v2549_v55, 16  ;;  %v2641_v12 = vshll.u32 %v2549_v55, 16  ;;  %v2835_v63 = vld [vmem:[#allocation2 + $0x18] sm:$0xf]  ;;  %v5707_v58 = vld [vmem:[%s8343_s4] sm:$0xff]  }
 0x1df   :  { %2379 = vrot.lane.b32.xlu0 %v6956_v0, %s5779_s29  ;;  %v7110_v46 = vcombine.low %v2324_v38, %v2338_v23  ;;  %v2561_v25 = vrot.slane %v2560_v24, 4  ;;  %v2647_v1 = vshll.u32 %v2550_v43, 16  ;;  %v2652_v10 = vshrl.u32 %v2551_v54, 16  ;;  %v2836_v37 = vld [vmem:[#allocation2 + $0x1c] sm:$0x1]  ;;  %v5566_v43 = vpop.f32.mrb[8].mxu1  ;;  %5568 = vmatprep.subr.bf16.mxu1 %v5707_v58 }
 0x1e0   :  { %v2574_v0 = vor.u32 %v2573_v52, %v2570_v31  ;;  %v2640_v39 = vrot.slane %v2638_v40, 4  ;;  %v2655_v35 = vshll.u32 %v2551_v54, 16  ;;  %v2661_v60 = vshll.u32 %v2552_v14, 16  ;;  %2679 = vrot.lane.b32.xlu1 %v5369_v48, %s5783_s17  ;;  %v5699_v18 = vld [vmem:[#allocation2 + $0x60] ss:$8 sps:$4 sm:$0xff]   ;;  %v1666_v38 = vpop.f32.mrb[9].mxu1  ;;  %5569 = vmatpush3.bf16.msra.mxu1 %v5707_v58 }
 0x1e1   :  { %v2566_v57 = vsel %vm5901_vm2, %v2561_v25, %v2565_v29  ;;  %v2643_v33 = vrot.slane %v2641_v12, 5  ;;  %v2649_v34 = vrot.slane %v2647_v1, 5  ;;  %v2654_v28 = vrot.slane %v2652_v10, 4  ;;  %v2845_v55 = vld [vmem:[#allocation2 + $0x40] sm:$0xf]  ;;  %v5567_v29 = vpop.f32.mrb[10].mxu1 }
 0x1e2   :  { %v2575_v56 = vrot.slane %v2574_v0, 4  ;;  %v2657_v62 = vrot.slane %v2655_v35, 5  ;;  %v2663_v36 = vrot.slane %v2661_v60, 5  ;;  %v2850_v21 = vshrl.u32 %v2833_v5, 16  ;;  %v5726_v22 = vld [vmem:[%s8341_s2] ss:$0 sm:$0xff] }
 0x1e3   :  { %3397 = vrot.lane.b32.xlu0 %v5698_v15, %s5781_s27  ;;  %v2644_v4 = vor.u32 %v2643_v33, %v2640_v39  ;;  %v2853_v8 = vshll.u32 %v2833_v5, 16  ;;  %v2859_v51 = vshll.u32 %v2834_v16, 16  ;;  %v2864_v42 = vshrl.u32 %v2835_v63, 16  ;;  %v5727_v52 = vld [vmem:[%s8342_s3] ss:$0 sm:$0xff]  ;;  %v1669_v16 = vpop.f32.mrb[11].mxu1 }
 0x1e4   :  { %v2580_v7 = vsel %vm5901_vm2, %v2575_v56, %v2579_v9  ;;  %v2658_v26 = vor.u32 %v2657_v62, %v2654_v28  ;;  %v2852_v2 = vrot.slane %v2850_v21, 4  ;;  %v2867_v59 = vshll.u32 %v2835_v63, 16  ;;  %2975 = vrot.lane.b32.xlu1 %v5389_v11, %s5788_s19  ;;  %v2846_v12 = vld [vmem:[#allocation2 + $0x44] sm:$0x1]  ;;  %v7138_v33 = vld [vmem:[#allocation2 + $0x28] sm:$0xf] }
 0x1e5   :  { %v5368_v19 = vcombine.low %v2566_v57, %v2580_v7  ;;  %v2645_v49 = vrot.slane %v2644_v4, 4  ;;  %v2855_v61 = vrot.slane %v2853_v8, 5  ;;  %v2861_v17 = vrot.slane %v2859_v51, 5 }
 0x1e6   :  { %v2659_v45 = vrot.slane %v2658_v26, 4  ;;  %v2866_v3 = vrot.slane %v2864_v42, 4  ;;  %v2869_v20 = vrot.slane %v2867_v59, 5  ;;  %v2873_v13 = vshll.u32 %v2836_v37, 16  ;;  %v2193_v59 = vld [vmem:[#allocation2 + $0x8c] sm:$0x1] }
 0x1e7   :  { %3690 = vrot.lane.b32.xlu0 %v5699_v18, %s5785_s22  ;;  %v1702_v48 = vmul.f32 %v5726_v22, %v5566_v43  ;;  %v2650_v11 = vsel %vm5901_vm2, %v2645_v49, %v2649_v34  ;;  %v2856_v54 = vor.u32 %v2855_v61, %v2852_v2  ;;  %v2934_v23 = vshrl.u32 %v2845_v55, 16  ;;  %v2190_v2 = vld [vmem:[#allocation2 + $0x88] sm:$0xf]  ;;  %v2178_v43 = vld [vmem:[#allocation2 + $0x78] sm:$0xf] }
 0x1e8   :  { %v1700_v24 = vmul.f32 %v5726_v22, %v1666_v38  ;;  %v2664_v31 = vsel %vm5901_vm2, %v2659_v45, %v2663_v36  ;;  %v2870_v14 = vor.u32 %v2869_v20, %v2866_v3  ;;  %v2875_v5 = vrot.slane %v2873_v13, 5  ;;  %2383 = vrot.lane.b32.xlu1 %v7110_v46, %s5779_s29 }
 0x1e9   :  { %v1725_v9 = vadd.f32 %v5727_v52, %v1702_v48  ;;  %v1703_v40 = vmul.f32 %v5726_v22, %v5567_v29  ;;  %v5371_v15 = vcombine.low %v2650_v11, %v2664_v31  ;;  %v2857_v25 = vrot.slane %v2856_v54, 4  ;;  %v2196_v29 = vld [vmem:[#allocation2 + $0x90] sm:$0xf]  ;;  %v2199_v31 = vld [vmem:[#allocation2 + $0x94] sm:$0x1] }
 0x1ea   :  { %v1723_v1 = vadd.f32 %v5727_v52, %v1700_v24  ;;  %v1701_v10 = vmul.f32 %v5726_v22, %v1669_v16  ;;  %v2871_v0 = vrot.slane %v2870_v14, 4  ;;  %v2936_v39 = vrot.slane %v2934_v23, 4  ;;  %v2181_v22 = vld [vmem:[#allocation2 + $0x7c] sm:$0x1] }
 0x1eb   :  { %2677 = vrot.lane.b32.xlu0 %v5368_v19, %s5783_s17  ;;  %v1741_v35 = vmax.f32 %v1725_v9, 0.0  ;;  %v1726_v60 = vadd.f32 %v5727_v52, %v1703_v40  ;;  %v2862_v63 = vsel %vm5901_vm2, %v2857_v25, %v2861_v17  ;;  %v2937_v57 = vshll.u32 %v2845_v55, 16  ;;  %v2184_v40 = vld [vmem:[#allocation2 + $0x80] sm:$0xf] }
 0x1ec   :  { %v1739_v34 = vmax.f32 %v1723_v1, 0.0  ;;  %v1724_v28 = vadd.f32 %v5727_v52, %v1701_v10  ;;  %v2876_v46 = vsel %vm5901_vm2, %v2871_v0, %v2875_v5  ;;  %v2943_v56 = vshll.u32 %v2846_v12, 16  ;;  %2683 = vrot.lane.b32.xlu1 %v5371_v15, %s5783_s17  ;;  %v2546_v15 = vld [vmem:[#allocation2 + $0x2c] sm:$0x1]  ;;  %v2187_v0 = vld [vmem:[#allocation2 + $0x84] sm:$0x1] }
 0x1ed   :  { %v5511_v62 = vpack.c.bf16 %v1741_v35, %v1741_v35  ;;  %v1742_v36 = vmax.f32 %v1726_v60, 0.0  ;;  %v5388_v37 = vcombine.low %v2862_v63, %v2876_v46  ;;  %v2939_v21 = vrot.slane %v2937_v57, 5  ;;  %v2548_v60 = vld [vmem:[#allocation2 + $0x34] sm:$0x1]  ;;  %v2243_v63 = vld [vmem:[#allocation2 + $0x10] sm:$0xf] }
 0x1ee   :  { %v5509_v18 = vpack.c.bf16 %v1739_v34, %v1739_v34  ;;  %v1740_v4 = vmax.f32 %v1724_v28, 0.0  ;;  %v2945_v8 = vrot.slane %v2943_v56, 5  ;;  %v2610_v51 = vshrl.u32 %v7138_v33, 16  ;;  %v2244_v46 = vld [vmem:[#allocation2 + $0x14] sm:$0x1] }
 0x1ef   :  { %v2056_v42 = vshrl.u32 %v5511_v62, 16  ;;  %v2059_v58 = vshll.u32 %v5511_v62, 16  ;;  %v5512_v7 = vpack.c.bf16 %v1742_v36, %v1742_v36  ;;  %2973 = vrot.lane.b32.xlu0 %v5388_v37, %s5788_s19  ;;  %v2940_v26 = vor.u32 %v2939_v21, %v2936_v39  ;;  %v2547_v39 = vld [vmem:[#allocation2 + $0x30] sm:$0xf]  ;;  %v2245_v21 = vld [vmem:[#allocation2 + $0x18] sm:$0xf] }
 0x1f0   :  { %v2040_v55 = vshrl.u32 %v5509_v18, 16  ;;  %v2043_v19 = vshll.u32 %v5509_v18, 16  ;;  %v5510_v49 = vpack.c.bf16 %v1740_v4, %v1740_v4  ;;  %v7145_v61 = vrot.slane %v2610_v51, 4  ;;  %v2246_v51 = vld [vmem:[#allocation2 + $0x1c] sm:$0x1] }
 0x1f1   :  { %v2058_v17 = vrot.slane %v2056_v42, 7  ;;  %v2064_v45 = vshrl.u32 %v5512_v7, 16  ;;  %v2067_v3 = vshll.u32 %v5512_v7, 16  ;;  %v2941_v20 = vrot.slane %v2940_v26, 4 }
 0x1f2   :  { %v2042_v13 = vrot.slane %v2040_v55, 7  ;;  %v2048_v48 = vshrl.u32 %v5510_v49, 16  ;;  %v2051_v38 = vshll.u32 %v5510_v49, 16  ;;  %v2613_v11 = vshll.u32 %v7138_v33, 16 }
 0x1f3   :  { %v2061_v54 = vor.u32 %v2059_v58, %v2058_v17  ;;  %v2062_v23 = vrot.slane %v2058_v17, 4  ;;  %v2066_v24 = vrot.slane %v2064_v45, 7  ;;  %v2946_v14 = vsel %vm5901_vm2, %v2941_v20, %v2945_v8  ;;  %v5708_v58 = vld [vmem:[%s8343_s4 + $0x8] sm:$0xff]  }
 0x1f4   :  { %v2045_v5 = vor.u32 %v2043_v19, %v2042_v13  ;;  %v2046_v52 = vrot.slane %v2042_v13, 4  ;;  %v2050_v9 = vrot.slane %v2048_v48, 7  ;;  %v5391_v16 = vcombine.low %v2946_v14, %v2960_v6  ;;  %5570 = vmatprep.subr.bf16.mxu1 %v5708_v58  ;;  %v2843_v13 = vld [vmem:[#allocation2 + $0x38] sm:$0xf]  ;;  %v2251_v14 = vld [vmem:[#allocation2 + $0x30] sm:$0xf] }
 0x1f5   :  { %v2191_v25 = vsel %vm6566_vm6, %v2061_v54, %v2190_v2  ;;  %v2194_v12 = vsel %vm6550_vm0, %v2062_v23, %v2193_v59  ;;  %v2069_v1 = vor.u32 %v2067_v3, %v2066_v24  ;;  %v2070_v10 = vrot.slane %v2066_v24, 4  ;;  %v2841_v59 = vld [vmem:[#allocation2 + $0x30] sm:$0xf]  ;;  %5571 = vmatpush3.bf16.msra.mxu1 %v5708_v58 }
 0x1f6   :  { %2192 = vst [vmem:[#allocation2 + $0x88] sm:$0xf] %v2191_v25  ;;  %2195 = vst [vmem:[#allocation2 + $0x8c] sm:$0x1] %v2194_v12  ;;  %v2179_v35 = vsel %vm6566_vm6, %v2045_v5, %v2178_v43  ;;  %v2182_v32 = vsel %vm6550_vm0, %v2046_v52, %v2181_v22  ;;  %v2053_v41 = vor.u32 %v2051_v38, %v2050_v9  ;;  %v2054_v6 = vrot.slane %v2050_v9, 4 }
 0x1f7   :  { %2979 = vrot.lane.b32.xlu1 %v5391_v16, %s5788_s19  ;;  %2180 = vst [vmem:[#allocation2 + $0x78] sm:$0xf] %v2179_v35  ;;  %2183 = vst [vmem:[#allocation2 + $0x7c] sm:$0x1] %v2182_v32  ;;  %v2197_v57 = vsel %vm6566_vm6, %v2069_v1, %v2196_v29  ;;  %v2200_v33 = vsel %vm6550_vm0, %v2070_v10, %v2199_v31  ;;  %v2615_v34 = vrot.slane %v2613_v11, 5  ;;  %v2619_v28 = vshll.u32 %v2546_v15, 16 }
 0x1f8   :  { %2198 = vst [vmem:[#allocation2 + $0x90] sm:$0xf] %v2197_v57  ;;  %2201 = vst [vmem:[#allocation2 + $0x94] sm:$0x1] %v2200_v33  ;;  %v2185_v56 = vsel %vm6566_vm6, %v2053_v41, %v2184_v40  ;;  %v2188_v62 = vsel %vm6550_vm0, %v2054_v6, %v2187_v0  ;;  %v2624_v36 = vshrl.u32 %v2547_v39, 16  ;;  %v2627_v37 = vshll.u32 %v2547_v39, 16 }
 0x1f9   :  { %2186 = vst [vmem:[#allocation2 + $0x80] sm:$0xf] %v2185_v56  ;;  %2189 = vst [vmem:[#allocation2 + $0x84] sm:$0x1] %v2188_v62  ;;  %v2616_v18 = vor.u32 %v2615_v34, %v7145_v61  ;;  %v2621_v4 = vrot.slane %v2619_v28, 5  ;;  %v2633_v8 = vshll.u32 %v2548_v60, 16 }
 0x1fa   :  { %v2284_v42 = vshrl.u32 %v2243_v63, 16  ;;  %v2626_v50 = vrot.slane %v2624_v36, 4  ;;  %v2629_v7 = vrot.slane %v2627_v37, 5  ;;  %v2287_v26 = vshll.u32 %v2243_v63, 16  ;;  %v2842_v43 = vld [vmem:[#allocation2 + $0x34] sm:$0x1] }
 0x1fb   :  { %v2293_v2 = vshll.u32 %v2244_v46, 16  ;;  %v2617_v55 = vrot.slane %v2616_v18, 4  ;;  %v2635_v19 = vrot.slane %v2633_v8, 5  ;;  %v2298_v17 = vshrl.u32 %v2245_v21, 16  ;;  %v2844_v11 = vld [vmem:[#allocation2 + $0x3c] sm:$0x1] }
 0x1fc   :  { %v2286_v49 = vrot.slane %v2284_v42, 4  ;;  %v2630_v61 = vor.u32 %v2629_v7, %v2626_v50  ;;  %v2289_v45 = vrot.slane %v2287_v26, 5  ;;  %v2301_v20 = vshll.u32 %v2245_v21, 16  ;;  %v2252_v16 = vld [vmem:[#allocation2 + $0x34] sm:$0x1] }
 0x1fd   :  { %v2295_v3 = vrot.slane %v2293_v2, 5  ;;  %v2622_v22 = vsel %vm5901_vm2, %v2617_v55, %v2621_v4  ;;  %v2300_v48 = vrot.slane %v2298_v17, 4  ;;  %v2307_v38 = vshll.u32 %v2246_v51, 16  ;;  %v2253_v10 = vld [vmem:[#allocation2 + $0x38] sm:$0xf]  ;;  %v5710_v41 = vld [vmem:[%s8343_s4 + $0x10] sm:$0xff]  }
 0x1fe   :  { %v2906_v54 = vshrl.u32 %v2841_v59, 16  ;;  %v2631_v23 = vrot.slane %v2630_v61, 4  ;;  %v2290_v24 = vor.u32 %v2289_v45, %v2286_v49  ;;  %v2303_v29 = vrot.slane %v2301_v20, 5  ;;  %v2254_v33 = vld [vmem:[#allocation2 + $0x3c] sm:$0x1]  ;;  %5572 = vmatprep.subr.bf16.mxu1 %v5710_v41 }
 0x1ff   :  { %v2909_v31 = vshll.u32 %v2841_v59, 16  ;;  %v2309_v5 = vrot.slane %v2307_v38, 5  ;;  %v2915_v9 = vshll.u32 %v2842_v43, 16  ;;  %v2920_v40 = vshrl.u32 %v2843_v13, 16  ;;  %v3277_v34 = vld [vmem:[#allocation2 + $0x54] sm:$0x1]  ;;  %5573 = vmatpush3.bf16.msra.mxu1 %v5710_v41 }
 0x200   :  { %v2908_v52 = vrot.slane %v2906_v54, 4  ;;  %v2636_v15 = vsel %vm5901_vm2, %v2631_v23, %v2635_v19  ;;  %v2291_v25 = vrot.slane %v2290_v24, 4  ;;  %v2304_v12 = vor.u32 %v2303_v29, %v2300_v48  ;;  %v3278_v36 = vld [vmem:[#allocation2 + $0x58] sm:$0xe]  ;;  %v3279_v37 = vld [vmem:[#allocation2 + $0x5c] sm:$0x1] }
 0x201   :  { %v2911_v1 = vrot.slane %v2909_v31, 5  ;;  %v5370_v0 = vcombine.low %v2622_v22, %v2636_v15  ;;  %v2917_v39 = vrot.slane %v2915_v9, 5  ;;  %v2922_v35 = vrot.slane %v2920_v40, 4  ;;  %v3573_v21 = vld [vmem:[#allocation2 + $0x68] sm:$0xe] }
 0x202   :  { %v2923_v32 = vshll.u32 %v2843_v13, 16  ;;  %v2296_v6 = vsel %vm5901_vm2, %v2291_v25, %v2295_v3  ;;  %v2305_v60 = vrot.slane %v2304_v12, 4  ;;  %v2929_v57 = vshll.u32 %v2844_v11, 16  ;;  %v3574_v26 = vld [vmem:[#allocation2 + $0x6c] sm:$0x1] }
 0x203   :  { %v2912_v63 = vor.u32 %v2911_v1, %v2908_v52  ;;  %2681 = vrot.lane.b32.xlu0 %v5370_v0, %s5783_s17  ;;  %v2340_v46 = vshrl.u32 %v2251_v14, 16  ;;  %v2343_v56 = vshll.u32 %v2251_v14, 16  ;;  %v2349_v62 = vshll.u32 %v2252_v16, 16  ;;  %v3575_v49 = vld [vmem:[#allocation2 + $0x70] sm:$0xe] }
 0x204   :  { %v2925_v28 = vrot.slane %v2923_v32, 5  ;;  %v2310_v18 = vsel %vm5901_vm2, %v2305_v60, %v2309_v5  ;;  %v2931_v8 = vrot.slane %v2929_v57, 5  ;;  %v2354_v51 = vshrl.u32 %v2253_v10, 16  ;;  %v3576_v17 = vld [vmem:[#allocation2 + $0x74] sm:$0x1]  ;;  %v5712_v60 = vld [vmem:[%s8343_s4 + $0x18] sm:$0xff]  }
 0x205   :  { %v2913_v4 = vrot.slane %v2912_v63, 4  ;;  %v5349_v42 = vcombine.low %v2296_v6, %v2310_v18  ;;  %v2342_v50 = vrot.slane %v2340_v46, 4  ;;  %v2345_v7 = vrot.slane %v2343_v56, 5  ;;  %v3569_v20 = vld [vmem:[#allocation2 + $0x58] sm:$0xe]  ;;  %5574 = vmatprep.subr.bf16.mxu1 %v5712_v60 }
 0x206   :  { %v2926_v58 = vor.u32 %v2925_v28, %v2922_v35  ;;  %v2351_v59 = vrot.slane %v2349_v62, 5  ;;  %v2356_v55 = vrot.slane %v2354_v51, 4  ;;  %v2357_v19 = vshll.u32 %v2253_v10, 16  ;;  %v3570_v11 = vld [vmem:[#allocation2 + $0x5c] sm:$0x1]  ;;  %5575 = vmatpush3.bf16.msra.mxu1 %v5712_v60 }
 0x207   :  { %v2918_v2 = vsel %vm5901_vm2, %v2913_v4, %v2917_v39  ;;  %2381 = vrot.lane.b32.xlu1 %v5349_v42, %s5779_s29  ;;  %v2346_v61 = vor.u32 %v2345_v7, %v2342_v50  ;;  %v2363_v45 = vshll.u32 %v2254_v33, 16  ;;  %v3310_v3 = vrot.slane %v3277_v34, 5  ;;  %v3571_v14 = vld [vmem:[#allocation2 + $0x60] sm:$0xe]  ;;  %v3572_v5 = vld [vmem:[#allocation2 + $0x64] sm:$0x1] }
 0x208   :  { %v2927_v43 = vrot.slane %v2926_v58, 4  ;;  %v2359_v13 = vrot.slane %v2357_v19, 5  ;;  %v5413_v22 = vrot.slane %v3278_v36, 9  ;;  %v3314_v48 = vrot.slane %v3279_v37, 5  ;;  %v3280_v15 = vld [vmem:[#allocation2 + $0x60] sm:$0xe] }
 0x209   :  { %v5434_v38 = vrot.slane %v3573_v21, 9  ;;  %v2347_v23 = vrot.slane %v2346_v61, 4  ;;  %v2365_v24 = vrot.slane %v2363_v45, 5  ;;  %v8381_v29 = vrot.slane %v6701_v30, 9  ;;  %v3281_v25 = vld [vmem:[#allocation2 + $0x64] sm:$0x1] }
 0x20a   :  { %v2932_v54 = vsel %vm5901_vm2, %v2927_v43, %v2931_v8  ;;  %v2360_v9 = vor.u32 %v2359_v13, %v2356_v55  ;;  %v3315_v40 = vsel %vm6733_vm10, %v5413_v22, %v3314_v48  ;;  %v3611_v16 = vrot.slane %v3574_v26, 5  ;;  %v3282_v10 = vld [vmem:[#allocation2 + $0x68] sm:$0xe]  ;;  %v3283_v0 = vld [vmem:[#allocation2 + $0x6c] sm:$0x1] }
 0x20b   :  { %v3311_v31 = vsel %vm6733_vm10, %v8381_v29, %v3310_v3  ;;  %v5390_v52 = vcombine.low %v2918_v2, %v2932_v54  ;;  %v5435_v12 = vrot.slane %v3575_v49, 9  ;;  %v3615_v1 = vrot.slane %v3576_v17, 5  ;;  %v3862_v41 = vld [vmem:[#allocation2 + $0x60] sm:$0xe]  ;;  %v1787_v6 = vld [vmem:[#allocation2 + $0x50] sm:$0x1] }
 0x20c   :  { %v2352_v30 = vsel %vm5901_vm2, %v2347_v23, %v2351_v59  ;;  %v2361_v39 = vrot.slane %v2360_v9, 4  ;;  %v5432_v35 = vrot.slane %v3569_v20, 9  ;;  %v3603_v32 = vrot.slane %v3570_v11, 5  ;;  %v3863_v28 = vld [vmem:[#allocation2 + $0x64] sm:$0x1] }
 0x20d   :  { %2977 = vrot.lane.b32.xlu0 %v5390_v52, %s5788_s19  ;;  %v5420_v63 = vcombine.low %v3311_v31, %v3315_v40  ;;  %v5433_v57 = vrot.slane %v3571_v14, 9  ;;  %v3607_v33 = vrot.slane %v3572_v5, 5  ;;  %v5414_v34 = vrot.slane %v3280_v15, 9  ;;  %v3864_v37 = vld [vmem:[#allocation2 + $0x68] sm:$0xe] }
 0x20e   :  { %v2366_v46 = vsel %vm5901_vm2, %v2361_v39, %v2365_v24  ;;  %v3612_v56 = vsel %vm6733_vm10, %v5434_v38, %v3611_v16  ;;  %v3616_v62 = vsel %vm6733_vm10, %v5435_v12, %v3615_v1  ;;  %v3318_v36 = vrot.slane %v3281_v25, 5  ;;  %v3865_v21 = vld [vmem:[#allocation2 + $0x6c] sm:$0x1]  ;;  %v3121_v42 = vld [vmem:[#allocation2 + $0x54] sm:$0x1] }
 0x20f   :  { %v5351_v18 = vcombine.low %v2352_v30, %v2366_v46  ;;  %v3608_v4 = vsel %vm6733_vm10, %v5433_v57, %v3607_v33  ;;  %v5415_v8 = vrot.slane %v3282_v10, 9  ;;  %v3322_v51 = vrot.slane %v3283_v0, 5  ;;  %v3122_v58 = vld [vmem:[#allocation2 + $0x58] sm:$0xf]  ;;  %v3123_v59 = vld [vmem:[#allocation2 + $0x5c] sm:$0x1] }
 0x210   :  { %v3604_v50 = vsel %vm6733_vm10, %v5432_v35, %v3603_v32  ;;  %v3319_v7 = vsel %vm6733_vm10, %v5414_v34, %v3318_v36  ;;  %v5452_v26 = vrot.slane %v3862_v41, 9  ;;  %v3896_v2 = vrot.slane %v3863_v28, 5  ;;  %v1814_v55 = vld [vmem:[#allocation2 + $0x98] sm:$0x1]  ;;  %v3417_v61 = vld [vmem:[#allocation2 + $0x68] sm:$0xf] }
 0x211   :  { %3352 = vrot.lane.b32.xlu0 %v5420_v63, %s5778_s18  ;;  %2385 = vrot.lane.b32.xlu1 %v5351_v18, %s5779_s29  ;;  %v5440_v19 = vcombine.low %v3604_v50, %v3608_v4  ;;  %v5453_v49 = vrot.slane %v3864_v37, 9  ;;  %v3900_v17 = vrot.slane %v3865_v21, 5  ;;  %v1788_v43 = vsel %vm6550_vm0, 0, %v1787_v6  ;;  %v3418_v22 = vld [vmem:[#allocation2 + $0x6c] sm:$0x1] }
 0x212   :  { %v3323_v45 = vsel %vm6733_vm10, %v5415_v8, %v3322_v51  ;;  %v3897_v3 = vsel %vm6733_vm10, %v5452_v26, %v3896_v2  ;;  %1789 = vst [vmem:[#allocation2 + $0x50] sm:$0x1] %v1788_v43  ;;  %v3146_v20 = vshll.u32 %v3121_v42, 16  ;;  %v3151_v13 = vshrl.u32 %v3122_v58, 16  ;;  %v3419_v23 = vld [vmem:[#allocation2 + $0x70] sm:$0xf] }
 0x213   :  { %v5441_v48 = vcombine.low %v3612_v56, %v3616_v62  ;;  %v5421_v38 = vcombine.low %v3319_v7, %v3323_v45  ;;  %v3154_v11 = vshll.u32 %v3122_v58, 16  ;;  %v1815_v54 = vsel %vm6550_vm0, 0, %v1814_v55  ;;  %v3420_v24 = vld [vmem:[#allocation2 + $0x74] sm:$0x1]  ;;  %v3413_v52 = vld [vmem:[#allocation2 + $0x58] sm:$0xf] }
 0x214   :  { %v3901_v29 = vsel %vm6733_vm10, %v5453_v49, %v3900_v17  ;;  %v3153_v31 = vrot.slane %v3151_v13, 4  ;;  %v3160_v14 = vshll.u32 %v3123_v59, 16  ;;  %1816 = vst [vmem:[#allocation2 + $0x98] sm:$0x1] %v1815_v54  ;;  %v3458_v5 = vshrl.u32 %v3417_v61, 16 }
 0x215   :  { %3645 = vrot.lane.b32.xlu0 %v5440_v19, %s5786_s24  ;;  %3647 = vrot.lane.b32.xlu1 %v5441_v48, %s5786_s24  ;;  %v5460_v9 = vcombine.low %v3897_v3, %v3901_v29  ;;  %v7231_v40 = vrot.slane %v3146_v20, 5  ;;  %v3156_v16 = vrot.slane %v3154_v11, 5  ;;  %v3461_v44 = vshll.u32 %v3417_v61, 16  ;;  %v3414_v10 = vld [vmem:[#allocation2 + $0x5c] sm:$0x1] }
 0x216   :  { %v3460_v15 = vrot.slane %v3458_v5, 4  ;;  %v3467_v25 = vshll.u32 %v3418_v22, 16  ;;  %v3472_v12 = vshrl.u32 %v3419_v23, 16  ;;  %v3475_v1 = vshll.u32 %v3419_v23, 16  ;;  %v3415_v60 = vld [vmem:[#allocation2 + $0x60] sm:$0xf]  ;;  %v7249_v5 = vpop.permute.xlu0 %2520 }
 0x217   :  { %v3157_v0 = vor.u32 %v3156_v16, %v3153_v31  ;;  %v3463_v30 = vrot.slane %v3461_v44, 5  ;;  %v3481_v39 = vshll.u32 %v3420_v24, 16  ;;  %v3430_v35 = vshrl.u32 %v3413_v52, 16  ;;  %v3416_v63 = vld [vmem:[#allocation2 + $0x64] sm:$0x1] }
 0x218   :  { %v3162_v32 = vrot.slane %v3160_v14, 5  ;;  %v3474_v41 = vrot.slane %v3472_v12, 4  ;;  %v3477_v6 = vrot.slane %v3475_v1, 5  ;;  %v3433_v57 = vshll.u32 %v3413_v52, 16  ;;  %v3124_v62 = vld [vmem:[#allocation2 + $0x60] sm:$0xf] }
 0x219   :  { %3938 = vrot.lane.b32.xlu0 %v5460_v9, %s5787_s23  ;;  %3354 = vrot.lane.b32.xlu1 %v5421_v38, %s5778_s18  ;;  %v3120_v33 = vld [vmem:[#allocation2 + $0x50] sm:$0xf]  ;;  %v3158_v34 = vrot.slane %v3157_v0, 4  ;;  %v3464_v28 = vor.u32 %v3463_v30, %v3460_v15  ;;  %v3432_v46 = vrot.slane %v3430_v35, 4  ;;  %v3439_v56 = vshll.u32 %v3414_v10, 16 }
 0x21a   :  { %v5700_v36 = vld [vmem:[#allocation2 + $0x70] ss:$8 sps:$4 sm:$0xff]   ;;  %v3137_v37 = vshrl.u32 %v3120_v33, 16  ;;  %v3140_v21 = vshll.u32 %v3120_v33, 16  ;;  %v3478_v18 = vor.u32 %v3477_v6, %v3474_v41  ;;  %v3435_v4 = vrot.slane %v3433_v57, 5 }
 0x21b   :  { %v3163_v8 = vsel %vm5901_vm2, %v3158_v34, %v3162_v32  ;;  %v3465_v51 = vrot.slane %v3464_v28, 4  ;;  %v3469_v42 = vrot.slane %v3467_v25, 5  ;;  %v3483_v58 = vrot.slane %v3481_v39, 5  ;;  %v3125_v59 = vld [vmem:[#allocation2 + $0x64] sm:$0x1]  ;;  %v7262_v28 = vpop.permute.xlu1 %2522 }
 0x21c   :  { %v3139_v50 = vrot.slane %v3137_v37, 4  ;;  %v3142_v7 = vrot.slane %v3140_v21, 5  ;;  %v3479_v26 = vrot.slane %v3478_v18, 4  ;;  %v3436_v2 = vor.u32 %v3435_v4, %v3432_v46  ;;  %v3126_v43 = vld [vmem:[#allocation2 + $0x68] sm:$0xf] }
 0x21d   :  { %3692 = vrot.lane.b32.xlu1 %v5700_v36, %s5785_s22  ;;  %v7238_v55 = vrot.slane %v3439_v56, 5  ;;  %v3444_v19 = vshrl.u32 %v3415_v60, 16  ;;  %v3447_v49 = vshll.u32 %v3415_v60, 16  ;;  %v3453_v17 = vshll.u32 %v3416_v63, 16  ;;  %v3127_v20 = vld [vmem:[#allocation2 + $0x6c] sm:$0x1] }
 0x21e   :  { %v3143_v61 = vor.u32 %v3142_v7, %v3139_v50  ;;  %v3470_v45 = vsel %vm5901_vm2, %v3465_v51, %v3469_v42  ;;  %v3484_v3 = vsel %vm5901_vm2, %v3479_v26, %v3483_v58  ;;  %v3165_v13 = vshrl.u32 %v3124_v62, 16  ;;  %v3706_v22 = vld [vmem:[#allocation2 + $0x60] sm:$0xf]  ;;  %v5701_v48 = vld [vmem:[#allocation2 + $0x88] ss:$8 sps:$4 sm:$0xff]   ;;  %v7272_v7 = vpop.permute.xlu0 %2816 }
 0x21f   :  { %v5429_v38 = vcombine.low %v3470_v45, %v3484_v3  ;;  %v7244_v11 = vrot.slane %v3436_v2, 4  ;;  %v3446_v54 = vrot.slane %v3444_v19, 4  ;;  %v3449_v23 = vrot.slane %v3447_v49, 5  ;;  %v3707_v15 = vld [vmem:[#allocation2 + $0x64] sm:$0x1] }
 0x220   :  { %v3144_v24 = vrot.slane %v3143_v61, 4  ;;  %v7246_v29 = vrot.slane %v3453_v17, 5  ;;  %v3167_v31 = vrot.slane %v3165_v13, 4  ;;  %v3168_v14 = vshll.u32 %v3124_v62, 16  ;;  %v3708_v10 = vld [vmem:[#allocation2 + $0x68] sm:$0xf] }
 0x221   :  { %3403 = vrot.lane.b32.xlu1 %v5701_v48, %s5781_s27  ;;  %v3450_v52 = vor.u32 %v3449_v23, %v3446_v54  ;;  %v3174_v9 = vshll.u32 %v3125_v59, 16  ;;  %v3179_v16 = vshrl.u32 %v3126_v43, 16  ;;  %v3182_v44 = vshll.u32 %v3126_v43, 16  ;;  %v5703_v39 = vld [vmem:[#allocation2 + $0x90] ss:$8 sps:$4 sm:$0xff]  }
 0x222   :  { %v3149_v25 = vsel %vm5901_vm2, %v3144_v24, %v7231_v40  ;;  %v3170_v12 = vrot.slane %v3168_v14, 5  ;;  %v3188_v1 = vshll.u32 %v3127_v20, 16  ;;  %v3723_v0 = vshrl.u32 %v3706_v22, 16  ;;  %v3709_v6 = vld [vmem:[#allocation2 + $0x6c] sm:$0x1] }
 0x223   :  { %v5408_v30 = vcombine.low %v3149_v25, %v3163_v8  ;;  %v3442_v35 = vsel %vm5901_vm2, %v7244_v11, %v7238_v55  ;;  %v7258_v32 = vrot.slane %v3450_v52, 4  ;;  %v3181_v41 = vrot.slane %v3179_v16, 4  ;;  %v3581_v40 = vld [vmem:[#allocation2 + $0x88] sm:$0xe]  ;;  %v5702_v34 = vld [vmem:[#allocation2 + $0x78] ss:$8 sps:$4 sm:$0xff]  }
 0x224   :  { %v3171_v60 = vor.u32 %v3170_v12, %v3167_v31  ;;  %v3176_v63 = vrot.slane %v3174_v9, 5  ;;  %v3184_v57 = vrot.slane %v3182_v44, 5  ;;  %v3190_v33 = vrot.slane %v3188_v1, 5  ;;  %v3582_v37 = vld [vmem:[#allocation2 + $0x8c] sm:$0x1] }
 0x225   :  { %3260 = vrot.lane.b32.xlu0 %v5408_v30, %s5779_s29  ;;  %3696 = vrot.lane.b32.xlu1 %v5703_v39, %s5785_s22  ;;  %v3725_v46 = vrot.slane %v3723_v0, 4  ;;  %v3726_v56 = vshll.u32 %v3706_v22, 16  ;;  %v3732_v62 = vshll.u32 %v3707_v15, 16  ;;  %v3737_v36 = vshrl.u32 %v3708_v10, 16  ;;  %v7264_v21 = vld [vmem:[#allocation2 + $0x70] sm:$0xe] }
 0x226   :  { %v3456_v18 = vsel %vm5901_vm2, %v7258_v32, %v7246_v29  ;;  %v3172_v4 = vrot.slane %v3171_v60, 4  ;;  %v3185_v8 = vor.u32 %v3184_v57, %v3181_v41  ;;  %v3740_v51 = vshll.u32 %v3708_v10, 16  ;;  %v3583_v42 = vld [vmem:[#allocation2 + $0x90] sm:$0xe]  ;;  %v3584_v58 = vld [vmem:[#allocation2 + $0x94] sm:$0x1]  ;;  %v7278_v29 = vpop.permute.xlu1 %2818 }
 0x227   :  { %v7270_v50 = vld [vmem:[#allocation2 + $0x74] sm:$0x1]  ;;  %v3728_v26 = vrot.slane %v3726_v56, 5  ;;  %v3734_v2 = vrot.slane %v3732_v62, 5  ;;  %v3739_v59 = vrot.slane %v3737_v36, 4  ;;  %v3746_v19 = vshll.u32 %v3709_v6, 16  ;;  %v7286_v39 = vpop.permute.xlu0 %2524 }
 0x228   :  { %v3868_v49 = vld [vmem:[#allocation2 + $0x78] sm:$0xe]  ;;  %v3869_v17 = vld [vmem:[#allocation2 + $0x7c] sm:$0x1]  ;;  %v3177_v43 = vsel %vm5901_vm2, %v3172_v4, %v3176_v63  ;;  %v3186_v61 = vrot.slane %v3185_v8, 4  ;;  %v3742_v45 = vrot.slane %v3740_v51, 5 }
 0x229   :  { %v5438_v3 = vrot.slane %v3581_v40, 9  ;;  %v3288_v20 = vld [vmem:[#allocation2 + $0x80] sm:$0xe]  ;;  %3401 = vrot.lane.b32.xlu0 %v5702_v34, %s5781_s27  ;;  %3555 = vrot.lane.b32.xlu1 %v5429_v38, %s5783_s17  ;;  %v3729_v22 = vor.u32 %v3728_v26, %v3725_v46  ;;  %v3748_v48 = vrot.slane %v3746_v19, 5  ;;  %v3627_v54 = vrot.slane %v3582_v37, 5 }
 0x22a   :  { %v5704_v13 = vld [vmem:[#allocation2 + $0x80] ss:$8 sps:$4 sm:$0xff]   ;;  %v5439_v23 = vrot.slane %v3583_v42, 9  ;;  %v3289_v24 = vld [vmem:[#allocation2 + $0x84] sm:$0x1]  ;;  %v3191_v31 = vsel %vm5901_vm2, %v3186_v61, %v3190_v33  ;;  %v3743_v14 = vor.u32 %v3742_v45, %v3739_v59  ;;  %v3631_v52 = vrot.slane %v3584_v58, 5  ;;  %v7309_v37 = vpop.permute.xlu1 %2526 }
 0x22b   :  { %v5454_v9 = vrot.slane %v7264_v21, 9  ;;  %v3290_v16 = vld [vmem:[#allocation2 + $0x88] sm:$0xe]  ;;  %v3291_v44 = vld [vmem:[#allocation2 + $0x8c] sm:$0x1]  ;;  %v5409_v25 = vcombine.low %v3177_v43, %v3191_v31  ;;  %v3730_v12 = vrot.slane %v3729_v22, 4  ;;  %v3628_v38 = vsel %vm6733_vm10, %v5438_v3, %v3627_v54  ;;  %v7322_v26 = vpop.permute.xlu0 %2820 }
 0x22c   :  { %v3284_v15 = vld [vmem:[#allocation2 + $0x70] sm:$0xe]  ;;  %v3904_v1 = vrot.slane %v7270_v50, 5  ;;  %v3285_v10 = vld [vmem:[#allocation2 + $0x74] sm:$0x1]  ;;  %v3744_v41 = vrot.slane %v3743_v14, 4  ;;  %v3632_v6 = vsel %vm6733_vm10, %v5439_v23, %v3631_v52  ;;  %v5428_v40 = vcombine.low %v3442_v35, %v3456_v18 }
 0x22d   :  { %v3286_v0 = vld [vmem:[#allocation2 + $0x78] sm:$0xe]  ;;  %v3287_v30 = vld [vmem:[#allocation2 + $0x7c] sm:$0x1]  ;;  %v7291_v32 = vld [vmem:[%s8346_s7] sm:$0x3]  ;;  %3694 = vrot.lane.b32.xlu0 %v5704_v13, %s5785_s22  ;;  %3262 = vrot.lane.b32.xlu1 %v5409_v25, %s5779_s29  ;;  %v3735_v34 = vsel %vm5901_vm2, %v3730_v12, %v3734_v2  ;;  %v5443_v46 = vcombine.low %v3628_v38, %v3632_v6 }
 0x22e   :  { %v5455_v60 = vrot.slane %v3868_v49, 9  ;;  %v3908_v63 = vrot.slane %v3869_v17, 5  ;;  %v3710_v57 = vld [vmem:[#allocation2 + $0x70] sm:$0xf]  ;;  %5621 = vmatprep.subr.msk.bf16.mxu0 %vm1580_vm9, %v7291_v32  ;;  %v5714_v33 = vld [vmem:[%s8339_s0 + $0xd8] ss:$8 sps:$4 sm:$0xff]   ;;  %v3749_v21 = vsel %vm5901_vm2, %v3744_v41, %v3748_v48  ;;  %v7320_v8 = vsel %vm6733_vm10, %v5454_v9, %v3904_v1  ;;  %v7333_v48 = vpop.permute.xlu1 %2822 }
 0x22f   :  { %v5418_v56 = vrot.slane %v3288_v20, 9  ;;  %v3711_v62 = vld [vmem:[#allocation2 + $0x74] sm:$0x1]  ;;  %v3712_v36 = vld [vmem:[#allocation2 + $0x78] sm:$0xf]  ;;  %v3334_v55 = vrot.slane %v3289_v24, 5  ;;  %5596 = vmatprep.mubr.msk.bf16.mxu0 %vm72_vm3, %v5714_v33  ;;  %v5448_v18 = vcombine.low %v3735_v34, %v3749_v21  ;;  %v7345_v25 = vpop.permute.xlu0 %2475 }
 0x230   :  { %v7315_v4 = vsel %vm6733_vm10, %v5455_v60, %v3908_v63  ;;  %v5419_v11 = vrot.slane %v3290_v16, 9  ;;  %v5716_v35 = vld [vmem:[#allocation2 + $0x50] ss:$8 sps:$4 sm:$0xff]   ;;  %v3338_v51 = vrot.slane %v3291_v44, 5  ;;  %v5416_v42 = vrot.slane %v3284_v15, 9 }
 0x231   :  { %v3713_v58 = vld [vmem:[#allocation2 + $0x7c] sm:$0x1]  ;;  %v3577_v50 = vld [vmem:[#allocation2 + $0x78] sm:$0xe]  ;;  %v3335_v2 = vsel %vm6733_vm10, %v5418_v56, %v3334_v55  ;;  %v3326_v59 = vrot.slane %v3285_v10, 5  ;;  %v5417_v19 = vrot.slane %v3286_v0, 9  ;;  %3553 = vrot.lane.b32.xlu0 %v5428_v40, %s5783_s17  ;;  %3651 = vrot.lane.b32.xlu1 %v5443_v46, %s5786_s24  ;;  %v5461_v61 = vcombine.low %v7320_v8, %v7315_v4 }
 0x232   :  { %v3330_v49 = vrot.slane %v3287_v30, 5  ;;  %v3578_v17 = vld [vmem:[#allocation2 + $0x7c] sm:$0x1]  ;;  %v3579_v43 = vld [vmem:[#allocation2 + $0x80] sm:$0xe]  ;;  %3116 = vst.msk [vmem:[#allocation4 + $0x20] sm:$0xff] %vm2234_vm11, %v5716_v35  ;;  %v3339_v45 = vsel %vm6733_vm10, %v5419_v11, %v3338_v51  ;;  %v7350_v33 = vpop.permute.xlu1 %2772 }
 0x233   :  { %v3751_v3 = vshrl.u32 %v3710_v57, 16  ;;  %v3754_v20 = vshll.u32 %v3710_v57, 16  ;;  %v3580_v13 = vld [vmem:[#allocation2 + $0x84] sm:$0x1]  ;;  %v3128_v22 = vld [vmem:[#allocation2 + $0x70] sm:$0xf]  ;;  %v7337_v54 = vsel %vm6733_vm10, %v5416_v42, %v3326_v59  ;;  %v5423_v52 = vcombine.low %v3335_v2, %v3339_v45 }
 0x234   :  { %v7341_v23 = vsel %vm6733_vm10, %v5417_v19, %v3330_v49  ;;  %v3760_v24 = vshll.u32 %v3711_v62, 16  ;;  %v3765_v31 = vshrl.u32 %v3712_v36, 16  ;;  %v5719_v14 = vld [vmem:[#allocation2 + $0x60] ss:$8 sps:$4 sm:$0xff]   ;;  %v3129_v15 = vld [vmem:[#allocation2 + $0x74] sm:$0x1] }
 0x235   :  { %v5422_v9 = vcombine.low %v7337_v54, %v7341_v23  ;;  %v3753_v16 = vrot.slane %v3751_v3, 4  ;;  %v3756_v44 = vrot.slane %v3754_v20, 5  ;;  %v3768_v38 = vshll.u32 %v3712_v36, 16  ;;  %v3130_v0 = vld [vmem:[#allocation2 + $0x78] sm:$0xf]  ;;  %3117 = vst.msk [vmem:[#allocation4 + $0x28] sm:$0xff] %vm2234_vm11, %v5719_v14  ;;  %3846 = vrot.lane.b32.xlu0 %v5448_v18, %s5788_s19  ;;  %3358 = vrot.lane.b32.xlu1 %v5423_v52, %s5778_s18  ;;  %v7357_v11 = vpop.permute.xlu0 %3068 }
 0x236   :  { %v3767_v12 = vrot.slane %v3765_v31, 4  ;;  %v3774_v1 = vshll.u32 %v3713_v58, 16  ;;  %v5436_v10 = vrot.slane %v3577_v50, 9  ;;  %v5720_v30 = vld [vmem:[#allocation2 + $0x70] ss:$8 sps:$4 sm:$0xff]   ;;  %v3619_v6 = vrot.slane %v3578_v17, 5  ;;  %v7362_v49 = vpop.permute.xlu1 %2776 }
 0x237   :  { %v3757_v41 = vor.u32 %v3756_v44, %v3753_v16  ;;  %v5437_v60 = vrot.slane %v3579_v43, 9  ;;  %v3623_v63 = vrot.slane %v3580_v13, 5  ;;  %v3131_v57 = vld [vmem:[#allocation2 + $0x7c] sm:$0x1]  ;;  %v3762_v40 = vrot.slane %v3760_v24, 5  ;;  %3118 = vst.msk [vmem:[#allocation4 + $0x30] sm:$0xff] %vm2234_vm11, %v5720_v30 }
 0x238   :  { %v3770_v34 = vrot.slane %v3768_v38, 5  ;;  %v3193_v46 = vshrl.u32 %v3128_v22, 16  ;;  %v3196_v56 = vshll.u32 %v3128_v22, 16  ;;  %v3776_v36 = vrot.slane %v3774_v1, 5  ;;  %v3421_v55 = vld [vmem:[#allocation2 + $0x78] sm:$0xf] }
 0x239   :  { %v3758_v62 = vrot.slane %v3757_v41, 4  ;;  %v3620_v21 = vsel %vm6733_vm10, %v5436_v10, %v3619_v6  ;;  %v3624_v4 = vsel %vm6733_vm10, %v5437_v60, %v3623_v63  ;;  %v5723_v35 = vld [vmem:[#allocation2 + $0x80] ss:$8 sps:$4 sm:$0xff]   ;;  %v3202_v42 = vshll.u32 %v3129_v15, 16  ;;  %v3422_v58 = vld [vmem:[#allocation2 + $0x7c] sm:$0x1]  ;;  %3940 = vrot.lane.b32.xlu0 %v5461_v61, %s5787_s23  ;;  %v7365_v24 = vpop.permute.xlu0 %2479 }
 0x23a   :  { %v3771_v18 = vor.u32 %v3770_v34, %v3767_v12  ;;  %v3195_v8 = vrot.slane %v3193_v46, 4  ;;  %v3198_v51 = vrot.slane %v3196_v56, 5  ;;  %v5442_v2 = vcombine.low %v3620_v21, %v3624_v4  ;;  %3119 = vst.msk [vmem:[#allocation4 + $0x38] sm:$0xff] %vm2234_vm11, %v5723_v35  ;;  %v3423_v3 = vld [vmem:[#allocation2 + $0x80] sm:$0xf]  ;;  %v7371_v46 = vpop.permute.xlu1 %3072 }
 0x23b   :  { %v3763_v50 = vsel %vm5901_vm2, %v3758_v62, %v3762_v40  ;;  %v3207_v59 = vshrl.u32 %v3130_v0, 16  ;;  %v3210_v19 = vshll.u32 %v3130_v0, 16  ;;  %v3216_v45 = vshll.u32 %v3131_v57, 16  ;;  %v3424_v54 = vld [vmem:[#allocation2 + $0x84] sm:$0x1] }
 0x23c   :  { %v3772_v17 = vrot.slane %v3771_v18, 4  ;;  %v3199_v43 = vor.u32 %v3198_v51, %v3195_v8  ;;  %v3486_v20 = vshrl.u32 %v3421_v55, 16  ;;  %v3489_v23 = vshll.u32 %v3421_v55, 16  ;;  %v3425_v44 = vld [vmem:[#allocation2 + $0x88] sm:$0xf] }
 0x23d   :  { %v3209_v13 = vrot.slane %v3207_v59, 4  ;;  %v3212_v22 = vrot.slane %v3210_v19, 5  ;;  %v3495_v61 = vshll.u32 %v3422_v58, 16  ;;  %v3204_v52 = vrot.slane %v3202_v42, 5  ;;  %3356 = vrot.lane.b32.xlu0 %v5422_v9, %s5778_s18  ;;  %v3426_v10 = vld [vmem:[#allocation2 + $0x8c] sm:$0x1]  ;;  %v7373_v56 = vpop.permute.xlu0 %2770 }
 0x23e   :  { %v3777_v31 = vsel %vm5901_vm2, %v3772_v17, %v3776_v36  ;;  %v3200_v14 = vrot.slane %v3199_v43, 4  ;;  %v3488_v16 = vrot.slane %v3486_v20, 4  ;;  %v3218_v38 = vrot.slane %v3216_v45, 5  ;;  %v3427_v57 = vld [vmem:[#allocation2 + $0x90] sm:$0xf] }
 0x23f   :  { %v5449_v15 = vcombine.low %v3763_v50, %v3777_v31  ;;  %v3213_v12 = vor.u32 %v3212_v22, %v3209_v13  ;;  %v3491_v1 = vrot.slane %v3489_v23, 5  ;;  %v3497_v0 = vrot.slane %v3495_v61, 5  ;;  %v3428_v21 = vld [vmem:[#allocation2 + $0x94] sm:$0x1]  ;;  %v3714_v51 = vld [vmem:[#allocation2 + $0x80] sm:$0xf] }
 0x240   :  { %v3500_v30 = vshrl.u32 %v3423_v3, 16  ;;  %v3503_v41 = vshll.u32 %v3423_v3, 16  ;;  %v3509_v6 = vshll.u32 %v3424_v54, 16  ;;  %v3514_v40 = vshrl.u32 %v3425_v44, 16  ;;  %v3715_v19 = vld [vmem:[#allocation2 + $0x84] sm:$0x1] }
 0x241   :  { %3848 = vrot.lane.b32.xlu1 %v5449_v15, %s5788_s19  ;;  %v3214_v60 = vrot.slane %v3213_v12, 4  ;;  %v3492_v63 = vor.u32 %v3491_v1, %v3488_v16  ;;  %v3517_v34 = vshll.u32 %v3425_v44, 16  ;;  %v3205_v9 = vsel %vm5901_vm2, %v3200_v14, %v3204_v52  ;;  %3649 = vrot.lane.b32.xlu0 %v5442_v2, %s5786_s24  ;;  %v3716_v20 = vld [vmem:[#allocation2 + $0x88] sm:$0xf]  ;;  %v3717_v52 = vld [vmem:[#allocation2 + $0x8c] sm:$0x1] }
 0x242   :  { %v3502_v62 = vrot.slane %v3500_v30, 4  ;;  %v3505_v36 = vrot.slane %v3503_v41, 5  ;;  %v3523_v4 = vshll.u32 %v3426_v10, 16  ;;  %v3516_v18 = vrot.slane %v3514_v40, 4  ;;  %v3132_v10 = vld [vmem:[#allocation2 + $0x80] sm:$0xf] }
 0x243   :  { %v3219_v55 = vsel %vm5901_vm2, %v3214_v60, %v3218_v38  ;;  %v3493_v35 = vrot.slane %v3492_v63, 4  ;;  %v3519_v8 = vrot.slane %v3517_v34, 5  ;;  %v3511_v50 = vrot.slane %v3509_v6, 5  ;;  %v7385_v44 = vpop.permute.xlu1 %2477  ;;  %v3133_v60 = vld [vmem:[#allocation2 + $0x84] sm:$0x1] }
 0x244   :  { %v5410_v42 = vcombine.low %v3205_v9, %v3219_v55  ;;  %v3506_v58 = vor.u32 %v3505_v36, %v3502_v62  ;;  %v3528_v59 = vshrl.u32 %v3427_v57, 16  ;;  %v3531_v45 = vshll.u32 %v3427_v57, 16  ;;  %v3134_v63 = vld [vmem:[#allocation2 + $0x88] sm:$0xf]  ;;  %v3135_v36 = vld [vmem:[#allocation2 + $0x8c] sm:$0x1] }
 0x245   :  { %v3498_v17 = vsel %vm5901_vm2, %v3493_v35, %v3497_v0  ;;  %v3520_v43 = vor.u32 %v3519_v8, %v3516_v18  ;;  %v3537_v3 = vshll.u32 %v3428_v21, 16  ;;  %v7382_v2 = vpop.permute.xlu0 %3066  ;;  %v3779_v54 = vshrl.u32 %v3714_v51, 16  ;;  %v3870_v21 = vld [vmem:[#allocation2 + $0x80] sm:$0xe]  ;;  %v3871_v8 = vld [vmem:[#allocation2 + $0x84] sm:$0x1] }
 0x246   :  { %3264 = vrot.lane.b32.xlu1 %v5410_v42, %s5779_s29  ;;  %v3507_v13 = vrot.slane %v3506_v58, 4  ;;  %v3530_v22 = vrot.slane %v3528_v59, 4  ;;  %v3782_v23 = vshll.u32 %v3714_v51, 16  ;;  %v3525_v31 = vrot.slane %v3523_v4, 5  ;;  %v3872_v59 = vld [vmem:[#allocation2 + $0x88] sm:$0xe] }
 0x247   :  { %v3521_v61 = vrot.slane %v3520_v43, 4  ;;  %v3533_v14 = vrot.slane %v3531_v45, 5  ;;  %v3788_v16 = vshll.u32 %v3715_v19, 16  ;;  %v3781_v12 = vrot.slane %v3779_v54, 4 }
 0x248   :  { %v3512_v15 = vsel %vm5901_vm2, %v3507_v13, %v3511_v50  ;;  %v3784_v38 = vrot.slane %v3782_v23, 5  ;;  %v3793_v1 = vshrl.u32 %v3716_v20, 16  ;;  %v3539_v41 = vrot.slane %v3537_v3, 5  ;;  %v3873_v3 = vld [vmem:[#allocation2 + $0x8c] sm:$0x1] }
 0x249   :  { %v5430_v0 = vcombine.low %v3498_v17, %v3512_v15  ;;  %v3534_v30 = vor.u32 %v3533_v14, %v3530_v22  ;;  %v3790_v6 = vrot.slane %v3788_v16, 5  ;;  %v7389_v57 = vpop.permute.xlu0 %2774  ;;  %v3796_v9 = vshll.u32 %v3716_v20, 16  ;;  %v7396_v20 = vpop.permute.xlu1 %2481 }
 0x24a   :  { %v3785_v40 = vor.u32 %v3784_v38, %v3781_v12  ;;  %v3795_v34 = vrot.slane %v3793_v1, 4  ;;  %v3802_v62 = vshll.u32 %v3717_v52, 16  ;;  %v3526_v4 = vsel %vm5901_vm2, %v3521_v61, %v3525_v31  ;;  %v1876_v31 = vld [vmem:[#allocation2 + $0x9c] sm:$0x1]  ;;  %v3718_v12 = vld [vmem:[#allocation2 + $0x90] sm:$0xf] }
 0x24b   :  { %3557 = vrot.lane.b32.xlu0 %v5430_v0, %s5783_s17  ;;  %v3535_v55 = vrot.slane %v3534_v30, 4  ;;  %v3221_v35 = vshrl.u32 %v3132_v10, 16  ;;  %v3224_v18 = vshll.u32 %v3132_v10, 16  ;;  %v3798_v42 = vrot.slane %v3796_v9, 5  ;;  %v3719_v30 = vld [vmem:[#allocation2 + $0x94] sm:$0x1] }
 0x24c   :  { %v3786_v51 = vrot.slane %v3785_v40, 4  ;;  %v3230_v58 = vshll.u32 %v3133_v60, 16  ;;  %v3235_v50 = vshrl.u32 %v3134_v63, 16  ;;  %v3804_v17 = vrot.slane %v3802_v62, 5 }
 0x24d   :  { %v3540_v19 = vsel %vm5901_vm2, %v3535_v55, %v3539_v41  ;;  %v3223_v43 = vrot.slane %v3221_v35, 4  ;;  %v3226_v45 = vrot.slane %v3224_v18, 5  ;;  %v7398_v13 = vpop.permute.xlu0 %3070  ;;  %v3799_v23 = vor.u32 %v3798_v42, %v3795_v34  ;;  %v3720_v34 = vld [vmem:[#allocation2 + $0x98] sm:$0xf] }
 0x24e   :  { %v5431_v22 = vcombine.low %v3526_v4, %v3540_v19  ;;  %v3791_v54 = vsel %vm5901_vm2, %v3786_v51, %v3790_v6  ;;  %v3237_v61 = vrot.slane %v3235_v50, 4  ;;  %v3238_v52 = vshll.u32 %v3134_v63, 16  ;;  %v7405_v9 = vpop.permute.xlu1 %3399 }
 0x24f   :  { %v3227_v14 = vor.u32 %v3226_v45, %v3223_v43  ;;  %v3244_v16 = vshll.u32 %v3135_v36, 16  ;;  %v5456_v15 = vrot.slane %v3870_v21, 9  ;;  %v3800_v38 = vrot.slane %v3799_v23, 4 }
 0x250   :  { %3559 = vrot.lane.b32.xlu1 %v5431_v22, %s5783_s17  ;;  %v3912_v1 = vrot.slane %v3871_v8, 5  ;;  %v5457_v10 = vrot.slane %v3872_v59, 9  ;;  %v3916_v0 = vrot.slane %v3873_v3, 5  ;;  %v3232_v60 = vrot.slane %v3230_v58, 5  ;;  %v3874_v22 = vld [vmem:[#allocation2 + $0x90] sm:$0xe] }
 0x251   :  { %v3228_v41 = vrot.slane %v3227_v14, 4  ;;  %v3240_v40 = vrot.slane %v3238_v52, 5  ;;  %v1877_v6 = vsel %vm6557_vm4, 0, %v1876_v31  ;;  %v2380_v63 = vpop.permute.xlu0 %2379  ;;  %v3805_v62 = vsel %vm5901_vm2, %v3800_v38, %v3804_v17  ;;  %v3875_v31 = vld [vmem:[#allocation2 + $0x94] sm:$0x1] }
 0x252   :  { %v3246_v36 = vrot.slane %v3244_v16, 5  ;;  %1878 = vst [vmem:[#allocation2 + $0x9c] sm:$0x1] %v1877_v6  ;;  %v3807_v21 = vshrl.u32 %v3718_v12, 16  ;;  %v5450_v4 = vcombine.low %v3791_v54, %v3805_v62  ;;  %v3913_v35 = vsel %vm6733_vm10, %v5456_v15, %v3912_v1  ;;  %v7416_v19 = vpop.permute.xlu1 %2679  ;;  %v3876_v16 = vld [vmem:[#allocation2 + $0x98] sm:$0xe] }
 0x253   :  { %v3241_v55 = vor.u32 %v3240_v40, %v3237_v61  ;;  %v3917_v18 = vsel %vm6733_vm10, %v5457_v10, %v3916_v0  ;;  %v3810_v8 = vshll.u32 %v3718_v12, 16  ;;  %v3816_v51 = vshll.u32 %v3719_v30, 16  ;;  %2392 = vst.msk [vmem:[#allocation4] sm:$0xff] %vm2391_vm12, %v2380_v63  ;;  %v5713_v0 = vld [vmem:[%s8343_s4 + $0x20] ss:$0 sps:$4 sm:$0xff]  }
 0x254   :  { %v3809_v47 = vrot.slane %v3807_v21, 4  ;;  %v3821_v42 = vshrl.u32 %v3720_v34, 16  ;;  %3850 = vrot.lane.b32.xlu0 %v5450_v4, %s5788_s19  ;;  %v3233_v58 = vsel %vm5901_vm2, %v3228_v41, %v3232_v60  ;;  %v3824_v59 = vshll.u32 %v3720_v34, 16  ;;  %2488 = vst.msk [vmem:[#allocation4] sm:$0xff] %vm2487_vm13, %v7345_v25  ;;  %5620 = vmatprep.subr.msk.bf16.mxu1 %vm4023_vm1, %v5713_v0 }
 0x255   :  { %v3242_v50 = vrot.slane %v3241_v55, 4  ;;  %v7418_v17 = vpop.permute.xlu0 %3397  ;;  %v5462_v43 = vcombine.low %v3913_v35, %v3917_v18  ;;  %v3812_v45 = vrot.slane %v3810_v8, 5  ;;  %v3818_v23 = vrot.slane %v3816_v51, 5  ;;  %2533 = vst.msk [vmem:[#allocation4] sm:$0xff] %vm2532_vm14, %v7249_v5  ;;  %v5715_v5 = vld [vmem:[%s8339_s0 + $0xe8] ss:$8 sps:$4 sm:$0xff]  }
 0x256   :  { %v3823_v3 = vrot.slane %v3821_v42, 4  ;;  %v3826_v61 = vrot.slane %v3824_v59, 5  ;;  %v7426_v1 = vpop.permute.xlu1 %2975  ;;  %v5458_v60 = vrot.slane %v3874_v22, 9  ;;  %v3920_v40 = vrot.slane %v3875_v31, 5  ;;  %v5717_v18 = vld [vmem:[%s8339_s0 + $0xf8] ss:$8 sps:$4 sm:$0xff]  }
 0x257   :  { %v3247_v54 = vsel %vm5901_vm2, %v3242_v50, %v3246_v36  ;;  %v3813_v52 = vor.u32 %v3812_v45, %v3809_v47  ;;  %v5459_v34 = vrot.slane %v3876_v16, 9  ;;  %vm2782_vm0 = vcmask 392512   ;;  %v5724_v8 = vld [vmem:[%s8339_s0 + $0x218] ss:$8 sps:$4 sm:$0xff]  }
 0x258   :  { %v5411_v14 = vcombine.low %v3233_v58, %v3247_v54  ;;  %3942 = vrot.lane.b32.xlu0 %v5462_v43, %s5787_s23  ;;  %v3827_v12 = vor.u32 %v3826_v61, %v3823_v3  ;;  %vm2828_vm4 = vcmask 458112   ;;  %v4025_v4 = vsel %vm4023_vm1, %v5713_v0, 0  ;;  %v5725_v58 = vld [vmem:[%s8339_s0 + $0x228] ss:$8 sps:$4 sm:$0xff]  }
 0x259   :  { %v3721_v15 = vld [vmem:[#allocation2 + $0x9c] sm:$0x1]  ;;  %v7428_v10 = vpop.permute.xlu0 %3690  ;;  %v3814_v30 = vrot.slane %v3813_v52, 4  ;;  %v4236_v55 = vsel %vm1580_vm9, %v7291_v32, 0  ;;  %5577 = vmatpush3.bf16.msra.mxu1 %v4025_v4  ;;  %v3921_v27 = vsel %vm6733_vm10, %v5458_v60, %v3920_v40  ;;  %vm3078_vm9 = vcmask 589312  }
 0x25a   :  { %v3877_v38 = vld [vmem:[#allocation2 + $0x9c] sm:$0x1]  ;;  %3266 = vrot.lane.b32.xlu1 %v5411_v14, %s5779_s29  ;;  %v3830_v41 = vshll.u32 %v3721_v15, 16  ;;  %v3828_v6 = vrot.slane %v3827_v12, 4  ;;  %v2384_v36 = vpop.permute.xlu1 %2383  ;;  %5595 = vmatpush3.bf16.msra.mxu0 %v4236_v55  ;;  %vm4433_vm6 = vcmask 1042434   ;;  %vm4715_vm1 = vcmask 326656  }
 0x25b   :  { %v3819_v25 = vsel %vm5901_vm2, %v3814_v30, %v3818_v23  ;;  %v3924_v62 = vrot.slane %v3877_v38, 5  ;;  %2394 = vst.msk [vmem:[#allocation4 + $0x10] sm:$0xff] %vm2391_vm12, %v2384_v36 }
 0x25c   :  { %v3832_v63 = vrot.slane %v3830_v41, 5  ;;  %2490 = vst.msk [vmem:[#allocation4 + $0x10] sm:$0xff] %vm2487_vm13, %v7365_v24 }
 0x25d   :  { %v2678_v21 = vpop.permute.xlu0 %2677  ;;  %v3925_v32 = vsel %vm6733_vm10, %v5459_v34, %v3924_v62  ;;  %2535 = vst.msk [vmem:[#allocation4 + $0x10] sm:$0xff] %vm2532_vm14, %v7286_v39  ;;  %5597 = vmatmul.mubr.msk.bf16.vlgmr.msra.gmra.mrb[4].mxu0 %vm72_vm3, %v5715_v5  ;;  %v5495_v5 = vld [vmem:[%s8347_s8] ss:$0 sm:$0xff]  ;;  %vm4439_vm10 = vcmask 1044484  }
 0x25e   :  { %v3833_v35 = vsel %vm5901_vm2, %v3828_v6, %v3832_v63  ;;  %2690 = vst.msk [vmem:[#allocation4] sm:$0xff] %vm2689_vm15, %v2678_v21  ;;  %vm2985_vm2 = vcmask 523712   ;;  %5600 = vmatprep.mubr.msk.bf16.mxu0 %vm72_vm3, %v5717_v18  ;;  %v5463_v24 = vcombine.low %v3921_v27, %v3925_v32  ;;  %v2684_v51 = vpop.permute.xlu1 %2683  ;;  %v5496_v27 = vld [vmem:[%s8348_s9] ss:$0 sm:$0xff] }
 0x25f   :  { %v5451_v47 = vcombine.low %v3819_v25, %v3833_v35  ;;  %2783 = vst.msk [vmem:[#allocation4] sm:$0xff] %vm2782_vm0, %v7373_v56 }
 0x260   :  { %2829 = vst.msk [vmem:[#allocation4] sm:$0xff] %vm2828_vm4, %v7272_v7  ;;  %v5721_v7 = vld [vmem:[%s8339_s0 + $0x1f8] ss:$8 sps:$4 sm:$0xff]  }
 0x261   :  { %3852 = vrot.lane.b32.xlu1 %v5451_v47, %s5788_s19  ;;  %v2974_v56 = vpop.permute.xlu0 %2973 }
 0x262   :  { %2986 = vst.msk [vmem:[#allocation4] sm:$0xff] %vm2985_vm2, %v2974_v56 }
 0x263   :  { %3079 = vst.msk [vmem:[#allocation4] sm:$0xff] %vm3078_vm9, %v7382_v2  ;;  %v5722_v2 = vld [vmem:[%s8339_s0 + $0x208] ss:$8 sps:$4 sm:$0xff]  }
 0x265   :  { %3944 = vrot.lane.b32.xlu1 %v5463_v24, %s5787_s23  ;;  %5601 = vmatmul.mubr.msk.bf16.gmra.mrb[8].mxu0 %vm72_vm3, %v5718_v53 }
 0x266   :  { %5604 = vmatprep.mubr.msk.bf16.mxu0 %vm72_vm3, %v5721_v7 }
 0x269   :  { %v2980_v42 = vpop.permute.xlu1 %2979 }
 0x26a   :  { %v3954_v39 = vld [vmem:[#allocation4] sm:$0xff] }
 0x26b   :  { %5578 = vmatprep.mubr.msk.bf16.mxu1 %vm3998_vm5, %v3954_v39 }
 0x26d   :  { %5605 = vmatmul.mubr.msk.bf16.gmra.mrb[12].mxu0 %vm72_vm3, %v5722_v2 }
 0x26e   :  { %5608 = vmatprep.mubr.msk.bf16.mxu0 %vm72_vm3, %v5724_v8 }
 0x275   :  { %v2682_v50 = vpop.permute.xlu0 %2681  ;;  %5609 = vmatmul.mubr.msk.bf16.gmra.mrb[16].mxu0 %vm72_vm3, %v5725_v58  ;;  %vm4430_vm3 = vcmask 1041409  }
 0x276   :  { %2692 = vst.msk [vmem:[#allocation4 + $0x10] sm:$0xff] %vm2689_vm15, %v2682_v50 }
 0x277   :  { %2785 = vst.msk [vmem:[#allocation4 + $0x10] sm:$0xff] %vm2782_vm0, %v7389_v57 }
 0x278   :  { %2831 = vst.msk [vmem:[#allocation4 + $0x10] sm:$0xff] %vm2828_vm4, %v7322_v26 }
 0x279   :  { %v2382_v59 = vpop.permute.xlu1 %2381 }
 0x27a   :  { %2393 = vst.msk [vmem:[#allocation4 + $0x8] sm:$0xff] %vm2391_vm12, %v2382_v59 }
 0x27b   :  { %2489 = vst.msk [vmem:[#allocation4 + $0x8] sm:$0xff] %vm2487_vm13, %v7385_v44 }
 0x27c   :  { %2534 = vst.msk [vmem:[#allocation4 + $0x8] sm:$0xff] %vm2532_vm14, %v7262_v28 }
 0x27d   :  { %2691 = vst.msk [vmem:[#allocation4 + $0x8] sm:$0xff] %vm2689_vm15, %v7416_v19 }
 0x27e   :  { %2784 = vst.msk [vmem:[#allocation4 + $0x8] sm:$0xff] %vm2782_vm0, %v7350_v33 }
 0x27f   :  { %v2978_v57 = vpop.permute.xlu0 %2977  ;;  %2830 = vst.msk [vmem:[#allocation4 + $0x8] sm:$0xff] %vm2828_vm4, %v7278_v29 }
 0x280   :  { %2988 = vst.msk [vmem:[#allocation4 + $0x10] sm:$0xff] %vm2985_vm2, %v2978_v57  ;;  %2987 = vst.msk [vmem:[#allocation4 + $0x8] sm:$0xff] %vm2985_vm2, %v7426_v1 }
 0x281   :  { %3081 = vst.msk [vmem:[#allocation4 + $0x10] sm:$0xff] %vm3078_vm9, %v7398_v13  ;;  %3080 = vst.msk [vmem:[#allocation4 + $0x8] sm:$0xff] %vm3078_vm9, %v7357_v11 }
 0x283   :  { %v2386_v28 = vpop.permute.xlu1 %2385  ;;  %v3353_v26 = vpop.permute.xlu0 %3352 }
 0x284   :  { %2395 = vst.msk [vmem:[#allocation4 + $0x18] sm:$0xff] %vm2391_vm12, %v2386_v28 }
 0x285   :  { %2491 = vst.msk [vmem:[#allocation4 + $0x18] sm:$0xff] %vm2487_vm13, %v7396_v20 }
 0x286   :  { %2536 = vst.msk [vmem:[#allocation4 + $0x18] sm:$0xff] %vm2532_vm14, %v7309_v37 }
 0x287   :  { %2693 = vst.msk [vmem:[#allocation4 + $0x18] sm:$0xff] %vm2689_vm15, %v2684_v51  ;;  %v3648_v29 = vpop.permute.xlu1 %3647  ;;  %v3646_v37 = vpop.permute.xlu0 %3645 }
 0x288   :  { %2786 = vst.msk [vmem:[#allocation4 + $0x18] sm:$0xff] %vm2782_vm0, %v7362_v49  ;;  %v3955_v33 = vld [vmem:[#allocation4 + $0x8] sm:$0xff]  ;;  %v3956_v11 = vld [vmem:[#allocation4 + $0x10] sm:$0xff] }
 0x289   :  { %2832 = vst.msk [vmem:[#allocation4 + $0x18] sm:$0xff] %vm2828_vm4, %v7333_v48  ;;  %5579 = vmatmul.mubr.msk.bf16.vlgmr.msra.gmra.mrb[12].mxu1 %vm3998_vm5, %v3955_v33 }
 0x28a   :  { %2989 = vst.msk [vmem:[#allocation4 + $0x18] sm:$0xff] %vm2985_vm2, %v2980_v42  ;;  %5582 = vmatprep.mubr.msk.bf16.mxu1 %vm3998_vm5, %v3956_v11 }
 0x28b   :  { %3082 = vst.msk [vmem:[#allocation4 + $0x18] sm:$0xff] %vm3078_vm9, %v7371_v46  ;;  %v3355_v44 = vpop.permute.xlu1 %3354  ;;  %v3939_v13 = vpop.permute.xlu0 %3938 }
 0x28f   :  { %v3693_v20 = vpop.permute.xlu1 %3692 }
 0x292   :  { %v3957_v19 = vld [vmem:[#allocation4 + $0x18] sm:$0xff] }
 0x293   :  { %v3404_v49 = vpop.permute.xlu1 %3403  ;;  %5583 = vmatmul.mubr.msk.bf16.gmra.mrb[16].mxu1 %vm3998_vm5, %v3957_v19 }
 0x297   :  { %v3261_v43 = vpop.permute.xlu0 %3260  ;;  %v3697_v48 = vpop.permute.xlu1 %3696 }
 0x298   :  { %3272 = vst.msk [vmem:[#allocation4 + $0x20] sm:$0xff] %vm2391_vm12, %v3261_v43 }
 0x299   :  { %3364 = vst.msk [vmem:[#allocation4 + $0x20] sm:$0xff] %vm2487_vm13, %v3353_v26 }
 0x29a   :  { %3409 = vst.msk [vmem:[#allocation4 + $0x20] sm:$0xff] %vm2532_vm14, %v7418_v17 }
 0x29b   :  { %v3402_v45 = vpop.permute.xlu0 %3401  ;;  %v3556_v3 = vpop.permute.xlu1 %3555 }
 0x29f   :  { %v3695_v46 = vpop.permute.xlu0 %3694  ;;  %v3263_v22 = vpop.permute.xlu1 %3262 }
 0x2a0   :  { %3273 = vst.msk [vmem:[#allocation4 + $0x28] sm:$0xff] %vm2391_vm12, %v3263_v22 }
 0x2a1   :  { %3365 = vst.msk [vmem:[#allocation4 + $0x28] sm:$0xff] %vm2487_vm13, %v3355_v44 }
 0x2a2   :  { %3410 = vst.msk [vmem:[#allocation4 + $0x28] sm:$0xff] %vm2532_vm14, %v7405_v9 }
 0x2a3   :  { %v3554_v54 = vpop.permute.xlu0 %3553  ;;  %3566 = vst.msk [vmem:[#allocation4 + $0x28] sm:$0xff] %vm2689_vm15, %v3556_v3  ;;  %v3652_v17 = vpop.permute.xlu1 %3651 }
 0x2a4   :  { %3565 = vst.msk [vmem:[#allocation4 + $0x20] sm:$0xff] %vm2689_vm15, %v3554_v54 }
 0x2a5   :  { %3658 = vst.msk [vmem:[#allocation4 + $0x28] sm:$0xff] %vm2782_vm0, %v3648_v29  ;;  %3657 = vst.msk [vmem:[#allocation4 + $0x20] sm:$0xff] %vm2782_vm0, %v3646_v37 }
 0x2a6   :  { %3703 = vst.msk [vmem:[#allocation4 + $0x28] sm:$0xff] %vm2828_vm4, %v3693_v20  ;;  %3702 = vst.msk [vmem:[#allocation4 + $0x20] sm:$0xff] %vm2828_vm4, %v7428_v10 }
 0x2a7   :  { %v3847_v23 = vpop.permute.xlu0 %3846  ;;  %v3359_v61 = vpop.permute.xlu1 %3358 }
 0x2a8   :  { %3858 = vst.msk [vmem:[#allocation4 + $0x20] sm:$0xff] %vm2985_vm2, %v3847_v23 }
 0x2a9   :  { %3950 = vst.msk [vmem:[#allocation4 + $0x20] sm:$0xff] %vm3078_vm9, %v3939_v13  ;;  %v7593_v13 = vld [vmem:[%s8344_s5] ss:$0 sm:$0xff]  ;;  %s5789_s5 = smov [#allocation5]  }
 0x2ab   :  { %v3941_v9 = vpop.permute.xlu0 %3940 }
 0x2af   :  { %v3357_v31 = vpop.permute.xlu0 %3356 }
 0x2b0   :  { %v3958_v14 = vld [vmem:[#allocation4 + $0x20] sm:$0xff] }
 0x2b1   :  { %5586 = vmatprep.mubr.msk.bf16.mxu1 %vm3998_vm5, %v3958_v14 }
 0x2b3   :  { %v3849_v52 = vpop.permute.xlu1 %3848  ;;  %v3650_v16 = vpop.permute.xlu0 %3649 }
 0x2b4   :  { %3859 = vst.msk [vmem:[#allocation4 + $0x28] sm:$0xff] %vm2985_vm2, %v3849_v52 }
 0x2b5   :  { %3951 = vst.msk [vmem:[#allocation4 + $0x28] sm:$0xff] %vm3078_vm9, %v3941_v9 }
 0x2b8   :  { %v3265_v15 = vpop.permute.xlu1 %3264 }
 0x2b9   :  { %3274 = vst.msk [vmem:[#allocation4 + $0x30] sm:$0xff] %vm2391_vm12, %v3265_v15 }
 0x2ba   :  { %3366 = vst.msk [vmem:[#allocation4 + $0x30] sm:$0xff] %vm2487_vm13, %v3357_v31 }
 0x2bb   :  { %3411 = vst.msk [vmem:[#allocation4 + $0x30] sm:$0xff] %vm2532_vm14, %v3402_v45  ;;  %v7598_v45 = vld [vmem:[%s8345_s6] ss:$0 sm:$0xff]  ;;  %s5032_s6 = sshll.u32 %s5789_s5, 4  ;;  %s5033_s6 = int_to_ptr.vmem [resolvable:$true] %s5032_s6 }
 0x2bc   :  { %v3959_v12 = vld [vmem:[#allocation4 + $0x28] sm:$0xff]  ;;  %p5733_p1 = scmp.lt.s32.totalorder %s5033_s6, %s5033_s6 }
 0x2bd   :  { %v3558_v38 = vpop.permute.xlu0 %3557  ;;  %5587 = vmatmul.mubr.msk.bf16.gmra.mrb[20].mxu1 %vm3998_vm5, %v3959_v12 }
 0x2be   :  { %3567 = vst.msk [vmem:[#allocation4 + $0x30] sm:$0xff] %vm2689_vm15, %v3558_v38 }
 0x2bf   :  { %3659 = vst.msk [vmem:[#allocation4 + $0x30] sm:$0xff] %vm2782_vm0, %v3650_v16 }
 0x2c0   :  { %3704 = vst.msk [vmem:[#allocation4 + $0x30] sm:$0xff] %vm2828_vm4, %v3695_v46 }
 0x2c2   :  { %v3560_v1 = vpop.permute.xlu1 %3559 }
 0x2c6   :  { %v3851_v10 = vpop.permute.xlu0 %3850 }
 0x2c7   :  { %3860 = vst.msk [vmem:[#allocation4 + $0x30] sm:$0xff] %vm2985_vm2, %v3851_v10 }
 0x2ca   :  { %v3943_v0 = vpop.permute.xlu0 %3942 }
 0x2cb   :  { %3952 = vst.msk [vmem:[#allocation4 + $0x30] sm:$0xff] %vm3078_vm9, %v3943_v0 }
 0x2cc   :  { %v3267_v30 = vpop.permute.xlu1 %3266 }
 0x2cd   :  { %3275 = vst.msk [vmem:[#allocation4 + $0x38] sm:$0xff] %vm2391_vm12, %v3267_v30  ;;  %vm4445_vm12 = vcmask 1046534  }
 0x2ce   :  { %3367 = vst.msk [vmem:[#allocation4 + $0x38] sm:$0xff] %vm2487_vm13, %v3359_v61  ;;  %vm4448_vm13 = vcmask 1047559  }
 0x2cf   :  { %3412 = vst.msk [vmem:[#allocation4 + $0x38] sm:$0xff] %vm2532_vm14, %v3404_v49  ;;  %vm4706_vm14 = vcmask 130048  }
 0x2d0   :  { %3568 = vst.msk [vmem:[#allocation4 + $0x38] sm:$0xff] %vm2689_vm15, %v3560_v1  ;;  %vm4709_vm15 = vcmask 195584  }
 0x2d1   :  { %3660 = vst.msk [vmem:[#allocation4 + $0x38] sm:$0xff] %vm2782_vm0, %v3652_v17  ;;  %vm4712_vm0 = vcmask 261120  }
 0x2d2   :  { %3705 = vst.msk [vmem:[#allocation4 + $0x38] sm:$0xff] %vm2828_vm4, %v3697_v48  ;;  %v3960_v60 = vld [vmem:[#allocation4 + $0x30] sm:$0xff]  ;;  %vm4721_vm4 = vcmask 457728  }
 0x2d3   :  { %v3853_v41 = vpop.permute.xlu1 %3852  ;;  %5590 = vmatprep.mubr.msk.bf16.mxu1 %vm3998_vm5, %v3960_v60 }
 0x2d4   :  { %3861 = vst.msk [vmem:[#allocation4 + $0x38] sm:$0xff] %vm2985_vm2, %v3853_v41  ;;  %vm4718_vm2 = vcmask 392192  }
 0x2d7   :  { %v3945_v40 = vpop.permute.xlu1 %3944 }
 0x2d8   :  { %3953 = vst.msk [vmem:[#allocation4 + $0x38] sm:$0xff] %vm3078_vm9, %v3945_v40  ;;  %vm4724_vm9 = vcmask 523264  }
 0x2df   :  { %v3961_v6 = vld [vmem:[#allocation4 + $0x38] sm:$0xff] }
 0x2e0   :  { %5591 = vmatmul.mubr.msk.bf16.gmra.mrb[24].mxu1 %vm3998_vm5, %v3961_v6 }
 0x330   :  { %v5598_v34 = vpop.f32.mrb[4].mxu0 }
 0x331   :  { %v4272_v25 = vpop.f32.mrb[5].mxu0  ;;  %v4344_v20 = vmul.f32 %v5598_v34, %v5495_v5 }
 0x332   :  { %v5599_v63 = vpop.f32.mrb[6].mxu0  ;;  %v4342_v19 = vmul.f32 %v5495_v5, %v4272_v25 }
 0x333   :  { %v4275_v62 = vpop.f32.mrb[7].mxu0  ;;  %v4345_v49 = vmul.f32 %v5599_v63, %v5495_v5  ;;  %v4367_v46 = vadd.f32 %v5496_v27, %v4344_v20 }
 0x334   :  { %v4343_v43 = vmul.f32 %v5495_v5, %v4275_v62  ;;  %v4365_v17 = vadd.f32 %v5496_v27, %v4342_v19 }
 0x335   :  { %v4368_v9 = vadd.f32 %v5496_v27, %v4345_v49 }
 0x336   :  { %v4366_v61 = vadd.f32 %v5496_v27, %v4343_v43 }
 0x338   :  { %v5602_v36 = vpop.f32.mrb[8].mxu0 }
 0x339   :  { %v4288_v21 = vpop.f32.mrb[9].mxu0  ;;  %v4348_v16 = vmul.f32 %v5602_v36, %v5495_v5 }
 0x33a   :  { %v5603_v4 = vpop.f32.mrb[10].mxu0  ;;  %v4346_v15 = vmul.f32 %v5495_v5, %v4288_v21 }
 0x33b   :  { %v4291_v55 = vpop.f32.mrb[11].mxu0  ;;  %v4349_v1 = vmul.f32 %v5603_v4, %v5495_v5  ;;  %v4371_v6 = vadd.f32 %v5496_v27, %v4348_v16 }
 0x33c   :  { %v4347_v10 = vmul.f32 %v5495_v5, %v4291_v55  ;;  %v4369_v34 = vadd.f32 %v5496_v27, %v4346_v15 }
 0x33d   :  { %v4372_v63 = vadd.f32 %v5496_v27, %v4349_v1 }
 0x33e   :  { %v4370_v62 = vadd.f32 %v5496_v27, %v4347_v10 }
 0x340   :  { %v5606_v35 = vpop.f32.mrb[12].mxu0 }
 0x341   :  { %v4352_v18 = vmul.f32 %v5606_v35, %v5495_v5  ;;  %v4304_v47 = vpop.f32.mrb[13].mxu0 }
 0x342   :  { %v4350_v32 = vmul.f32 %v5495_v5, %v4304_v47  ;;  %v5607_v24 = vpop.f32.mrb[14].mxu0 }
 0x343   :  { %v7574_v56 = vadd.f32 %v5496_v27, %v4352_v18  ;;  %v4353_v53 = vmul.f32 %v5607_v24, %v5495_v5  ;;  %v4307_v7 = vpop.f32.mrb[15].mxu0 }
 0x344   :  { %v7576_v39 = vadd.f32 %v5496_v27, %v4350_v32  ;;  %v4351_v2 = vmul.f32 %v5495_v5, %v4307_v7 }
 0x345   :  { %v7578_v8 = vadd.f32 %v5496_v27, %v4353_v53 }
 0x346   :  { %v7580_v51 = vadd.f32 %v5496_v27, %v4351_v2 }
 0x348   :  { %v5610_v42 = vpop.f32.mrb[16].mxu0 }
 0x349   :  { %v4356_v58 = vmul.f32 %v5610_v42, %v5495_v5  ;;  %v4320_v50 = vpop.f32.mrb[17].mxu0 }
 0x34a   :  { %v4354_v59 = vmul.f32 %v5495_v5, %v4320_v50  ;;  %v5611_v57 = vpop.f32.mrb[18].mxu0 }
 0x34b   :  { %v7582_v28 = vadd.f32 %v5496_v27, %v4356_v58  ;;  %v4357_v26 = vmul.f32 %v5611_v57, %v5495_v5  ;;  %v4323_v29 = vpop.f32.mrb[19].mxu0 }
 0x34c   :  { %v7584_v33 = vadd.f32 %v5496_v27, %v4354_v59  ;;  %v4355_v11 = vmul.f32 %v5495_v5, %v4323_v29 }
 0x34d   :  { %v7586_v37 = vadd.f32 %v5496_v27, %v4357_v26 }
 0x34e   :  { %v7588_v44 = vadd.f32 %v5496_v27, %v4355_v11 }
 0x35c   :  { %v5580_v48 = vpop.f32.mrb[12].mxu1 }
 0x35d   :  { %v4133_v3 = vmul.f32 %v5580_v48, %v7593_v13  ;;  %v4061_v22 = vpop.f32.mrb[13].mxu1 }
 0x35e   :  { %v4131_v54 = vmul.f32 %v7593_v13, %v4061_v22  ;;  %v5581_v23 = vpop.f32.mrb[14].mxu1 }
 0x35f   :  { %v4156_v31 = vadd.f32 %v7598_v45, %v4133_v3  ;;  %v4134_v14 = vmul.f32 %v5581_v23, %v7593_v13  ;;  %v4064_v52 = vpop.f32.mrb[15].mxu1 }
 0x360   :  { %v4154_v12 = vadd.f32 %v7598_v45, %v4131_v54  ;;  %v4132_v38 = vmul.f32 %v7593_v13, %v4064_v52 }
 0x361   :  { %v7606_v0 = vadd.f32 %v4367_v46, %v4156_v31  ;;  %v4157_v30 = vadd.f32 %v7598_v45, %v4134_v14 }
 0x362   :  { %v7609_v41 = vadd.f32 %v4365_v17, %v4154_v12  ;;  %v4155_v60 = vadd.f32 %v7598_v45, %v4132_v38 }
 0x363   :  { %v7612_v40 = vadd.f32 %v4368_v9, %v4157_v30  ;;  %v7618_v21 = vmax.f32 %v7606_v0, 0.0  ;;  %v4912_v55 = vrot.slane %v7606_v0, 3  ;;  %v4775_v5 = vrot.slane %v7606_v0, 7 }
 0x364   :  { %v7614_v25 = vadd.f32 %v4366_v61, %v4155_v60  ;;  %v4773_v36 = vrot.slane %v7609_v41, 1  ;;  %v4909_v4 = vrot.slane %v7609_v41, 5  ;;  %v4807_v27 = vrot.slane %v7609_v41, 2 }
 0x365   :  { %v7629_v24 = vmax.f32 %v7609_v41, 0.0  ;;  %v7632_v53 = vmax.f32 %v7612_v40, 0.0  ;;  %v4777_v42 = vrot.slane %v7612_v40, 6  ;;  %v4914_v3 = vrot.slane %v7612_v40, 2 }
 0x366   :  { %v5584_v35 = vpop.f32.mrb[16].mxu1  ;;  %v4910_v18 = vrot.slane %v7614_v25, 4  ;;  %v4774_v47 = vsel %vm4430_vm3, %v7614_v25, %v4773_v36  ;;  %v4808_v32 = vrot.slane %v7614_v25, 1  ;;  %v4811_v46 = vrot.slane %v7612_v40, 7 }
 0x367   :  { %v4137_v7 = vmul.f32 %v5584_v35, %v7593_v13  ;;  %v4077_v2 = vpop.f32.mrb[17].mxu1  ;;  %v4776_v57 = vsel %vm4433_vm6, %v4775_v5, %v4774_v47  ;;  %v4841_v23 = vrot.slane %v7609_v41, 3  ;;  %v4842_v16 = vrot.slane %v7614_v25, 2 }
 0x368   :  { %v4135_v58 = vmul.f32 %v7593_v13, %v4077_v2  ;;  %v5585_v50 = vpop.f32.mrb[18].mxu1  ;;  %v4911_v59 = vsel %vm4430_vm3, %v4910_v18, %v4909_v4  ;;  %v4809_v26 = vsel %vm4430_vm3, %v4808_v32, %v4807_v27  ;;  %v4778_v17 = vsel %vm4436_vm7, %v4777_v42, %v4776_v57 }
 0x369   :  { %v4160_v29 = vadd.f32 %v7598_v45, %v4137_v7  ;;  %v4138_v11 = vmul.f32 %v5585_v50, %v7593_v13  ;;  %v4080_v20 = vpop.f32.mrb[19].mxu1  ;;  %v4913_v19 = vsel %vm4433_vm6, %v4912_v55, %v4911_v59  ;;  %v4810_v49 = vsel %vm4433_vm6, %v7606_v0, %v4809_v26 }
 0x36a   :  { %v4158_v43 = vadd.f32 %v7598_v45, %v4135_v58  ;;  %v4136_v48 = vmul.f32 %v7593_v13, %v4080_v20  ;;  %v4915_v31 = vsel %vm4436_vm7, %v4914_v3, %v4913_v19  ;;  %v4812_v14 = vsel %vm4436_vm7, %v4811_v46, %v4810_v49 }
 0x36b   :  { %v7649_v22 = vadd.f32 %v4371_v6, %v4160_v29  ;;  %v4161_v54 = vadd.f32 %v7598_v45, %v4138_v11  ;;  %v4844_v15 = vrot.slane %v7606_v0, 1  ;;  %v4876_v12 = vrot.slane %v7614_v25, 3 }
 0x36c   :  { %v7654_v9 = vadd.f32 %v4369_v34, %v4158_v43  ;;  %v4159_v61 = vadd.f32 %v7598_v45, %v4136_v48  ;;  %v4843_v18 = vsel %vm4430_vm3, %v4842_v16, %v4841_v23  ;;  %v7687_v42 = vmax.f32 %v7614_v25, 0.0 }
 0x36d   :  { %v7659_v52 = vadd.f32 %v4372_v63, %v4161_v54  ;;  %v4919_v10 = vrot.slane %v7649_v22, 7  ;;  %v4783_v6 = vrot.slane %v7649_v22, 3  ;;  %v4817_v63 = vrot.slane %v7649_v22, 4 }
 0x36e   :  { %v7664_v38 = vadd.f32 %v4370_v62, %v4159_v61  ;;  %v4916_v1 = vrot.slane %v7654_v9, 1  ;;  %v4779_v30 = vrot.slane %v7654_v9, 5  ;;  %v4813_v34 = vrot.slane %v7654_v9, 6 }
 0x36f   :  { %v4921_v60 = vrot.slane %v7659_v52, 6  ;;  %v4847_v47 = vrot.slane %v7654_v9, 7  ;;  %v4845_v2 = vsel %vm4433_vm6, %v4844_v15, %v4843_v18  ;;  %v4875_v59 = vrot.slane %v7609_v41, 4 }
 0x370   :  { %v4917_v36 = vsel %vm4439_vm10, %v4916_v1, %v4915_v31  ;;  %v4780_v4 = vsel %vm4439_vm10, %v4779_v30, %v4778_v17  ;;  %v4781_v62 = vrot.slane %v7664_v38, 4  ;;  %v4815_v55 = vrot.slane %v7664_v38, 5 }
 0x371   :  { %v4918_v5 = vsel %vm4442_vm8, %v7664_v38, %v4917_v36  ;;  %v4814_v35 = vsel %vm4439_vm10, %v4813_v34, %v4812_v14  ;;  %v4846_v50 = vsel %vm4436_vm7, %v7612_v40, %v4845_v2  ;;  %v4849_v11 = vrot.slane %v7664_v38, 6 }
 0x372   :  { %v4920_v27 = vsel %vm4445_vm12, %v4919_v10, %v4918_v5  ;;  %v4782_v32 = vsel %vm4442_vm8, %v4781_v62, %v4780_v4  ;;  %v4816_v7 = vsel %vm4442_vm8, %v4815_v55, %v4814_v35  ;;  %v4848_v29 = vsel %vm4439_vm10, %v4847_v47, %v4846_v50 }
 0x373   :  { %v4922_v58 = vsel %vm4448_vm13, %v4921_v60, %v4920_v27  ;;  %v4784_v57 = vsel %vm4445_vm12, %v4783_v6, %v4782_v32  ;;  %v4818_v26 = vsel %vm4445_vm12, %v4817_v63, %v4816_v7  ;;  %v4785_v20 = vrot.slane %v7659_v52, 2 }
 0x374   :  { %4937 = vrot.lane.b32.xlu0 %v4922_v58, %s5786_s24  ;;  %v4819_v19 = vrot.slane %v7659_v52, 3  ;;  %v4877_v49 = vsel %vm4430_vm3, %v4876_v12, %v4875_v59  ;;  %v4878_v43 = vrot.slane %v7606_v0, 2  ;;  %v7703_v48 = vmax.f32 %v7654_v9, 0.0 }
 0x375   :  { %v4850_v3 = vsel %vm4442_vm8, %v4849_v11, %v4848_v29  ;;  %v4851_v46 = vrot.slane %v7649_v22, 5  ;;  %v4880_v54 = vrot.slane %v7612_v40, 1  ;;  %v4786_v17 = vsel %vm4448_vm13, %v4785_v20, %v4784_v57 }
 0x376   :  { %v4820_v23 = vsel %vm4448_vm13, %v4819_v19, %v4818_v26  ;;  %v4879_v61 = vsel %vm4433_vm6, %v4878_v43, %v4877_v49  ;;  %v4883_v31 = vrot.slane %v7664_v38, 7  ;;  %v4943_v15 = vrot.slane %v7609_v41, 6 }
 0x377   :  { %v4852_v14 = vsel %vm4445_vm12, %v4851_v46, %v4850_v3  ;;  %v4881_v16 = vsel %vm4436_vm7, %v4880_v54, %v4879_v61  ;;  %v4944_v12 = vrot.slane %v7614_v25, 5  ;;  %v4853_v1 = vrot.slane %v7659_v52, 4 }
 0x378   :  { %4801 = vrot.lane.b32.xlu0 %v4786_v17, %s5779_s29  ;;  %v4885_v10 = vrot.slane %v7649_v22, 6  ;;  %v4946_v30 = vrot.slane %v7606_v0, 4  ;;  %v4950_v60 = vrot.slane %v7654_v9, 2  ;;  %v4882_v6 = vsel %vm4439_vm10, %v7654_v9, %v4881_v16 }
 0x379   :  { %v4945_v34 = vsel %vm4430_vm3, %v4944_v12, %v4943_v15  ;;  %v4948_v63 = vrot.slane %v7612_v40, 3  ;;  %v4952_v36 = vrot.slane %v7664_v38, 1  ;;  %v4854_v4 = vsel %vm4448_vm13, %v4853_v1, %v4852_v14 }
 0x37a   :  { %v4884_v62 = vsel %vm4442_vm8, %v4883_v31, %v4882_v6  ;;  %v4887_v55 = vrot.slane %v7659_v52, 5  ;;  %v4947_v5 = vsel %vm4433_vm6, %v4946_v30, %v4945_v34  ;;  %v4955_v18 = vrot.slane %v7659_v52, 7 }
 0x37b   :  { %v4949_v35 = vsel %vm4436_vm7, %v4948_v63, %v4947_v5  ;;  %v4602_v47 = vrot.slane %v7629_v24, 5  ;;  %v4603_v27 = vrot.slane %v7687_v42, 4  ;;  %v7737_v7 = vmax.f32 %v7664_v38, 0.0 }
 0x37c   :  { %4835 = vrot.lane.b32.xlu0 %v4820_v23, %s5778_s18  ;;  %v4951_v32 = vsel %vm4439_vm10, %v4950_v60, %v4949_v35  ;;  %v4605_v2 = vrot.slane %v7618_v21, 3  ;;  %v4609_v58 = vrot.slane %v7703_v48, 1  ;;  %v7743_v59 = vmax.f32 %v7649_v22, 0.0 }
 0x37d   :  { %v4953_v50 = vsel %vm4442_vm8, %v4952_v36, %v4951_v32  ;;  %v4604_v57 = vsel %vm4430_vm3, %v4603_v27, %v4602_v47  ;;  %v4607_v26 = vrot.slane %v7632_v53, 2  ;;  %v4886_v29 = vsel %vm4445_vm12, %v4885_v10, %v4884_v62 }
 0x37e   :  { %v7749_v11 = vmax.f32 %v7659_v52, 0.0  ;;  %v4606_v20 = vsel %vm4433_vm6, %v4605_v2, %v4604_v57  ;;  %v4466_v19 = vrot.slane %v7629_v24, 1  ;;  %v4468_v43 = vrot.slane %v7618_v21, 7 }
 0x37f   :  { %v4608_v49 = vsel %vm4436_vm7, %v4607_v26, %v4606_v20  ;;  %v4470_v3 = vrot.slane %v7632_v53, 6  ;;  %v4472_v46 = vrot.slane %v7703_v48, 5  ;;  %v4954_v54 = vsel %vm4445_vm12, %v7649_v22, %v4953_v50 }
 0x380   :  { %4869 = vrot.lane.b32.xlu0 %v4854_v4, %s5781_s27  ;;  %v4610_v17 = vsel %vm4439_vm10, %v4609_v58, %v4608_v49  ;;  %v4467_v23 = vsel %vm4430_vm3, %v7687_v42, %v4466_v19  ;;  %v4474_v61 = vrot.slane %v7737_v7, 4  ;;  %v4888_v31 = vsel %vm4448_vm13, %v4887_v55, %v4886_v29 }
 0x381   :  { %v4611_v14 = vsel %vm4442_vm8, %v7737_v7, %v4610_v17  ;;  %v4612_v16 = vrot.slane %v7743_v59, 7  ;;  %v4469_v15 = vsel %vm4433_vm6, %v4468_v43, %v4467_v23  ;;  %v4614_v12 = vrot.slane %v7749_v11, 6 }
 0x382   :  { %v4471_v1 = vsel %vm4436_vm7, %v4470_v3, %v4469_v15  ;;  %v4500_v10 = vrot.slane %v7629_v24, 2  ;;  %v4501_v30 = vrot.slane %v7687_v42, 1  ;;  %v4956_v60 = vsel %vm4448_vm13, %v4955_v18, %v4954_v54 }
 0x383   :  { %v4613_v6 = vsel %vm4445_vm12, %v4612_v16, %v4611_v14  ;;  %v4473_v34 = vsel %vm4439_vm10, %v4472_v46, %v4471_v1  ;;  %v4506_v63 = vrot.slane %v7703_v48, 6  ;;  %v4504_v62 = vrot.slane %v7632_v53, 7 }
 0x384   :  { %4903 = vrot.lane.b32.xlu0 %v4888_v31, %s5783_s17  ;;  %v4475_v36 = vsel %vm4442_vm8, %v4474_v61, %v4473_v34  ;;  %v4502_v4 = vsel %vm4430_vm3, %v4501_v30, %v4500_v10  ;;  %v4508_v55 = vrot.slane %v7737_v7, 5  ;;  %v4476_v5 = vrot.slane %v7743_v59, 3 }
 0x385   :  { %v4503_v35 = vsel %vm4433_vm6, %v7618_v21, %v4502_v4  ;;  %v4534_v18 = vrot.slane %v7629_v24, 3  ;;  %v4535_v47 = vrot.slane %v7687_v42, 2  ;;  %v4478_v27 = vrot.slane %v7749_v11, 2 }
 0x386   :  { %v4505_v32 = vsel %vm4436_vm7, %v4504_v62, %v4503_v35  ;;  %v4537_v2 = vrot.slane %v7618_v21, 1  ;;  %v4540_v58 = vrot.slane %v7703_v48, 7  ;;  %v4615_v50 = vsel %vm4448_vm13, %v4614_v12, %v4613_v6 }
 0x387   :  { %v4477_v57 = vsel %vm4445_vm12, %v4476_v5, %v4475_v36  ;;  %v4507_v26 = vsel %vm4439_vm10, %v4506_v63, %v4505_v32  ;;  %v4536_v29 = vsel %vm4430_vm3, %v4535_v47, %v4534_v18  ;;  %v4510_v19 = vrot.slane %v7743_v59, 4 }
 0x388   :  { %4971 = vrot.lane.b32.xlu0 %v4956_v60, %s5785_s22  ;;  %v4509_v20 = vsel %vm4442_vm8, %v4508_v55, %v4507_v26  ;;  %v4512_v49 = vrot.slane %v7749_v11, 3  ;;  %v4538_v43 = vsel %vm4433_vm6, %v4537_v2, %v4536_v29  ;;  %v4542_v46 = vrot.slane %v7737_v7, 6 }
 0x389   :  { %v4539_v3 = vsel %vm4436_vm7, %v7632_v53, %v4538_v43  ;;  %v4568_v54 = vrot.slane %v7629_v24, 4  ;;  %v4569_v17 = vrot.slane %v7687_v42, 3  ;;  %v4479_v23 = vsel %vm4448_vm13, %v4478_v27, %v4477_v57 }
 0x38a   :  { %v4511_v61 = vsel %vm4445_vm12, %v4510_v19, %v4509_v20  ;;  %v4541_v31 = vsel %vm4439_vm10, %v4540_v58, %v4539_v3  ;;  %v4571_v14 = vrot.slane %v7618_v21, 2  ;;  %v4544_v16 = vrot.slane %v7743_v59, 5 }
 0x38b   :  { %v4546_v15 = vrot.slane %v7749_v11, 4  ;;  %v4570_v12 = vsel %vm4430_vm3, %v4569_v17, %v4568_v54  ;;  %v4573_v1 = vrot.slane %v7632_v53, 1  ;;  %v4576_v30 = vrot.slane %v7737_v7, 7 }
 0x38c   :  { %4630 = vrot.lane.b32.xlu0 %v4615_v50, %s5786_s24  ;;  %v4572_v10 = vsel %vm4433_vm6, %v4571_v14, %v4570_v12  ;;  %v4636_v60 = vrot.slane %v7629_v24, 6  ;;  %v4637_v6 = vrot.slane %v7687_v42, 5  ;;  %v4513_v63 = vsel %vm4448_vm13, %v4512_v49, %v4511_v61 }
 0x38d   :  { %v4543_v36 = vsel %vm4442_vm8, %v4542_v46, %v4541_v31  ;;  %v4574_v4 = vsel %vm4436_vm7, %v4573_v1, %v4572_v10  ;;  %v4639_v62 = vrot.slane %v7618_v21, 4  ;;  %v4641_v18 = vrot.slane %v7632_v53, 3 }
 0x38e   :  { %v4638_v35 = vsel %vm4430_vm3, %v4637_v6, %v4636_v60  ;;  %v4643_v47 = vrot.slane %v7703_v48, 2  ;;  %v4575_v2 = vsel %vm4439_vm10, %v7703_v48, %v4574_v4  ;;  %v4645_v50 = vrot.slane %v7737_v7, 1 }
 0x38f   :  { %v4640_v58 = vsel %vm4433_vm6, %v4639_v62, %v4638_v35  ;;  %v4577_v20 = vsel %vm4442_vm8, %v4576_v30, %v4575_v2  ;;  %v4578_v3 = vrot.slane %v7743_v59, 6  ;;  %v4580_v1 = vrot.slane %v7749_v11, 5 }
 0x390   :  { %v5588_v34 = vpop.f32.mrb[20].mxu1  ;;  %4494 = vrot.lane.b32.xlu0 %v4479_v23, %s5779_s29  ;;  %v4642_v19 = vsel %vm4436_vm7, %v4641_v18, %v4640_v58  ;;  %v4545_v23 = vsel %vm4445_vm12, %v4544_v16, %v4543_v36  ;;  %v4670_v16 = vrot.slane %v7629_v24, 7  ;;  %v4671_v30 = vrot.slane %v7687_v42, 6 }
 0x391   :  { %v4141_v55 = vmul.f32 %v5588_v34, %v7593_v13  ;;  %v4093_v5 = vpop.f32.mrb[21].mxu1  ;;  %v4644_v46 = vsel %vm4439_vm10, %v4643_v47, %v4642_v19  ;;  %v4579_v12 = vsel %vm4445_vm12, %v4578_v3, %v4577_v20  ;;  %v4547_v60 = vsel %vm4448_vm13, %v4546_v15, %v4545_v23 }
 0x392   :  { %v4139_v27 = vmul.f32 %v7593_v13, %v4093_v5  ;;  %v5589_v32 = vpop.f32.mrb[22].mxu1  ;;  %v4646_v61 = vsel %vm4442_vm8, %v4645_v50, %v4644_v46  ;;  %v4648_v6 = vrot.slane %v7749_v11, 7  ;;  %v4673_v34 = vrot.slane %v7618_v21, 5 }
 0x393   :  { %v4164_v57 = vadd.f32 %v7598_v45, %v4141_v55  ;;  %v4142_v26 = vmul.f32 %v5589_v32, %v7593_v13  ;;  %v4096_v29 = vpop.f32.mrb[23].mxu1  ;;  %v4647_v10 = vsel %vm4445_vm12, %v7743_v59, %v4646_v61  ;;  %v4677_v36 = vrot.slane %v7703_v48, 3 }
 0x394   :  { %v4162_v49 = vadd.f32 %v7598_v45, %v4139_v27  ;;  %v4140_v43 = vmul.f32 %v7593_v13, %v4096_v29  ;;  %4528 = vrot.lane.b32.xlu0 %v4513_v63, %s5778_s18  ;;  %v4672_v63 = vsel %vm4430_vm3, %v4671_v30, %v4670_v16  ;;  %v4679_v4 = vrot.slane %v7737_v7, 2 }
 0x395   :  { %v7841_v54 = vadd.f32 %v7574_v56, %v4164_v57  ;;  %v4165_v17 = vadd.f32 %v7598_v45, %v4142_v26  ;;  %v4649_v15 = vsel %vm4448_vm13, %v4648_v6, %v4647_v10  ;;  %v4674_v55 = vsel %vm4433_vm6, %v4673_v34, %v4672_v63 }
 0x396   :  { %v7847_v31 = vadd.f32 %v7576_v39, %v4162_v49  ;;  %v4163_v14 = vadd.f32 %v7598_v45, %v4140_v43  ;;  %v4681_v32 = vrot.slane %v7743_v59, 1  ;;  %v4977_v2 = vrot.slane %v7609_v41, 7 }
 0x397   :  { %v7854_v56 = vadd.f32 %v7578_v8, %v4165_v17  ;;  %v4675_v8 = vrot.slane %v7632_v53, 4  ;;  %v7871_v62 = vmax.f32 %v7841_v54, 0.0  ;;  %v4978_v58 = vrot.slane %v7614_v25, 6 }
 0x398   :  { %v7861_v39 = vadd.f32 %v7580_v51, %v4163_v14  ;;  %4562 = vrot.lane.b32.xlu0 %v4547_v60, %s5781_s27  ;;  %v4581_v51 = vsel %vm4448_vm13, %v4580_v1, %v4579_v12  ;;  %v7878_v5 = vmax.f32 %v7847_v31, 0.0  ;;  %v4923_v18 = vrot.slane %v7847_v31, 5 }
 0x399   :  { %v4676_v35 = vsel %vm4436_vm7, %v4675_v8, %v4674_v55  ;;  %v4980_v26 = vrot.slane %v7606_v0, 5  ;;  %v4984_v29 = vrot.slane %v7654_v9, 3  ;;  %v4926_v20 = vrot.slane %v7841_v54, 3 }
 0x39a   :  { %v4924_v47 = vrot.slane %v7861_v39, 4  ;;  %v4678_v27 = vsel %vm4439_vm10, %v4677_v36, %v4676_v35  ;;  %v4979_v19 = vsel %vm4430_vm3, %v4978_v58, %v4977_v2  ;;  %v4982_v49 = vrot.slane %v7612_v40, 4 }
 0x39b   :  { %v4680_v50 = vsel %vm4442_vm8, %v4679_v4, %v4678_v27  ;;  %v4986_v43 = vrot.slane %v7664_v38, 2  ;;  %v7897_v3 = vmax.f32 %v7854_v56, 0.0  ;;  %v7900_v46 = vmax.f32 %v7861_v39, 0.0 }
 0x39c   :  { %v4925_v57 = vsel %vm4430_vm3, %v4924_v47, %v4923_v18  ;;  %4596 = vrot.lane.b32.xlu0 %v4581_v51, %s5783_s17  ;;  %v4682_v17 = vsel %vm4445_vm12, %v4681_v32, %v4680_v50  ;;  %v4981_v23 = vsel %vm4433_vm6, %v4980_v26, %v4979_v19  ;;  %v4988_v12 = vrot.slane %v7649_v22, 1 }
 0x39d   :  { %v4927_v61 = vsel %vm4433_vm6, %v4926_v20, %v4925_v57  ;;  %v4983_v14 = vsel %vm4436_vm7, %v4982_v49, %v4981_v23  ;;  %v4787_v1 = vrot.slane %v7847_v31, 1  ;;  %v4789_v16 = vrot.slane %v7841_v54, 7 }
 0x39e   :  { %v4985_v10 = vsel %vm4439_vm10, %v4984_v29, %v4983_v14  ;;  %v4821_v30 = vrot.slane %v7847_v31, 2  ;;  %v4822_v60 = vrot.slane %v7861_v39, 1  ;;  %v4855_v63 = vrot.slane %v7847_v31, 3 }
 0x39f   :  { %v4987_v6 = vsel %vm4442_vm8, %v4986_v43, %v4985_v10  ;;  %v4788_v34 = vsel %vm4430_vm3, %v7861_v39, %v4787_v1  ;;  %v4856_v8 = vrot.slane %v7861_v39, 2  ;;  %v4928_v36 = vrot.slane %v7854_v56, 2 }
 0x3a0   :  { %4664 = vrot.lane.b32.xlu0 %v4649_v15, %s5785_s22  ;;  %v4989_v4 = vsel %vm4445_vm12, %v4988_v12, %v4987_v6  ;;  %v4791_v51 = vrot.slane %v7854_v56, 6  ;;  %v4823_v55 = vsel %vm4430_vm3, %v4822_v60, %v4821_v30  ;;  %v4683_v15 = vsel %vm4448_vm13, %v7749_v11, %v4682_v17 }
 0x3a1   :  { %v4790_v35 = vsel %vm4433_vm6, %v4789_v16, %v4788_v34  ;;  %v4857_v18 = vsel %vm4430_vm3, %v4856_v8, %v4855_v63  ;;  %v4858_v47 = vrot.slane %v7841_v54, 1  ;;  %v7928_v27 = vsel %vm4436_vm7, %v4928_v36, %v4927_v61 }
 0x3a2   :  { %v4824_v32 = vsel %vm4433_vm6, %v7841_v54, %v4823_v55  ;;  %v4889_v2 = vrot.slane %v7847_v31, 4  ;;  %v4890_v58 = vrot.slane %v7861_v39, 3  ;;  %v4990_v50 = vsel %vm4448_vm13, %v7659_v52, %v4989_v4 }
 0x3a3   :  { %v4825_v57 = vrot.slane %v7854_v56, 7  ;;  %v4859_v26 = vsel %vm4433_vm6, %v4858_v47, %v4857_v18  ;;  %v4892_v29 = vrot.slane %v7841_v54, 2  ;;  %v7941_v20 = vsel %vm4436_vm7, %v4791_v51, %v4790_v35 }
 0x3a4   :  { %4698 = vrot.lane.b32.xlu0 %v4683_v15, %s5788_s19  ;;  %v4891_v19 = vsel %vm4430_vm3, %v4890_v58, %v4889_v2  ;;  %v4957_v49 = vrot.slane %v7847_v31, 6  ;;  %v4958_v43 = vrot.slane %v7861_v39, 5  ;;  %v4616_v61 = vrot.slane %v7878_v5, 5 }
 0x3a5   :  { %v7947_v17 = vsel %vm4436_vm7, %v4825_v57, %v4824_v32  ;;  %v4893_v23 = vsel %vm4433_vm6, %v4892_v29, %v4891_v19  ;;  %v4617_v14 = vrot.slane %v7900_v46, 4  ;;  %v7954_v12 = vsel %vm4436_vm7, %v7854_v56, %v4859_v26 }
 0x3a6   :  { %v4894_v1 = vrot.slane %v7854_v56, 1  ;;  %v4959_v10 = vsel %vm4430_vm3, %v4958_v43, %v4957_v49  ;;  %v4480_v16 = vrot.slane %v7878_v5, 1  ;;  %v4960_v30 = vrot.slane %v7841_v54, 4 }
 0x3a7   :  { %v4962_v60 = vrot.slane %v7854_v56, 3  ;;  %v4618_v6 = vsel %vm4430_vm3, %v4617_v14, %v4616_v61  ;;  %v4619_v34 = vrot.slane %v7871_v62, 3  ;;  %v4621_v8 = vrot.slane %v7897_v3, 2 }
 0x3a8   :  { %5005 = vrot.lane.b32.xlu0 %v4990_v50, %s5788_s19  ;;  %v7965_v63 = vsel %vm4436_vm7, %v4894_v1, %v4893_v23  ;;  %v4481_v36 = vsel %vm4430_vm3, %v7900_v46, %v4480_v16  ;;  %v4482_v4 = vrot.slane %v7871_v62, 7  ;;  %v4961_v51 = vsel %vm4433_vm6, %v4960_v30, %v4959_v10 }
 0x3a9   :  { %v4484_v55 = vrot.slane %v7897_v3, 6  ;;  %v4514_v15 = vrot.slane %v7878_v5, 2  ;;  %v4515_v35 = vrot.slane %v7900_v46, 1  ;;  %v4620_v18 = vsel %vm4433_vm6, %v4619_v34, %v4618_v6 }
 0x3aa   :  { %v4483_v47 = vsel %vm4433_vm6, %v4482_v4, %v4481_v36  ;;  %v4548_v32 = vrot.slane %v7878_v5, 3  ;;  %v4549_v2 = vrot.slane %v7900_v46, 2  ;;  %v4551_v50 = vrot.slane %v7871_v62, 1 }
 0x3ab   :  { %v4516_v58 = vsel %vm4430_vm3, %v4515_v35, %v4514_v15  ;;  %v4582_v57 = vrot.slane %v7878_v5, 4  ;;  %v4583_v26 = vrot.slane %v7900_v46, 3  ;;  %v7984_v29 = vsel %vm4436_vm7, %v4962_v60, %v4961_v51 }
 0x3ac   :  { %v4517_v19 = vsel %vm4433_vm6, %v7871_v62, %v4516_v58  ;;  %v4550_v49 = vsel %vm4430_vm3, %v4549_v2, %v4548_v32  ;;  %v4585_v43 = vrot.slane %v7871_v62, 2  ;;  %v4650_v14 = vrot.slane %v7878_v5, 6 }
 0x3ad   :  { %v4552_v23 = vsel %vm4433_vm6, %v4551_v50, %v4550_v49  ;;  %v4584_v61 = vsel %vm4430_vm3, %v4583_v26, %v4582_v57  ;;  %v4651_v1 = vrot.slane %v7900_v46, 5  ;;  %v7995_v10 = vsel %vm4436_vm7, %v4621_v8, %v4620_v18 }
 0x3ae   :  { %v7998_v16 = vsel %vm4436_vm7, %v4484_v55, %v4483_v47  ;;  %v4518_v30 = vrot.slane %v7897_v3, 7  ;;  %v4587_v60 = vrot.slane %v7897_v3, 1  ;;  %v4586_v6 = vsel %vm4433_vm6, %v4585_v43, %v4584_v61 }
 0x3af   :  { %v4652_v34 = vsel %vm4430_vm3, %v4651_v1, %v4650_v14  ;;  %v4684_v36 = vrot.slane %v7878_v5, 7  ;;  %v4685_v4 = vrot.slane %v7900_v46, 6  ;;  %v8011_v8 = vsel %vm4436_vm7, %v7897_v3, %v4552_v23 }
 0x3b0   :  { %v8007_v15 = vsel %vm4436_vm7, %v4518_v30, %v4517_v19  ;;  %v4653_v55 = vrot.slane %v7871_v62, 4  ;;  %v4687_v35 = vrot.slane %v7871_v62, 5  ;;  %v4991_v2 = vrot.slane %v7847_v31, 7 }
 0x3b1   :  { %v4686_v32 = vsel %vm4430_vm3, %v4685_v4, %v4684_v36  ;;  %v4992_v58 = vrot.slane %v7861_v39, 6  ;;  %v8021_v26 = vsel %vm4436_vm7, %v4587_v60, %v4586_v6  ;;  %v4655_v49 = vrot.slane %v7897_v3, 3 }
 0x3b2   :  { %v4654_v19 = vsel %vm4433_vm6, %v4653_v55, %v4652_v34  ;;  %v4688_v14 = vsel %vm4433_vm6, %v4687_v35, %v4686_v32  ;;  %v4689_v60 = vrot.slane %v7897_v3, 4  ;;  %v4994_v6 = vrot.slane %v7841_v54, 5 }
 0x3b3   :  { %v5592_v51 = vpop.f32.mrb[24].mxu1  ;;  %v4993_v1 = vsel %vm4430_vm3, %v4992_v58, %v4991_v2  ;;  %v4996_v55 = vrot.slane %v7854_v56, 4 }
 0x3b4   :  { %v4145_v18 = vmul.f32 %v5592_v51, %v7593_v13  ;;  %v4109_v47 = vpop.f32.mrb[25].mxu1  ;;  %v8038_v51 = vsel %vm4436_vm7, %v4655_v49, %v4654_v19 }
 0x3b5   :  { %v4143_v50 = vmul.f32 %v7593_v13, %v4109_v47  ;;  %v5593_v57 = vpop.f32.mrb[26].mxu1  ;;  %v8049_v47 = vsel %vm4433_vm6, %v4994_v6, %v4993_v1 }
 0x3b6   :  { %v4168_v43 = vadd.f32 %v7598_v45, %v4145_v18  ;;  %v4146_v23 = vmul.f32 %v5593_v57, %v7593_v13  ;;  %v4112_v61 = vpop.f32.mrb[27].mxu1 }
 0x3b7   :  { %v4166_v30 = vadd.f32 %v7598_v45, %v4143_v50  ;;  %v4144_v36 = vmul.f32 %v7593_v13, %v4112_v61  ;;  %v8046_v13 = vsel %vm4436_vm7, %v4689_v60, %v4688_v14 }
 0x3b8   :  { %v8034_v34 = vadd.f32 %v7582_v28, %v4168_v43  ;;  %v4169_v4 = vadd.f32 %v7598_v45, %v4146_v23 }
 0x3b9   :  { %v8042_v35 = vadd.f32 %v7584_v33, %v4166_v30  ;;  %v4167_v18 = vadd.f32 %v7598_v45, %v4144_v36 }
 0x3ba   :  { %v8052_v28 = vadd.f32 %v7586_v37, %v4169_v4  ;;  %v4933_v32 = vrot.slane %v8034_v34, 7  ;;  %v4797_v2 = vrot.slane %v8034_v34, 3  ;;  %v4831_v58 = vrot.slane %v8034_v34, 4 }
 0x3bb   :  { %v8058_v33 = vmax.f32 %v8042_v35, 0.0  ;;  %v8061_v45 = vadd.f32 %v7588_v44, %v4167_v18  ;;  %v4930_v50 = vrot.slane %v8042_v35, 1  ;;  %v4793_v57 = vrot.slane %v8042_v35, 5 }
 0x3bc   :  { %v4935_v19 = vrot.slane %v8052_v28, 6  ;;  %v4799_v37 = vrot.slane %v8052_v28, 2  ;;  %v4827_v49 = vrot.slane %v8042_v35, 6  ;;  %v4833_v43 = vrot.slane %v8052_v28, 3 }
 0x3bd   :  { %v4931_v23 = vsel %vm4439_vm10, %v4930_v50, %v7928_v27  ;;  %v4794_v61 = vsel %vm4439_vm10, %v4793_v57, %v7941_v20  ;;  %v4795_v44 = vrot.slane %v8061_v45, 4  ;;  %v4829_v14 = vrot.slane %v8061_v45, 5 }
 0x3be   :  { %v4932_v1 = vsel %vm4442_vm8, %v8061_v45, %v4931_v23  ;;  %v4828_v30 = vsel %vm4439_vm10, %v4827_v49, %v7947_v17  ;;  %v4861_v36 = vrot.slane %v8042_v35, 7  ;;  %v4863_v60 = vrot.slane %v8061_v45, 6 }
 0x3bf   :  { %v4934_v6 = vsel %vm4445_vm12, %v4933_v32, %v4932_v1  ;;  %v4796_v27 = vsel %vm4442_vm8, %v4795_v44, %v4794_v61  ;;  %v4830_v20 = vsel %vm4442_vm8, %v4829_v14, %v4828_v30  ;;  %v4865_v4 = vrot.slane %v8034_v34, 5 }
 0x3c0   :  { %v4936_v18 = vsel %vm4448_vm13, %v4935_v19, %v4934_v6  ;;  %v4798_v50 = vsel %vm4445_vm12, %v4797_v2, %v4796_v27  ;;  %v4832_v57 = vsel %vm4445_vm12, %v4831_v58, %v4830_v20  ;;  %v4862_v17 = vsel %vm4439_vm10, %v4861_v36, %v7954_v12 }
 0x3c1   :  { %4939 = vrot.lane.b32.xlu1 %v4936_v18, %s5786_s24  ;;  %v4800_v49 = vsel %vm4448_vm13, %v4799_v37, %v4798_v50  ;;  %v4834_v32 = vsel %vm4448_vm13, %v4833_v43, %v4832_v57  ;;  %v4864_v23 = vsel %vm4442_vm8, %v4863_v60, %v4862_v17  ;;  %v4867_v61 = vrot.slane %v8052_v28, 4 }
 0x3c2   :  { %v4866_v44 = vsel %vm4445_vm12, %v4865_v4, %v4864_v23  ;;  %v4896_v2 = vsel %vm4439_vm10, %v8042_v35, %v7965_v63  ;;  %v4897_v58 = vrot.slane %v8061_v45, 7  ;;  %v4899_v12 = vrot.slane %v8034_v34, 6 }
 0x3c3   :  { %v4868_v19 = vsel %vm4448_vm13, %v4867_v61, %v4866_v44  ;;  %v4901_v37 = vrot.slane %v8052_v28, 5  ;;  %v4964_v43 = vrot.slane %v8042_v35, 2  ;;  %v4966_v14 = vrot.slane %v8061_v45, 1 }
 0x3c4   :  { %v4898_v1 = vsel %vm4442_vm8, %v4897_v58, %v4896_v2  ;;  %v4969_v30 = vrot.slane %v8052_v28, 7  ;;  %v8108_v36 = vmax.f32 %v8061_v45, 0.0  ;;  %v8111_v63 = vmax.f32 %v8034_v34, 0.0 }
 0x3c5   :  { %4803 = vrot.lane.b32.xlu1 %v4800_v49, %s5779_s29  ;;  %v4900_v60 = vsel %vm4445_vm12, %v4899_v12, %v4898_v1  ;;  %v4965_v6 = vsel %vm4439_vm10, %v4964_v43, %v7984_v29  ;;  %v8118_v27 = vmax.f32 %v8052_v28, 0.0  ;;  %v4623_v20 = vrot.slane %v8058_v33, 1 }
 0x3c6   :  { %v4902_v4 = vsel %vm4448_vm13, %v4901_v37, %v4900_v60  ;;  %v4967_v18 = vsel %vm4442_vm8, %v4966_v14, %v4965_v6  ;;  %v4626_v50 = vrot.slane %v8111_v63, 7  ;;  %v4486_v57 = vrot.slane %v8058_v33, 5 }
 0x3c7   :  { %v4968_v17 = vsel %vm4445_vm12, %v8034_v34, %v4967_v18  ;;  %v4624_v49 = vsel %vm4439_vm10, %v4623_v20, %v7995_v10  ;;  %v4628_v29 = vrot.slane %v8118_v27, 6  ;;  %v4488_v23 = vrot.slane %v8108_v36, 4 }
 0x3c8   :  { %v4970_v61 = vsel %vm4448_vm13, %v4969_v30, %v4968_v17  ;;  %v4625_v44 = vsel %vm4442_vm8, %v8108_v36, %v4624_v49  ;;  %v4487_v2 = vsel %vm4439_vm10, %v4486_v57, %v7998_v16  ;;  %v4490_v58 = vrot.slane %v8111_v63, 3 }
 0x3c9   :  { %4837 = vrot.lane.b32.xlu1 %v4834_v32, %s5778_s18  ;;  %v4627_v12 = vsel %vm4445_vm12, %v4626_v50, %v4625_v44  ;;  %v4489_v10 = vsel %vm4442_vm8, %v4488_v23, %v4487_v2  ;;  %v4492_v37 = vrot.slane %v8118_v27, 2  ;;  %v4520_v43 = vrot.slane %v8058_v33, 6 }
 0x3ca   :  { %v4629_v14 = vsel %vm4448_vm13, %v4628_v29, %v4627_v12  ;;  %v4491_v1 = vsel %vm4445_vm12, %v4490_v58, %v4489_v10  ;;  %v4522_v30 = vrot.slane %v8108_v36, 5  ;;  %v4524_v16 = vrot.slane %v8111_v63, 4 }
 0x3cb   :  { %v4493_v60 = vsel %vm4448_vm13, %v4492_v37, %v4491_v1  ;;  %v4521_v32 = vsel %vm4439_vm10, %v4520_v43, %v8007_v15  ;;  %v4526_v6 = vrot.slane %v8118_v27, 3  ;;  %v4554_v20 = vrot.slane %v8058_v33, 7 }
 0x3cc   :  { %v4523_v18 = vsel %vm4442_vm8, %v4522_v30, %v4521_v32  ;;  %v4556_v50 = vrot.slane %v8108_v36, 6  ;;  %v4558_v57 = vrot.slane %v8111_v63, 5  ;;  %v4560_v17 = vrot.slane %v8118_v27, 4 }
 0x3cd   :  { %4871 = vrot.lane.b32.xlu1 %v4868_v19, %s5781_s27  ;;  %v4525_v49 = vsel %vm4445_vm12, %v4524_v16, %v4523_v18  ;;  %v4555_v29 = vsel %vm4439_vm10, %v4554_v20, %v8011_v8  ;;  %v4589_v15 = vsel %vm4439_vm10, %v8058_v33, %v8021_v26  ;;  %v4590_v23 = vrot.slane %v8108_v36, 7 }
 0x3ce   :  { %v4527_v44 = vsel %vm4448_vm13, %v4526_v6, %v4525_v49  ;;  %v4557_v2 = vsel %vm4442_vm8, %v4556_v50, %v4555_v29  ;;  %v4592_v58 = vrot.slane %v8111_v63, 6  ;;  %v4594_v12 = vrot.slane %v8118_v27, 5 }
 0x3cf   :  { %v4559_v19 = vsel %vm4445_vm12, %v4558_v57, %v4557_v2  ;;  %v4591_v10 = vsel %vm4442_vm8, %v4590_v23, %v4589_v15  ;;  %v4657_v8 = vrot.slane %v8058_v33, 2  ;;  %v4659_v37 = vrot.slane %v8108_v36, 1 }
 0x3d0   :  { %v4561_v26 = vsel %vm4448_vm13, %v4560_v17, %v4559_v19  ;;  %v4593_v43 = vsel %vm4445_vm12, %v4592_v58, %v4591_v10  ;;  %v4662_v1 = vrot.slane %v8118_v27, 7  ;;  %v4691_v30 = vrot.slane %v8058_v33, 3 }
 0x3d1   :  { %4905 = vrot.lane.b32.xlu1 %v4902_v4, %s5783_s17  ;;  %v4595_v16 = vsel %vm4448_vm13, %v4594_v12, %v4593_v43  ;;  %v4658_v32 = vsel %vm4439_vm10, %v4657_v8, %v8038_v51  ;;  %v4693_v6 = vrot.slane %v8108_v36, 2  ;;  %v4695_v20 = vrot.slane %v8111_v63, 1 }
 0x3d2   :  { %v4660_v18 = vsel %vm4442_vm8, %v4659_v37, %v4658_v32  ;;  %v4692_v50 = vsel %vm4439_vm10, %v4691_v30, %v8046_v13  ;;  %v4998_v57 = vrot.slane %v8042_v35, 3  ;;  %v5000_v17 = vrot.slane %v8061_v45, 2 }
 0x3d3   :  { %v4661_v4 = vsel %vm4445_vm12, %v8111_v63, %v4660_v18  ;;  %v4694_v49 = vsel %vm4442_vm8, %v4693_v6, %v4692_v50  ;;  %v4997_v51 = vsel %vm4436_vm7, %v4996_v55, %v8049_v47  ;;  %v5002_v23 = vrot.slane %v8034_v34, 1 }
 0x3d4   :  { %v4663_v29 = vsel %vm4448_vm13, %v4662_v1, %v4661_v4  ;;  %v4696_v15 = vsel %vm4445_vm12, %v4695_v20, %v4694_v49  ;;  %v4999_v13 = vsel %vm4439_vm10, %v4998_v57, %v4997_v51  ;;  %v4757_v47 = vrot.slane %v7861_v39, 7 }
 0x3d5   :  { %4973 = vrot.lane.b32.xlu1 %v4970_v61, %s5785_s22  ;;  %v4697_v2 = vsel %vm4448_vm13, %v8118_v27, %v4696_v15  ;;  %v5001_v58 = vsel %vm4442_vm8, %v5000_v17, %v4999_v13  ;;  %v4759_v19 = vrot.slane %v7841_v54, 6  ;;  %v4763_v61 = vrot.slane %v8042_v35, 4 }
 0x3d6   :  { %v5003_v12 = vsel %vm4445_vm12, %v5002_v23, %v5001_v58  ;;  %v4758_v10 = vsel %vm4430_vm3, %v4757_v47, %v7847_v31  ;;  %v4761_v8 = vrot.slane %v7854_v56, 5  ;;  %v4765_v37 = vrot.slane %v8061_v45, 3 }
 0x3d7   :  { %v5004_v55 = vsel %vm4448_vm13, %v8052_v28, %v5003_v12  ;;  %v4450_v43 = vrot.slane %v7900_v46, 7  ;;  %v4760_v1 = vsel %vm4433_vm6, %v4759_v19, %v4758_v10  ;;  %v4454_v35 = vrot.slane %v7897_v3, 5 }
 0x3d8   :  { %v4762_v39 = vsel %vm4436_vm7, %v4761_v8, %v4760_v1  ;;  %v4767_v56 = vrot.slane %v8034_v34, 2  ;;  %v4769_v45 = vrot.slane %v8052_v28, 1  ;;  %v4462_v34 = vrot.slane %v8118_v27, 1 }
 0x3d9   :  { %4632 = vrot.lane.b32.xlu1 %v4629_v14, %s5786_s24  ;;  %v4452_v14 = vrot.slane %v7871_v62, 6  ;;  %v4451_v54 = vsel %vm4430_vm3, %v4450_v43, %v7878_v5  ;;  %v4764_v31 = vsel %vm4439_vm10, %v4763_v61, %v4762_v39  ;;  %v4458_v5 = vrot.slane %v8108_v36, 3 }
 0x3da   :  { %v4766_v62 = vsel %vm4442_vm8, %v4765_v37, %v4764_v31  ;;  %v4429_v57 = vrot.slane %v7687_v42, 7  ;;  %v4743_v17 = vrot.slane %v7614_v25, 7  ;;  %v4435_v13 = vrot.slane %v7632_v53, 5 }
 0x3db   :  { %v4453_v46 = vsel %vm4433_vm6, %v4452_v14, %v4451_v54  ;;  %v4768_v3 = vsel %vm4445_vm12, %v4767_v56, %v4766_v62  ;;  %v4745_v42 = vrot.slane %v7606_v0, 6  ;;  %v4751_v53 = vrot.slane %v7664_v38, 3 }
 0x3dc   :  { %v4455_v30 = vsel %vm4436_vm7, %v4454_v35, %v4453_v46  ;;  %v8233_v32 = vsel %vm4448_vm13, %v4769_v45, %v4768_v3  ;;  %v4431_v49 = vsel %vm4430_vm3, %v4429_v57, %v7629_v24  ;;  %v4744_v15 = vsel %vm4430_vm3, %v4743_v17, %v7609_v41 }
 0x3dd   :  { %4496 = vrot.lane.b32.xlu1 %v4493_v60, %s5779_s29  ;;  %v4456_v60 = vrot.slane %v8058_v33, 4  ;;  %v4746_v24 = vsel %vm4433_vm6, %v4745_v42, %v4744_v15  ;;  %v4444_v47 = vrot.slane %v7743_v59, 2  ;;  %v4447_v61 = vrot.slane %v7749_v11, 1 }
 0x3de   :  { %v4755_v43 = vrot.slane %v7659_v52, 1 }
 0x3df   :  { %v4457_v33 = vsel %vm4439_vm10, %v4456_v60, %v4455_v30 }
 0x3e0   :  { %v4459_v6 = vsel %vm4442_vm8, %v4458_v5, %v4457_v33 }
 0x3e1   :  { %4530 = vrot.lane.b32.xlu1 %v4527_v44, %s5778_s18  ;;  %v4460_v44 = vrot.slane %v8111_v63, 2  ;;  %s5790_s18 = smov [#allocation7]  }
 0x3e3   :  { %v4461_v28 = vsel %vm4445_vm12, %v4460_v44, %v4459_v6 }
 0x3e4   :  { %v8240_v20 = vsel %vm4448_vm13, %v4462_v34, %v4461_v28 }
 0x3e5   :  { %4564 = vrot.lane.b32.xlu1 %v4561_v26, %s5781_s27  ;;  %s5044_s27 = sshll.u32 %s5790_s18, 4  ;;  %s5045_s27 = int_to_ptr.vmem [resolvable:$true] %s5044_s27 }
 0x3e6   :  { %v8242_v36 = vpop.permute.xlu0 %4937 }
 0x3e9   :  { %4598 = vrot.lane.b32.xlu1 %v4595_v16, %s5783_s17  ;;  %v4432_v16 = vrot.slane %v7618_v21, 6  ;;  %v4749_v21 = vrot.slane %v7654_v9, 4  ;;  %s5728_s17 = scalar_lea.vmem %s5033_s6, 256 }
 0x3ea   :  { %v4802_v18 = vpop.permute.xlu0 %4801  ;;  %p5729_p0 = scmp.ne.s32.totalorder %s5033_s6, %s5728_s17  ;;  %p5734_p2 = scmp.lt.s32.totalorder %s5728_s17, %s5728_s17 }
 0x3eb   :  { %v4434_v51 = vsel %vm4433_vm6, %v4432_v16, %v4431_v49 }
 0x3ec   :  { %v4437_v25 = vsel %vm4436_vm7, %v4435_v13, %v4434_v51  ;;  %p5735_p3 = por %p5734_p2, %p5733_p1 }
 0x3ed   :  { %4666 = vrot.lane.b32.xlu1 %v4663_v29, %s5785_s22  ;;  %v4438_v29 = vrot.slane %v7703_v48, 4  ;;  %v4747_v48 = vrot.slane %v7612_v40, 5  ;;  %v4753_v40 = vrot.slane %v7649_v22, 2 }
 0x3ee   :  { %v4836_v63 = vpop.permute.xlu0 %4835  ;;  %p5736_p4 = pnand %p5735_p3, %p5729_p0 }
 0x3ef   :  { %v4440_v58 = vsel %vm4439_vm10, %v4438_v29, %v4437_v25  ;;  %v4748_v41 = vsel %vm4436_vm7, %v4747_v48, %v4746_v24 }
 0x3f0   :  { %v4750_v0 = vsel %vm4439_vm10, %v4749_v21, %v4748_v41 }
 0x3f1   :  { %4700 = vrot.lane.b32.xlu1 %v4697_v2, %s5788_s19  ;;  %v4441_v2 = vrot.slane %v7737_v7, 3  ;;  %v4752_v9 = vsel %vm4442_vm8, %v4751_v53, %v4750_v0 }
 0x3f2   :  { %v4870_v27 = vpop.permute.xlu0 %4869  ;;  %v4754_v38 = vsel %vm4445_vm12, %v4753_v40, %v4752_v9 }
 0x3f3   :  { %v4756_v11 = vsel %vm4448_vm13, %v4755_v43, %v4754_v38 }
 0x3f4   :  { %v5011_v39 = vsel %vm2234_vm11, %v4756_v11, %v4802_v18 }
 0x3f5   :  { %5007 = vrot.lane.b32.xlu1 %v5004_v55, %s5788_s19  ;;  %v4443_v55 = vsel %vm4442_vm8, %v4441_v2, %v4440_v58  ;;  %v5013_v54 = vsel %vm4706_vm14, %v5011_v39, %v4836_v63 }
 0x3f6   :  { %v4904_v50 = vpop.permute.xlu0 %4903  ;;  %v4446_v19 = vsel %vm4445_vm12, %v4444_v47, %v4443_v55  ;;  %v5015_v35 = vsel %vm4709_vm15, %v5013_v54, %v4870_v27 }
 0x3f7   :  { %v4449_v10 = vsel %vm4448_vm13, %v4447_v61, %v4446_v19  ;;  %v5017_v60 = vsel %vm4712_vm0, %v5015_v35, %v4904_v50 }
 0x3f8   :  { %v5019_v45 = vsel %vm4715_vm1, %v5017_v60, %v8242_v36 }
 0x3fa   :  { %v4972_v26 = vpop.permute.xlu0 %4971 }
 0x3fb   :  { %v5021_v62 = vsel %vm4718_vm2, %v5019_v45, %v4972_v26 }
 0x3fe   :  { %v4631_v4 = vpop.permute.xlu0 %4630 }
 0x402   :  { %v4495_v23 = vpop.permute.xlu0 %4494 }
 0x403   :  { %v4704_v37 = vsel %vm2234_vm11, %v4449_v10, %v4495_v23 }
 0x406   :  { %v4529_v12 = vpop.permute.xlu0 %4528 }
 0x407   :  { %v4707_v59 = vsel %vm4706_vm14, %v4704_v37, %v4529_v12 }
 0x40a   :  { %v4563_v7 = vpop.permute.xlu0 %4562 }
 0x40b   :  { %v4710_v1 = vsel %vm4709_vm15, %v4707_v59, %v4563_v7 }
 0x40e   :  { %v4597_v8 = vpop.permute.xlu0 %4596 }
 0x40f   :  { %v4713_v22 = vsel %vm4712_vm0, %v4710_v1, %v4597_v8 }
 0x410   :  { %v4716_v52 = vsel %vm4715_vm1, %v4713_v22, %v4631_v4 }
 0x412   :  { %v4665_v14 = vpop.permute.xlu0 %4664 }
 0x413   :  { %v4719_v31 = vsel %vm4718_vm2, %v4716_v52, %v4665_v14 }
 0x416   :  { %v4699_v56 = vpop.permute.xlu0 %4698 }
 0x417   :  { %v4722_v46 = vsel %vm4721_vm4, %v4719_v31, %v4699_v56 }
 0x418   :  { %4725 = vst.msk [vmem:[#allocation5] sm:$0xff] %vm4724_vm9, %v4722_v46 }
 0x41a   :  { %v5006_v30 = vpop.permute.xlu0 %5005 }
 0x41b   :  { %v5023_v5 = vsel %vm4721_vm4, %v5021_v62, %v5006_v30 }
 0x41c   :  { %5025 = vst.msk [vmem:[#allocation7] sm:$0xff] %vm4724_vm9, %v5023_v5 }
 0x433   :  { %v4940_v3 = vpop.permute.xlu1 %4939 }
 0x437   :  { %v4804_v33 = vpop.permute.xlu1 %4803 }
 0x438   :  { %v5012_v16 = vsel %vm2234_vm11, %v8233_v32, %v4804_v33 }
 0x43b   :  { %v4838_v44 = vpop.permute.xlu1 %4837 }
 0x43c   :  { %v5014_v51 = vsel %vm4706_vm14, %v5012_v16, %v4838_v44 }
 0x43f   :  { %v4872_v34 = vpop.permute.xlu1 %4871 }
 0x440   :  { %v5016_v29 = vsel %vm4709_vm15, %v5014_v51, %v4872_v34 }
 0x443   :  { %v4906_v6 = vpop.permute.xlu1 %4905 }
 0x447   :  { %v4974_v28 = vpop.permute.xlu1 %4973 }
 0x44b   :  { %v4633_v18 = vpop.permute.xlu1 %4632 }
 0x44f   :  { %v4497_v63 = vpop.permute.xlu1 %4496 }
 0x450   :  { %v4705_v36 = vsel %vm2234_vm11, %v8240_v20, %v4497_v63  ;;  %v5018_v20 = vsel %vm4712_vm0, %v5016_v29, %v4906_v6 }
 0x451   :  { %v5020_v32 = vsel %vm4715_vm1, %v5018_v20, %v4940_v3 }
 0x453   :  { %v4531_v27 = vpop.permute.xlu1 %4530 }
 0x454   :  { %v4708_v26 = vsel %vm4706_vm14, %v4705_v36, %v4531_v27 }
 0x457   :  { %v4565_v50 = vpop.permute.xlu1 %4564 }
 0x458   :  { %v4711_v17 = vsel %vm4709_vm15, %v4708_v26, %v4565_v50 }
 0x45b   :  { %v4599_v57 = vpop.permute.xlu1 %4598 }
 0x45c   :  { %v4714_v4 = vsel %vm4712_vm0, %v4711_v17, %v4599_v57 }
 0x45d   :  { %v4717_v15 = vsel %vm4715_vm1, %v4714_v4, %v4633_v18 }
 0x45f   :  { %v4667_v49 = vpop.permute.xlu1 %4666 }
 0x460   :  { %v4720_v13 = vsel %vm4718_vm2, %v4717_v15, %v4667_v49 }
 0x463   :  { %v4701_v23 = vpop.permute.xlu1 %4700 }
 0x464   :  { %v4723_v42 = vsel %vm4721_vm4, %v4720_v13, %v4701_v23 }
 0x465   :  { %4726 = vst.msk [vmem:[#allocation5 + $0x8] sm:$0xff] %vm4724_vm9, %v4723_v42 }
 0x466   :  { %5739 = shalt.err (!%p5736_p4)
}
 0x467   :  { %s5740_s19 = scalar_lea.hbm %s8349_s10, 256 }
 0x468   :  { %p5741_p5 = scmp.ne.s32.totalorder %s8349_s10, %s5740_s19  ;;  %p5744_p6 = scmp.lt.u32.totalorder %s5740_s19, %s8349_s10 }
 0x46a   :  { %p5746_p7 = pnand %p5744_p6, %p5741_p5 }
 0x46c   :  { %5749 = shalt.err (!%p5746_p7)
}
 0x46d   :  { %s5791_s13 = smov 128   ;;  %v5022_v25 = vsel %vm4718_vm2, %v5020_v32, %v4974_v28  ;;  %v5008_v2 = vpop.permute.xlu1 %5007  ;;  %s5750_s26 = scalar_lea.vmem %s5045_s27, 256 }
 0x46e   :  { %5038 = dma.vmem_to_hbm [thread:$0]  %s5033_s6, 256, %s8349_s10, [#allocation6], %s5791_s13, %s5791_s13, %s5779_s29   ;;  %v5024_v24 = vsel %vm4721_vm4, %v5022_v25, %v5008_v2 }
 0x46f   :  { %5026 = vst.msk [vmem:[#allocation7 + $0x8] sm:$0xff] %vm4724_vm9, %v5024_v24  ;;  %p5751_p8 = scmp.ne.s32.totalorder %s5045_s27, %s5750_s26  ;;  %p5755_p9 = scmp.lt.s32.totalorder %s5045_s27, %s5045_s27 }
 0x470   :  { %p5756_p10 = scmp.lt.s32.totalorder %s5750_s26, %s5750_s26 }
 0x472   :  { %p5757_p11 = por %p5756_p10, %p5755_p9 }
 0x474   :  { %p5758_p12 = pnand %p5757_p11, %p5751_p8 }
 0x476   :  { %5761 = shalt.err (!%p5758_p12)
}
 0x477   :  { %s5762_s21 = scalar_lea.hbm %s8350_s11, 256 }
 0x478   :  { %p5763_p13 = scmp.ne.s32.totalorder %s8350_s11, %s5762_s21  ;;  %p5766_p0 = scmp.lt.u32.totalorder %s5762_s21, %s8350_s11 }
 0x47a   :  { %p5768_p1 = pnand %p5766_p0, %p5763_p13 }
 0x47c   :  { %5771 = shalt.err (!%p5768_p1)
}
 0x47d   :  { %5050 = dma.vmem_to_hbm [thread:$0]  %s5045_s27, 256, %s8350_s11, [#allocation8], %s5791_s13, %s5791_s13, %s5779_s29  }
 0x47e   :  { %5772 = dma.done.wait [#allocation6], 256  }
 0x47f   :  { %5773 = vsyncadd [#allocation6], 4294967040 }
 0x480   :  { %5774 = dma.done.wait [#allocation8], 256  }
 0x481   :  { %5775 = vsyncadd [#allocation8], 4294967040 }
 0x482   :  { %5057 = vsyncpa [#allocation6], 1 }
 0x483   :  { %5058 = vsyncpa [#allocation8], 1 }

</bundles_post_ra>
